<compile_context>
chip_gen: v5e
topology: v5e:2x2
jax: 0.10.0
libtpu: 0.0.40
codegen_flags: <defaults>
</compile_context>

<pallas_src>
import functools

import jax
import jax.numpy as jnp
import numpy as np
from jax.experimental import pallas as pl
from jax.experimental.pallas import tpu as pltpu

MXU_DTYPE = jnp.bfloat16   # matmul input dtype (accumulation is always f32)


# -----------------------------------------------------------------------------
# Host-side packing: everything the kernel needs goes into one (R, W) buffer
# -----------------------------------------------------------------------------
def _round8(n):
    return ((n + 7) // 8) * 8


def _pack_blocks(blocks):
    """Pack a dict of 2-D arrays into one (R, W) f32 buffer (W = widest block).

    Each block's row offset is aligned to 8 (sublane tile).  Returns the packed
    buffer and {name: (row0, rows, cols)} with static Python ints.
    """
    width = max(a.shape[1] for a in blocks.values())
    pieces, offs, row = [], {}, 0
    for name, a in blocks.items():
        a = jnp.asarray(a, jnp.float32)
        r, c = a.shape
        assert c <= width
        rp = _round8(r)
        pieces.append(jnp.pad(a, ((0, rp - r), (0, width - c))))
        offs[name] = (row, r, c)
        row += rp
    return jnp.concatenate(pieces, axis=0), offs


# -----------------------------------------------------------------------------
# Kernel: whole forward pass (2-layer GRU recurrence + dense head + sampler)
# -----------------------------------------------------------------------------
def encoder_kernel(pack_ref, out_ref, *, offs, B, T, H, mxu_dtype):
    f32 = jnp.float32

    def load(name):
        r0, r, c = offs[name]
        return pack_ref[pl.ds(r0, r), pl.ds(0, c)]

    def loadw(name):                       # weight, cast once for the MXU
        return load(name).astype(mxu_dtype)

    def dot(a, b):                         # MXU matmul, f32 accumulation
        return jnp.dot(a.astype(mxu_dtype), b, preferred_element_type=f32)

    # ---- unpack (static ref slices; everything hoisted out of the loop) -----
    xr = load("x")                                        # (T*B, A), time-major
    eps = load("eps")                                     # (B, L)

    w0h_r, w0h_z, w0h_n = loadw("w0h_r"), loadw("w0h_z"), loadw("w0h_n")
    w1i_r, w1i_z, w1i_n = loadw("w1i_r"), loadw("w1i_z"), loadw("w1i_n")
    w1h_r, w1h_z, w1h_n = loadw("w1h_r"), loadw("w1h_z"), loadw("w1h_n")

    # Biases used inside the loop: broadcast to (B, H) ONCE (no per-step
    # broadcast_in_dim in the fully unrolled trace).
    bc = lambda name: jnp.broadcast_to(load(name), (B, H))
    b0n_h = bc("b0n_h")
    b1_r, b1_z = bc("b1_r"), bc("b1_z")
    b1n_i, b1n_h = bc("b1n_i"), bc("b1n_h")

    # ---- layer-0 input projection, hoisted off the recurrent critical path --
    # (r/z biases of both ih and hh are folded in here; n keeps only b_in)
    gi0_r = dot(xr, loadw("w0i_r")) + load("b0_r")        # (T*B, H)
    gi0_z = dot(xr, loadw("w0i_z")) + load("b0_z")
    gi0_n = dot(xr, loadw("w0i_n")) + load("b0n_i")

    # ---- 2-layer GRU recurrence (T = 8, fully unrolled) ----------------------
    h0 = jnp.zeros((B, H), f32)
    h1 = jnp.zeros((B, H), f32)

    for t in range(T):
        rows = slice(t * B, (t + 1) * B)
        h0b = h0.astype(mxu_dtype)
        h1b = h1.astype(mxu_dtype)

        # Layer-1 recurrent projection depends only on h1_{t-1}: issue it here
        # so its MXU pushes overlap the layer-0 critical path.
        gh1_r = jnp.dot(h1b, w1h_r, preferred_element_type=f32)
        gh1_z = jnp.dot(h1b, w1h_z, preferred_element_type=f32)
        gh1_n = jnp.dot(h1b, w1h_n, preferred_element_type=f32)

        # Layer 0 (critical path: gh0 -> gates -> h0)
        gh0_r = jnp.dot(h0b, w0h_r, preferred_element_type=f32)
        gh0_z = jnp.dot(h0b, w0h_z, preferred_element_type=f32)
        gh0_n = jnp.dot(h0b, w0h_n, preferred_element_type=f32)
        r0 = jax.nn.sigmoid(gi0_r[rows] + gh0_r)
        z0 = jax.nn.sigmoid(gi0_z[rows] + gh0_z)
        n0 = jnp.tanh(gi0_n[rows] + r0 * (gh0_n + b0n_h))
        h0 = n0 + z0 * (h0 - n0)           # == (1 - z0) * n0 + z0 * h0

        # TODO(synk): inter-layer GRU dropout (p=0.2) is train-only; identity here.

        # Layer 1 (needs the fresh h0)
        h0b = h0.astype(mxu_dtype)
        gi1_r = jnp.dot(h0b, w1i_r, preferred_element_type=f32)
        gi1_z = jnp.dot(h0b, w1i_z, preferred_element_type=f32)
        gi1_n = jnp.dot(h0b, w1i_n, preferred_element_type=f32)
        r1 = jax.nn.sigmoid(gi1_r + gh1_r + b1_r)
        z1 = jax.nn.sigmoid(gi1_z + gh1_z + b1_z)
        n1 = jnp.tanh(gi1_n + b1n_i + r1 * (gh1_n + b1n_h))
        h1 = n1 + z1 * (h1 - n1)

    # ---- dense head: Flatten + Linear + ReLU + Linear (dropouts identity) ----
    # concat([h0, h1]) @ wd1  ==  h0 @ wd1[:H] + h1 @ wd1[H:]   (split host-side,
    # avoids an in-kernel lane concat on the hidden state)
    d1 = jnp.maximum(
        dot(h0, loadw("wd1_a")) + dot(h1, loadw("wd1_b")) + load("bd1"), 0.0)
    d2 = dot(d1, loadw("wd2")) + load("bd2")

    # ---- variational sampler -------------------------------------------------
    mean = dot(d2, loadw("wzm")) + load("bzm")
    logvar = dot(d2, loadw("wzl")) + load("bzl")
    z = mean + jnp.exp(0.5 * logvar) * eps

    # Single lane-packed store: [mean | logvar | z]  ->  one output DMA.
    out_ref[...] = jnp.concatenate([mean, logvar, z], axis=-1)


# -----------------------------------------------------------------------------
# Wrapper
# -----------------------------------------------------------------------------
def encoder_forward(x, params, eps, *, mxu_dtype=MXU_DTYPE):
    """Encoder forward pass in one Pallas kernel.

    x:      (B, T, A) float32 token sequence (batch-first, like PyTorch GRU).
    params: dict from init_params (PyTorch-layout weights pre-transposed).
    eps:    (B, L) float32 gaussian noise (torch.randn_like equivalent).
    Returns (mean, logvar, z), each (B, L) float32.
    """
    B, T, A = x.shape
    H = params["whh0"].shape[0]
    L = params["wzm"].shape[0]

    def gate(w, i):                        # PyTorch gate order [r, z, n]
        return w[:, i * H:(i + 1) * H]

    wih0, whh0 = params["wih0"], params["whh0"]
    wih1, whh1 = params["wih1"], params["whh1"]
    bih0, bhh0 = params["bih0"], params["bhh0"]
    bih1, bhh1 = params["bih1"], params["bhh1"]

    blocks = {
        # Time-major, flattened token sequence -> per-step access is a cheap
        # leading(row)-axis slice after the hoisted input projection.
        "x": jnp.transpose(x, (1, 0, 2)).reshape(T * B, A),
        "eps": eps,
        # GRU layer 0, per-gate weights; r/z biases combined (ih + hh)
        "w0i_r": gate(wih0, 0), "w0i_z": gate(wih0, 1), "w0i_n": gate(wih0, 2),
        "w0h_r": gate(whh0, 0), "w0h_z": gate(whh0, 1), "w0h_n": gate(whh0, 2),
        "b0_r": gate(bih0, 0) + gate(bhh0, 0),
        "b0_z": gate(bih0, 1) + gate(bhh0, 1),
        "b0n_i": gate(bih0, 2), "b0n_h": gate(bhh0, 2),
        # GRU layer 1, per-gate
        "w1i_r": gate(wih1, 0), "w1i_z": gate(wih1, 1), "w1i_n": gate(wih1, 2),
        "w1h_r": gate(whh1, 0), "w1h_z": gate(whh1, 1), "w1h_n": gate(whh1, 2),
        "b1_r": gate(bih1, 0) + gate(bhh1, 0),
        "b1_z": gate(bih1, 1) + gate(bhh1, 1),
        "b1n_i": gate(bih1, 2), "b1n_h": gate(bhh1, 2),
        # Dense head (wd1 split into h0/h1 halves -> no in-kernel concat)
        "wd1_a": params["wd1"][0:H, :], "wd1_b": params["wd1"][H:2 * H, :],
        "bd1": params["bd1"], "wd2": params["wd2"], "bd2": params["bd2"],
        # Variational heads
        "wzm": params["wzm"], "bzm": params["bzm"],
        "wzl": params["wzl"], "bzl": params["bzl"],
    }
    pack, offs = _pack_blocks(blocks)      # one contiguous VMEM input

    kernel = functools.partial(encoder_kernel, offs=offs,
                               B=B, T=T, H=H, mxu_dtype=mxu_dtype)

    # Single grid point: the whole problem (<0.5 MiB) lives in VMEM.
    # TODO(synk): for large batches add a ("parallel",) grid over batch tiles so
    # independent recurrences spread across both v7x TensorCores.
    out = pl.pallas_call(
        kernel,
        out_shape=jax.ShapeDtypeStruct((B, 3 * L), jnp.float32),
        in_specs=[pl.BlockSpec(memory_space=pltpu.MemorySpace.VMEM)],
        out_specs=pl.BlockSpec(memory_space=pltpu.MemorySpace.VMEM),
    )(pack)

    return out[:, 0:L], out[:, L:2 * L], out[:, 2 * L:3 * L]


# -----------------------------------------------------------------------------
# Pure-JAX f32 reference (mirrors the PyTorch module in eval mode)
# -----------------------------------------------------------------------------
def encoder_reference(x, params, eps):
    B, T, A = x.shape
    H = params["whh0"].shape[0]

    def cell(xt, h, wih, whh, bih, bhh):
        gi = xt @ wih + bih
        gh = h @ whh + bhh
        r = jax.nn.sigmoid(gi[:, 0:H] + gh[:, 0:H])
        z = jax.nn.sigmoid(gi[:, H:2 * H] + gh[:, H:2 * H])
        n = jnp.tanh(gi[:, 2 * H:] + r * gh[:, 2 * H:])
        return (1.0 - z) * n + z * h

    h0 = jnp.zeros((B, H), jnp.float32)
    h1 = jnp.zeros((B, H), jnp.float32)
    for t in range(T):
        h0 = cell(x[:, t, :], h0, params["wih0"], params["whh0"],
                  params["bih0"], params["bhh0"])
        h1 = cell(h0, h1, params["wih1"], params["whh1"],
                  params["bih1"], params["bhh1"])

    hid = jnp.concatenate([h0, h1], axis=-1)
    d1 = jax.nn.relu(hid @ params["wd1"] + params["bd1"])
    d2 = d1 @ params["wd2"] + params["bd2"]
    mean = d2 @ params["wzm"] + params["bzm"]
    logvar = d2 @ params["wzl"] + params["bzl"]
    z = mean + jnp.exp(0.5 * logvar) * eps
    return mean, logvar, z


def init_params(key, A, H, L, N=2):
    """Deterministic synthetic parameters (uniform +/- 1/sqrt(fan), like PyTorch)."""
    ks = iter(jax.random.split(key, 32))
    u = lambda k, shape, fan: jax.random.uniform(
        k, shape, jnp.float32, -1.0 / jnp.sqrt(fan), 1.0 / jnp.sqrt(fan))
    H_flat = N * H
    return {
        # GRU layer 0: weight_ih (3H, A) -> transposed (A, 3H); weight_hh -> (H, 3H)
        "wih0": u(next(ks), (A, 3 * H), H),
        "whh0": u(next(ks), (H, 3 * H), H),
        "bih0": u(next(ks), (1, 3 * H), H),
        "bhh0": u(next(ks), (1, 3 * H), H),
        # GRU layer 1: input is H
        "wih1": u(next(ks), (H, 3 * H), H),
        "whh1": u(next(ks), (H, 3 * H), H),
        "bih1": u(next(ks), (1, 3 * H), H),
        "bhh1": u(next(ks), (1, 3 * H), H),
        # dense: Linear(H_flat -> H_flat), Linear(H_flat -> L)
        "wd1": u(next(ks), (H_flat, H_flat), H_flat),
        "bd1": u(next(ks), (1, H_flat), H_flat),
        "wd2": u(next(ks), (H_flat, L), H_flat),
        "bd2": u(next(ks), (1, L), H_flat),
        # z_mean / z_logvar: Linear(L -> L)
        "wzm": u(next(ks), (L, L), L),
        "bzm": u(next(ks), (1, L), L),
        "wzl": u(next(ks), (L, L), L),
        "bzl": u(next(ks), (1, L), L),
    }


if __name__ == "__main__":
    # Small shapes consistent with the module: B=2, seq=8, alphabet=21, H=32, N=2, L=16
    B, T, A, H, L = 2, 8, 21, 32, 16

    key = jax.random.PRNGKey(0)
    k_x, k_p, k_eps = jax.random.split(key, 3)

    x = jax.random.normal(k_x, (B, T, A), jnp.float32)
    params = init_params(k_p, A, H, L)
    eps = jax.random.normal(k_eps, (B, L), jnp.float32)

    fwd = jax.jit(encoder_forward)
    mean, logvar, z = fwd(x, params, eps)
    jax.block_until_ready((mean, logvar, z))

    assert mean.shape == (B, L) and logvar.shape == (B, L) and z.shape == (B, L)

    # Sanity check vs. pure-JAX f32 reference (loose tolerance: bf16 MXU inputs).
    m_ref, lv_ref, z_ref = encoder_reference(x, params, eps)
    for got, ref in ((mean, m_ref), (logvar, lv_ref), (z, z_ref)):
        assert np.allclose(np.asarray(got), np.asarray(ref), atol=5e-2, rtol=5e-2), (
            float(jnp.max(jnp.abs(got - ref))))

    print("KERNEL_OK")
</pallas_src>

<mosaic_0001>
module attributes {stable_mosaic.version = 11 : i64} {
  func.func @encoder_kernel(%arg0: memref<640x64xf32, #tpu.memory_space<vmem>>, %arg1: memref<2x48xf32, #tpu.memory_space<vmem>>) attributes {dimension_semantics = [], scalar_prefetch = 0 : i64, scratch_operands = 0 : i64, tpu.core_type = #tpu.core_type<tc>} {
    %c0 = arith.constant 0 : index
    %c0_0 = arith.constant 0 : index
    %0 = vector.load %arg0[%c0, %c0_0] : memref<640x64xf32, #tpu.memory_space<vmem>>, vector<16x21xf32>
    %c16 = arith.constant 16 : index
    %c0_1 = arith.constant 0 : index
    %1 = vector.load %arg0[%c16, %c0_1] : memref<640x64xf32, #tpu.memory_space<vmem>>, vector<2x16xf32>
    %c96 = arith.constant 96 : index
    %c0_2 = arith.constant 0 : index
    %2 = vector.load %arg0[%c96, %c0_2] : memref<640x64xf32, #tpu.memory_space<vmem>>, vector<32x32xf32>
    %3 = arith.truncf %2 : vector<32x32xf32> to vector<32x32xbf16>
    %c128 = arith.constant 128 : index
    %c0_3 = arith.constant 0 : index
    %4 = vector.load %arg0[%c128, %c0_3] : memref<640x64xf32, #tpu.memory_space<vmem>>, vector<32x32xf32>
    %5 = arith.truncf %4 : vector<32x32xf32> to vector<32x32xbf16>
    %c160 = arith.constant 160 : index
    %c0_4 = arith.constant 0 : index
    %6 = vector.load %arg0[%c160, %c0_4] : memref<640x64xf32, #tpu.memory_space<vmem>>, vector<32x32xf32>
    %7 = arith.truncf %6 : vector<32x32xf32> to vector<32x32xbf16>
    %c224 = arith.constant 224 : index
    %c0_5 = arith.constant 0 : index
    %8 = vector.load %arg0[%c224, %c0_5] : memref<640x64xf32, #tpu.memory_space<vmem>>, vector<32x32xf32>
    %9 = arith.truncf %8 : vector<32x32xf32> to vector<32x32xbf16>
    %c256 = arith.constant 256 : index
    %c0_6 = arith.constant 0 : index
    %10 = vector.load %arg0[%c256, %c0_6] : memref<640x64xf32, #tpu.memory_space<vmem>>, vector<32x32xf32>
    %11 = arith.truncf %10 : vector<32x32xf32> to vector<32x32xbf16>
    %c288 = arith.constant 288 : index
    %c0_7 = arith.constant 0 : index
    %12 = vector.load %arg0[%c288, %c0_7] : memref<640x64xf32, #tpu.memory_space<vmem>>, vector<32x32xf32>
    %13 = arith.truncf %12 : vector<32x32xf32> to vector<32x32xbf16>
    %c320 = arith.constant 320 : index
    %c0_8 = arith.constant 0 : index
    %14 = vector.load %arg0[%c320, %c0_8] : memref<640x64xf32, #tpu.memory_space<vmem>>, vector<32x32xf32>
    %15 = arith.truncf %14 : vector<32x32xf32> to vector<32x32xbf16>
    %c352 = arith.constant 352 : index
    %c0_9 = arith.constant 0 : index
    %16 = vector.load %arg0[%c352, %c0_9] : memref<640x64xf32, #tpu.memory_space<vmem>>, vector<32x32xf32>
    %17 = arith.truncf %16 : vector<32x32xf32> to vector<32x32xbf16>
    %c384 = arith.constant 384 : index
    %c0_10 = arith.constant 0 : index
    %18 = vector.load %arg0[%c384, %c0_10] : memref<640x64xf32, #tpu.memory_space<vmem>>, vector<32x32xf32>
    %19 = arith.truncf %18 : vector<32x32xf32> to vector<32x32xbf16>
    %c216 = arith.constant 216 : index
    %c0_11 = arith.constant 0 : index
    %20 = vector.load %arg0[%c216, %c0_11] : memref<640x64xf32, #tpu.memory_space<vmem>>, vector<1x32xf32>
    %21 = vector.shape_cast %20 : vector<1x32xf32> to vector<1x32xf32>
    %22 = vector.broadcast %21 : vector<1x32xf32> to vector<2x32xf32>
    %c416 = arith.constant 416 : index
    %c0_12 = arith.constant 0 : index
    %23 = vector.load %arg0[%c416, %c0_12] : memref<640x64xf32, #tpu.memory_space<vmem>>, vector<1x32xf32>
    %24 = vector.shape_cast %23 : vector<1x32xf32> to vector<1x32xf32>
    %25 = vector.broadcast %24 : vector<1x32xf32> to vector<2x32xf32>
    %c424 = arith.constant 424 : index
    %c0_13 = arith.constant 0 : index
    %26 = vector.load %arg0[%c424, %c0_13] : memref<640x64xf32, #tpu.memory_space<vmem>>, vector<1x32xf32>
    %27 = vector.shape_cast %26 : vector<1x32xf32> to vector<1x32xf32>
    %28 = vector.broadcast %27 : vector<1x32xf32> to vector<2x32xf32>
    %c432 = arith.constant 432 : index
    %c0_14 = arith.constant 0 : index
    %29 = vector.load %arg0[%c432, %c0_14] : memref<640x64xf32, #tpu.memory_space<vmem>>, vector<1x32xf32>
    %30 = vector.shape_cast %29 : vector<1x32xf32> to vector<1x32xf32>
    %31 = vector.broadcast %30 : vector<1x32xf32> to vector<2x32xf32>
    %c440 = arith.constant 440 : index
    %c0_15 = arith.constant 0 : index
    %32 = vector.load %arg0[%c440, %c0_15] : memref<640x64xf32, #tpu.memory_space<vmem>>, vector<1x32xf32>
    %33 = vector.shape_cast %32 : vector<1x32xf32> to vector<1x32xf32>
    %34 = vector.broadcast %33 : vector<1x32xf32> to vector<2x32xf32>
    %c24 = arith.constant 24 : index
    %c0_16 = arith.constant 0 : index
    %35 = vector.load %arg0[%c24, %c0_16] : memref<640x64xf32, #tpu.memory_space<vmem>>, vector<21x32xf32>
    %36 = arith.truncf %35 : vector<21x32xf32> to vector<21x32xbf16>
    %37 = arith.truncf %0 : vector<16x21xf32> to vector<16x21xbf16>
    %cst = arith.constant dense<0.000000e+00> : vector<16x32xf32>
    %38 = tpu.matmul %37, %36, %cst {dimension_numbers = #tpu.dot_dimension_numbers<[1], [0], [0], [1], [0, 0, 1, 1], [], []>} : vector<16x21xbf16>, vector<21x32xbf16>, vector<16x32xf32> -> vector<16x32xf32>
    %c192 = arith.constant 192 : index
    %c0_17 = arith.constant 0 : index
    %39 = vector.load %arg0[%c192, %c0_17] : memref<640x64xf32, #tpu.memory_space<vmem>>, vector<1x32xf32>
    %40 = vector.broadcast %39 : vector<1x32xf32> to vector<16x32xf32>
    %41 = arith.addf %38, %40 : vector<16x32xf32>
    %c48 = arith.constant 48 : index
    %c0_18 = arith.constant 0 : index
    %42 = vector.load %arg0[%c48, %c0_18] : memref<640x64xf32, #tpu.memory_space<vmem>>, vector<21x32xf32>
    %43 = arith.truncf %42 : vector<21x32xf32> to vector<21x32xbf16>
    %44 = arith.truncf %0 : vector<16x21xf32> to vector<16x21xbf16>
    %cst_19 = arith.constant dense<0.000000e+00> : vector<16x32xf32>
    %45 = tpu.matmul %44, %43, %cst_19 {dimension_numbers = #tpu.dot_dimension_numbers<[1], [0], [0], [1], [0, 0, 1, 1], [], []>} : vector<16x21xbf16>, vector<21x32xbf16>, vector<16x32xf32> -> vector<16x32xf32>
    %c200 = arith.constant 200 : index
    %c0_20 = arith.constant 0 : index
    %46 = vector.load %arg0[%c200, %c0_20] : memref<640x64xf32, #tpu.memory_space<vmem>>, vector<1x32xf32>
    %47 = vector.broadcast %46 : vector<1x32xf32> to vector<16x32xf32>
    %48 = arith.addf %45, %47 : vector<16x32xf32>
    %c72 = arith.constant 72 : index
    %c0_21 = arith.constant 0 : index
    %49 = vector.load %arg0[%c72, %c0_21] : memref<640x64xf32, #tpu.memory_space<vmem>>, vector<21x32xf32>
    %50 = arith.truncf %49 : vector<21x32xf32> to vector<21x32xbf16>
    %51 = arith.truncf %0 : vector<16x21xf32> to vector<16x21xbf16>
    %cst_22 = arith.constant dense<0.000000e+00> : vector<16x32xf32>
    %52 = tpu.matmul %51, %50, %cst_22 {dimension_numbers = #tpu.dot_dimension_numbers<[1], [0], [0], [1], [0, 0, 1, 1], [], []>} : vector<16x21xbf16>, vector<21x32xbf16>, vector<16x32xf32> -> vector<16x32xf32>
    %c208 = arith.constant 208 : index
    %c0_23 = arith.constant 0 : index
    %53 = vector.load %arg0[%c208, %c0_23] : memref<640x64xf32, #tpu.memory_space<vmem>>, vector<1x32xf32>
    %54 = vector.broadcast %53 : vector<1x32xf32> to vector<16x32xf32>
    %55 = arith.addf %52, %54 : vector<16x32xf32>
    %cst_24 = arith.constant 0.000000e+00 : f32
    %56 = vector.broadcast %cst_24 : f32 to vector<2x32xf32>
    %cst_25 = arith.constant 0.000000e+00 : f32
    %57 = vector.broadcast %cst_25 : f32 to vector<2x32xf32>
    %58 = arith.truncf %56 : vector<2x32xf32> to vector<2x32xbf16>
    %59 = arith.truncf %57 : vector<2x32xf32> to vector<2x32xbf16>
    %cst_26 = arith.constant dense<0.000000e+00> : vector<2x32xf32>
    %60 = tpu.matmul %59, %15, %cst_26 {dimension_numbers = #tpu.dot_dimension_numbers<[1], [0], [0], [1], [0, 0, 1, 1], [], []>} : vector<2x32xbf16>, vector<32x32xbf16>, vector<2x32xf32> -> vector<2x32xf32>
    %cst_27 = arith.constant dense<0.000000e+00> : vector<2x32xf32>
    %61 = tpu.matmul %59, %17, %cst_27 {dimension_numbers = #tpu.dot_dimension_numbers<[1], [0], [0], [1], [0, 0, 1, 1], [], []>} : vector<2x32xbf16>, vector<32x32xbf16>, vector<2x32xf32> -> vector<2x32xf32>
    %cst_28 = arith.constant dense<0.000000e+00> : vector<2x32xf32>
    %62 = tpu.matmul %59, %19, %cst_28 {dimension_numbers = #tpu.dot_dimension_numbers<[1], [0], [0], [1], [0, 0, 1, 1], [], []>} : vector<2x32xbf16>, vector<32x32xbf16>, vector<2x32xf32> -> vector<2x32xf32>
    %cst_29 = arith.constant dense<0.000000e+00> : vector<2x32xf32>
    %63 = tpu.matmul %58, %3, %cst_29 {dimension_numbers = #tpu.dot_dimension_numbers<[1], [0], [0], [1], [0, 0, 1, 1], [], []>} : vector<2x32xbf16>, vector<32x32xbf16>, vector<2x32xf32> -> vector<2x32xf32>
    %cst_30 = arith.constant dense<0.000000e+00> : vector<2x32xf32>
    %64 = tpu.matmul %58, %5, %cst_30 {dimension_numbers = #tpu.dot_dimension_numbers<[1], [0], [0], [1], [0, 0, 1, 1], [], []>} : vector<2x32xbf16>, vector<32x32xbf16>, vector<2x32xf32> -> vector<2x32xf32>
    %cst_31 = arith.constant dense<0.000000e+00> : vector<2x32xf32>
    %65 = tpu.matmul %58, %7, %cst_31 {dimension_numbers = #tpu.dot_dimension_numbers<[1], [0], [0], [1], [0, 0, 1, 1], [], []>} : vector<2x32xbf16>, vector<32x32xbf16>, vector<2x32xf32> -> vector<2x32xf32>
    %66 = vector.extract_strided_slice %41 {offsets = [0, 0], sizes = [2, 32], strides = [1, 1]} : vector<16x32xf32> to vector<2x32xf32>
    %67 = arith.addf %66, %63 : vector<2x32xf32>
    %68 = arith.negf %67 : vector<2x32xf32>
    %69 = math.exp %68 : vector<2x32xf32>
    %cst_32 = arith.constant 1.000000e+00 : f32
    %70 = vector.broadcast %cst_32 : f32 to vector<2x32xf32>
    %71 = arith.addf %70, %69 : vector<2x32xf32>
    %72 = arith.divf %70, %71 : vector<2x32xf32>
    %73 = vector.extract_strided_slice %48 {offsets = [0, 0], sizes = [2, 32], strides = [1, 1]} : vector<16x32xf32> to vector<2x32xf32>
    %74 = arith.addf %73, %64 : vector<2x32xf32>
    %75 = arith.negf %74 : vector<2x32xf32>
    %76 = math.exp %75 : vector<2x32xf32>
    %cst_33 = arith.constant 1.000000e+00 : f32
    %77 = vector.broadcast %cst_33 : f32 to vector<2x32xf32>
    %78 = arith.addf %77, %76 : vector<2x32xf32>
    %79 = arith.divf %77, %78 : vector<2x32xf32>
    %80 = vector.extract_strided_slice %55 {offsets = [0, 0], sizes = [2, 32], strides = [1, 1]} : vector<16x32xf32> to vector<2x32xf32>
    %81 = arith.addf %65, %22 : vector<2x32xf32>
    %82 = arith.mulf %72, %81 : vector<2x32xf32>
    %83 = arith.addf %80, %82 : vector<2x32xf32>
    %84 = math.tanh %83 : vector<2x32xf32>
    %85 = arith.subf %56, %84 : vector<2x32xf32>
    %86 = arith.mulf %79, %85 : vector<2x32xf32>
    %87 = arith.addf %84, %86 : vector<2x32xf32>
    %88 = arith.truncf %87 : vector<2x32xf32> to vector<2x32xbf16>
    %cst_34 = arith.constant dense<0.000000e+00> : vector<2x32xf32>
    %89 = tpu.matmul %88, %9, %cst_34 {dimension_numbers = #tpu.dot_dimension_numbers<[1], [0], [0], [1], [0, 0, 1, 1], [], []>} : vector<2x32xbf16>, vector<32x32xbf16>, vector<2x32xf32> -> vector<2x32xf32>
    %cst_35 = arith.constant dense<0.000000e+00> : vector<2x32xf32>
    %90 = tpu.matmul %88, %11, %cst_35 {dimension_numbers = #tpu.dot_dimension_numbers<[1], [0], [0], [1], [0, 0, 1, 1], [], []>} : vector<2x32xbf16>, vector<32x32xbf16>, vector<2x32xf32> -> vector<2x32xf32>
    %cst_36 = arith.constant dense<0.000000e+00> : vector<2x32xf32>
    %91 = tpu.matmul %88, %13, %cst_36 {dimension_numbers = #tpu.dot_dimension_numbers<[1], [0], [0], [1], [0, 0, 1, 1], [], []>} : vector<2x32xbf16>, vector<32x32xbf16>, vector<2x32xf32> -> vector<2x32xf32>
    %92 = arith.addf %89, %60 : vector<2x32xf32>
    %93 = arith.addf %92, %25 : vector<2x32xf32>
    %94 = arith.negf %93 : vector<2x32xf32>
    %95 = math.exp %94 : vector<2x32xf32>
    %cst_37 = arith.constant 1.000000e+00 : f32
    %96 = vector.broadcast %cst_37 : f32 to vector<2x32xf32>
    %97 = arith.addf %96, %95 : vector<2x32xf32>
    %98 = arith.divf %96, %97 : vector<2x32xf32>
    %99 = arith.addf %90, %61 : vector<2x32xf32>
    %100 = arith.addf %99, %28 : vector<2x32xf32>
    %101 = arith.negf %100 : vector<2x32xf32>
    %102 = math.exp %101 : vector<2x32xf32>
    %cst_38 = arith.constant 1.000000e+00 : f32
    %103 = vector.broadcast %cst_38 : f32 to vector<2x32xf32>
    %104 = arith.addf %103, %102 : vector<2x32xf32>
    %105 = arith.divf %103, %104 : vector<2x32xf32>
    %106 = arith.addf %91, %31 : vector<2x32xf32>
    %107 = arith.addf %62, %34 : vector<2x32xf32>
    %108 = arith.mulf %98, %107 : vector<2x32xf32>
    %109 = arith.addf %106, %108 : vector<2x32xf32>
    %110 = math.tanh %109 : vector<2x32xf32>
    %111 = arith.subf %57, %110 : vector<2x32xf32>
    %112 = arith.mulf %105, %111 : vector<2x32xf32>
    %113 = arith.addf %110, %112 : vector<2x32xf32>
    %114 = arith.truncf %87 : vector<2x32xf32> to vector<2x32xbf16>
    %115 = arith.truncf %113 : vector<2x32xf32> to vector<2x32xbf16>
    %cst_39 = arith.constant dense<0.000000e+00> : vector<2x32xf32>
    %116 = tpu.matmul %115, %15, %cst_39 {dimension_numbers = #tpu.dot_dimension_numbers<[1], [0], [0], [1], [0, 0, 1, 1], [], []>} : vector<2x32xbf16>, vector<32x32xbf16>, vector<2x32xf32> -> vector<2x32xf32>
    %cst_40 = arith.constant dense<0.000000e+00> : vector<2x32xf32>
    %117 = tpu.matmul %115, %17, %cst_40 {dimension_numbers = #tpu.dot_dimension_numbers<[1], [0], [0], [1], [0, 0, 1, 1], [], []>} : vector<2x32xbf16>, vector<32x32xbf16>, vector<2x32xf32> -> vector<2x32xf32>
    %cst_41 = arith.constant dense<0.000000e+00> : vector<2x32xf32>
    %118 = tpu.matmul %115, %19, %cst_41 {dimension_numbers = #tpu.dot_dimension_numbers<[1], [0], [0], [1], [0, 0, 1, 1], [], []>} : vector<2x32xbf16>, vector<32x32xbf16>, vector<2x32xf32> -> vector<2x32xf32>
    %cst_42 = arith.constant dense<0.000000e+00> : vector<2x32xf32>
    %119 = tpu.matmul %114, %3, %cst_42 {dimension_numbers = #tpu.dot_dimension_numbers<[1], [0], [0], [1], [0, 0, 1, 1], [], []>} : vector<2x32xbf16>, vector<32x32xbf16>, vector<2x32xf32> -> vector<2x32xf32>
    %cst_43 = arith.constant dense<0.000000e+00> : vector<2x32xf32>
    %120 = tpu.matmul %114, %5, %cst_43 {dimension_numbers = #tpu.dot_dimension_numbers<[1], [0], [0], [1], [0, 0, 1, 1], [], []>} : vector<2x32xbf16>, vector<32x32xbf16>, vector<2x32xf32> -> vector<2x32xf32>
    %cst_44 = arith.constant dense<0.000000e+00> : vector<2x32xf32>
    %121 = tpu.matmul %114, %7, %cst_44 {dimension_numbers = #tpu.dot_dimension_numbers<[1], [0], [0], [1], [0, 0, 1, 1], [], []>} : vector<2x32xbf16>, vector<32x32xbf16>, vector<2x32xf32> -> vector<2x32xf32>
    %122 = vector.extract_strided_slice %41 {offsets = [2, 0], sizes = [2, 32], strides = [1, 1]} : vector<16x32xf32> to vector<2x32xf32>
    %123 = arith.addf %122, %119 : vector<2x32xf32>
    %124 = arith.negf %123 : vector<2x32xf32>
    %125 = math.exp %124 : vector<2x32xf32>
    %cst_45 = arith.constant 1.000000e+00 : f32
    %126 = vector.broadcast %cst_45 : f32 to vector<2x32xf32>
    %127 = arith.addf %126, %125 : vector<2x32xf32>
    %128 = arith.divf %126, %127 : vector<2x32xf32>
    %129 = vector.extract_strided_slice %48 {offsets = [2, 0], sizes = [2, 32], strides = [1, 1]} : vector<16x32xf32> to vector<2x32xf32>
    %130 = arith.addf %129, %120 : vector<2x32xf32>
    %131 = arith.negf %130 : vector<2x32xf32>
    %132 = math.exp %131 : vector<2x32xf32>
    %cst_46 = arith.constant 1.000000e+00 : f32
    %133 = vector.broadcast %cst_46 : f32 to vector<2x32xf32>
    %134 = arith.addf %133, %132 : vector<2x32xf32>
    %135 = arith.divf %133, %134 : vector<2x32xf32>
    %136 = vector.extract_strided_slice %55 {offsets = [2, 0], sizes = [2, 32], strides = [1, 1]} : vector<16x32xf32> to vector<2x32xf32>
    %137 = arith.addf %121, %22 : vector<2x32xf32>
    %138 = arith.mulf %128, %137 : vector<2x32xf32>
    %139 = arith.addf %136, %138 : vector<2x32xf32>
    %140 = math.tanh %139 : vector<2x32xf32>
    %141 = arith.subf %87, %140 : vector<2x32xf32>
    %142 = arith.mulf %135, %141 : vector<2x32xf32>
    %143 = arith.addf %140, %142 : vector<2x32xf32>
    %144 = arith.truncf %143 : vector<2x32xf32> to vector<2x32xbf16>
    %cst_47 = arith.constant dense<0.000000e+00> : vector<2x32xf32>
    %145 = tpu.matmul %144, %9, %cst_47 {dimension_numbers = #tpu.dot_dimension_numbers<[1], [0], [0], [1], [0, 0, 1, 1], [], []>} : vector<2x32xbf16>, vector<32x32xbf16>, vector<2x32xf32> -> vector<2x32xf32>
    %cst_48 = arith.constant dense<0.000000e+00> : vector<2x32xf32>
    %146 = tpu.matmul %144, %11, %cst_48 {dimension_numbers = #tpu.dot_dimension_numbers<[1], [0], [0], [1], [0, 0, 1, 1], [], []>} : vector<2x32xbf16>, vector<32x32xbf16>, vector<2x32xf32> -> vector<2x32xf32>
    %cst_49 = arith.constant dense<0.000000e+00> : vector<2x32xf32>
    %147 = tpu.matmul %144, %13, %cst_49 {dimension_numbers = #tpu.dot_dimension_numbers<[1], [0], [0], [1], [0, 0, 1, 1], [], []>} : vector<2x32xbf16>, vector<32x32xbf16>, vector<2x32xf32> -> vector<2x32xf32>
    %148 = arith.addf %145, %116 : vector<2x32xf32>
    %149 = arith.addf %148, %25 : vector<2x32xf32>
    %150 = arith.negf %149 : vector<2x32xf32>
    %151 = math.exp %150 : vector<2x32xf32>
    %cst_50 = arith.constant 1.000000e+00 : f32
    %152 = vector.broadcast %cst_50 : f32 to vector<2x32xf32>
    %153 = arith.addf %152, %151 : vector<2x32xf32>
    %154 = arith.divf %152, %153 : vector<2x32xf32>
    %155 = arith.addf %146, %117 : vector<2x32xf32>
    %156 = arith.addf %155, %28 : vector<2x32xf32>
    %157 = arith.negf %156 : vector<2x32xf32>
    %158 = math.exp %157 : vector<2x32xf32>
    %cst_51 = arith.constant 1.000000e+00 : f32
    %159 = vector.broadcast %cst_51 : f32 to vector<2x32xf32>
    %160 = arith.addf %159, %158 : vector<2x32xf32>
    %161 = arith.divf %159, %160 : vector<2x32xf32>
    %162 = arith.addf %147, %31 : vector<2x32xf32>
    %163 = arith.addf %118, %34 : vector<2x32xf32>
    %164 = arith.mulf %154, %163 : vector<2x32xf32>
    %165 = arith.addf %162, %164 : vector<2x32xf32>
    %166 = math.tanh %165 : vector<2x32xf32>
    %167 = arith.subf %113, %166 : vector<2x32xf32>
    %168 = arith.mulf %161, %167 : vector<2x32xf32>
    %169 = arith.addf %166, %168 : vector<2x32xf32>
    %170 = arith.truncf %143 : vector<2x32xf32> to vector<2x32xbf16>
    %171 = arith.truncf %169 : vector<2x32xf32> to vector<2x32xbf16>
    %cst_52 = arith.constant dense<0.000000e+00> : vector<2x32xf32>
    %172 = tpu.matmul %171, %15, %cst_52 {dimension_numbers = #tpu.dot_dimension_numbers<[1], [0], [0], [1], [0, 0, 1, 1], [], []>} : vector<2x32xbf16>, vector<32x32xbf16>, vector<2x32xf32> -> vector<2x32xf32>
    %cst_53 = arith.constant dense<0.000000e+00> : vector<2x32xf32>
    %173 = tpu.matmul %171, %17, %cst_53 {dimension_numbers = #tpu.dot_dimension_numbers<[1], [0], [0], [1], [0, 0, 1, 1], [], []>} : vector<2x32xbf16>, vector<32x32xbf16>, vector<2x32xf32> -> vector<2x32xf32>
    %cst_54 = arith.constant dense<0.000000e+00> : vector<2x32xf32>
    %174 = tpu.matmul %171, %19, %cst_54 {dimension_numbers = #tpu.dot_dimension_numbers<[1], [0], [0], [1], [0, 0, 1, 1], [], []>} : vector<2x32xbf16>, vector<32x32xbf16>, vector<2x32xf32> -> vector<2x32xf32>
    %cst_55 = arith.constant dense<0.000000e+00> : vector<2x32xf32>
    %175 = tpu.matmul %170, %3, %cst_55 {dimension_numbers = #tpu.dot_dimension_numbers<[1], [0], [0], [1], [0, 0, 1, 1], [], []>} : vector<2x32xbf16>, vector<32x32xbf16>, vector<2x32xf32> -> vector<2x32xf32>
    %cst_56 = arith.constant dense<0.000000e+00> : vector<2x32xf32>
    %176 = tpu.matmul %170, %5, %cst_56 {dimension_numbers = #tpu.dot_dimension_numbers<[1], [0], [0], [1], [0, 0, 1, 1], [], []>} : vector<2x32xbf16>, vector<32x32xbf16>, vector<2x32xf32> -> vector<2x32xf32>
    %cst_57 = arith.constant dense<0.000000e+00> : vector<2x32xf32>
    %177 = tpu.matmul %170, %7, %cst_57 {dimension_numbers = #tpu.dot_dimension_numbers<[1], [0], [0], [1], [0, 0, 1, 1], [], []>} : vector<2x32xbf16>, vector<32x32xbf16>, vector<2x32xf32> -> vector<2x32xf32>
    %178 = vector.extract_strided_slice %41 {offsets = [4, 0], sizes = [2, 32], strides = [1, 1]} : vector<16x32xf32> to vector<2x32xf32>
    %179 = arith.addf %178, %175 : vector<2x32xf32>
    %180 = arith.negf %179 : vector<2x32xf32>
    %181 = math.exp %180 : vector<2x32xf32>
    %cst_58 = arith.constant 1.000000e+00 : f32
    %182 = vector.broadcast %cst_58 : f32 to vector<2x32xf32>
    %183 = arith.addf %182, %181 : vector<2x32xf32>
    %184 = arith.divf %182, %183 : vector<2x32xf32>
    %185 = vector.extract_strided_slice %48 {offsets = [4, 0], sizes = [2, 32], strides = [1, 1]} : vector<16x32xf32> to vector<2x32xf32>
    %186 = arith.addf %185, %176 : vector<2x32xf32>
    %187 = arith.negf %186 : vector<2x32xf32>
    %188 = math.exp %187 : vector<2x32xf32>
    %cst_59 = arith.constant 1.000000e+00 : f32
    %189 = vector.broadcast %cst_59 : f32 to vector<2x32xf32>
    %190 = arith.addf %189, %188 : vector<2x32xf32>
    %191 = arith.divf %189, %190 : vector<2x32xf32>
    %192 = vector.extract_strided_slice %55 {offsets = [4, 0], sizes = [2, 32], strides = [1, 1]} : vector<16x32xf32> to vector<2x32xf32>
    %193 = arith.addf %177, %22 : vector<2x32xf32>
    %194 = arith.mulf %184, %193 : vector<2x32xf32>
    %195 = arith.addf %192, %194 : vector<2x32xf32>
    %196 = math.tanh %195 : vector<2x32xf32>
    %197 = arith.subf %143, %196 : vector<2x32xf32>
    %198 = arith.mulf %191, %197 : vector<2x32xf32>
    %199 = arith.addf %196, %198 : vector<2x32xf32>
    %200 = arith.truncf %199 : vector<2x32xf32> to vector<2x32xbf16>
    %cst_60 = arith.constant dense<0.000000e+00> : vector<2x32xf32>
    %201 = tpu.matmul %200, %9, %cst_60 {dimension_numbers = #tpu.dot_dimension_numbers<[1], [0], [0], [1], [0, 0, 1, 1], [], []>} : vector<2x32xbf16>, vector<32x32xbf16>, vector<2x32xf32> -> vector<2x32xf32>
    %cst_61 = arith.constant dense<0.000000e+00> : vector<2x32xf32>
    %202 = tpu.matmul %200, %11, %cst_61 {dimension_numbers = #tpu.dot_dimension_numbers<[1], [0], [0], [1], [0, 0, 1, 1], [], []>} : vector<2x32xbf16>, vector<32x32xbf16>, vector<2x32xf32> -> vector<2x32xf32>
    %cst_62 = arith.constant dense<0.000000e+00> : vector<2x32xf32>
    %203 = tpu.matmul %200, %13, %cst_62 {dimension_numbers = #tpu.dot_dimension_numbers<[1], [0], [0], [1], [0, 0, 1, 1], [], []>} : vector<2x32xbf16>, vector<32x32xbf16>, vector<2x32xf32> -> vector<2x32xf32>
    %204 = arith.addf %201, %172 : vector<2x32xf32>
    %205 = arith.addf %204, %25 : vector<2x32xf32>
    %206 = arith.negf %205 : vector<2x32xf32>
    %207 = math.exp %206 : vector<2x32xf32>
    %cst_63 = arith.constant 1.000000e+00 : f32
    %208 = vector.broadcast %cst_63 : f32 to vector<2x32xf32>
    %209 = arith.addf %208, %207 : vector<2x32xf32>
    %210 = arith.divf %208, %209 : vector<2x32xf32>
    %211 = arith.addf %202, %173 : vector<2x32xf32>
    %212 = arith.addf %211, %28 : vector<2x32xf32>
    %213 = arith.negf %212 : vector<2x32xf32>
    %214 = math.exp %213 : vector<2x32xf32>
    %cst_64 = arith.constant 1.000000e+00 : f32
    %215 = vector.broadcast %cst_64 : f32 to vector<2x32xf32>
    %216 = arith.addf %215, %214 : vector<2x32xf32>
    %217 = arith.divf %215, %216 : vector<2x32xf32>
    %218 = arith.addf %203, %31 : vector<2x32xf32>
    %219 = arith.addf %174, %34 : vector<2x32xf32>
    %220 = arith.mulf %210, %219 : vector<2x32xf32>
    %221 = arith.addf %218, %220 : vector<2x32xf32>
    %222 = math.tanh %221 : vector<2x32xf32>
    %223 = arith.subf %169, %222 : vector<2x32xf32>
    %224 = arith.mulf %217, %223 : vector<2x32xf32>
    %225 = arith.addf %222, %224 : vector<2x32xf32>
    %226 = arith.truncf %199 : vector<2x32xf32> to vector<2x32xbf16>
    %227 = arith.truncf %225 : vector<2x32xf32> to vector<2x32xbf16>
    %cst_65 = arith.constant dense<0.000000e+00> : vector<2x32xf32>
    %228 = tpu.matmul %227, %15, %cst_65 {dimension_numbers = #tpu.dot_dimension_numbers<[1], [0], [0], [1], [0, 0, 1, 1], [], []>} : vector<2x32xbf16>, vector<32x32xbf16>, vector<2x32xf32> -> vector<2x32xf32>
    %cst_66 = arith.constant dense<0.000000e+00> : vector<2x32xf32>
    %229 = tpu.matmul %227, %17, %cst_66 {dimension_numbers = #tpu.dot_dimension_numbers<[1], [0], [0], [1], [0, 0, 1, 1], [], []>} : vector<2x32xbf16>, vector<32x32xbf16>, vector<2x32xf32> -> vector<2x32xf32>
    %cst_67 = arith.constant dense<0.000000e+00> : vector<2x32xf32>
    %230 = tpu.matmul %227, %19, %cst_67 {dimension_numbers = #tpu.dot_dimension_numbers<[1], [0], [0], [1], [0, 0, 1, 1], [], []>} : vector<2x32xbf16>, vector<32x32xbf16>, vector<2x32xf32> -> vector<2x32xf32>
    %cst_68 = arith.constant dense<0.000000e+00> : vector<2x32xf32>
    %231 = tpu.matmul %226, %3, %cst_68 {dimension_numbers = #tpu.dot_dimension_numbers<[1], [0], [0], [1], [0, 0, 1, 1], [], []>} : vector<2x32xbf16>, vector<32x32xbf16>, vector<2x32xf32> -> vector<2x32xf32>
    %cst_69 = arith.constant dense<0.000000e+00> : vector<2x32xf32>
    %232 = tpu.matmul %226, %5, %cst_69 {dimension_numbers = #tpu.dot_dimension_numbers<[1], [0], [0], [1], [0, 0, 1, 1], [], []>} : vector<2x32xbf16>, vector<32x32xbf16>, vector<2x32xf32> -> vector<2x32xf32>
    %cst_70 = arith.constant dense<0.000000e+00> : vector<2x32xf32>
    %233 = tpu.matmul %226, %7, %cst_70 {dimension_numbers = #tpu.dot_dimension_numbers<[1], [0], [0], [1], [0, 0, 1, 1], [], []>} : vector<2x32xbf16>, vector<32x32xbf16>, vector<2x32xf32> -> vector<2x32xf32>
    %234 = vector.extract_strided_slice %41 {offsets = [6, 0], sizes = [2, 32], strides = [1, 1]} : vector<16x32xf32> to vector<2x32xf32>
    %235 = arith.addf %234, %231 : vector<2x32xf32>
    %236 = arith.negf %235 : vector<2x32xf32>
    %237 = math.exp %236 : vector<2x32xf32>
    %cst_71 = arith.constant 1.000000e+00 : f32
    %238 = vector.broadcast %cst_71 : f32 to vector<2x32xf32>
    %239 = arith.addf %238, %237 : vector<2x32xf32>
    %240 = arith.divf %238, %239 : vector<2x32xf32>
    %241 = vector.extract_strided_slice %48 {offsets = [6, 0], sizes = [2, 32], strides = [1, 1]} : vector<16x32xf32> to vector<2x32xf32>
    %242 = arith.addf %241, %232 : vector<2x32xf32>
    %243 = arith.negf %242 : vector<2x32xf32>
    %244 = math.exp %243 : vector<2x32xf32>
    %cst_72 = arith.constant 1.000000e+00 : f32
    %245 = vector.broadcast %cst_72 : f32 to vector<2x32xf32>
    %246 = arith.addf %245, %244 : vector<2x32xf32>
    %247 = arith.divf %245, %246 : vector<2x32xf32>
    %248 = vector.extract_strided_slice %55 {offsets = [6, 0], sizes = [2, 32], strides = [1, 1]} : vector<16x32xf32> to vector<2x32xf32>
    %249 = arith.addf %233, %22 : vector<2x32xf32>
    %250 = arith.mulf %240, %249 : vector<2x32xf32>
    %251 = arith.addf %248, %250 : vector<2x32xf32>
    %252 = math.tanh %251 : vector<2x32xf32>
    %253 = arith.subf %199, %252 : vector<2x32xf32>
    %254 = arith.mulf %247, %253 : vector<2x32xf32>
    %255 = arith.addf %252, %254 : vector<2x32xf32>
    %256 = arith.truncf %255 : vector<2x32xf32> to vector<2x32xbf16>
    %cst_73 = arith.constant dense<0.000000e+00> : vector<2x32xf32>
    %257 = tpu.matmul %256, %9, %cst_73 {dimension_numbers = #tpu.dot_dimension_numbers<[1], [0], [0], [1], [0, 0, 1, 1], [], []>} : vector<2x32xbf16>, vector<32x32xbf16>, vector<2x32xf32> -> vector<2x32xf32>
    %cst_74 = arith.constant dense<0.000000e+00> : vector<2x32xf32>
    %258 = tpu.matmul %256, %11, %cst_74 {dimension_numbers = #tpu.dot_dimension_numbers<[1], [0], [0], [1], [0, 0, 1, 1], [], []>} : vector<2x32xbf16>, vector<32x32xbf16>, vector<2x32xf32> -> vector<2x32xf32>
    %cst_75 = arith.constant dense<0.000000e+00> : vector<2x32xf32>
    %259 = tpu.matmul %256, %13, %cst_75 {dimension_numbers = #tpu.dot_dimension_numbers<[1], [0], [0], [1], [0, 0, 1, 1], [], []>} : vector<2x32xbf16>, vector<32x32xbf16>, vector<2x32xf32> -> vector<2x32xf32>
    %260 = arith.addf %257, %228 : vector<2x32xf32>
    %261 = arith.addf %260, %25 : vector<2x32xf32>
    %262 = arith.negf %261 : vector<2x32xf32>
    %263 = math.exp %262 : vector<2x32xf32>
    %cst_76 = arith.constant 1.000000e+00 : f32
    %264 = vector.broadcast %cst_76 : f32 to vector<2x32xf32>
    %265 = arith.addf %264, %263 : vector<2x32xf32>
    %266 = arith.divf %264, %265 : vector<2x32xf32>
    %267 = arith.addf %258, %229 : vector<2x32xf32>
    %268 = arith.addf %267, %28 : vector<2x32xf32>
    %269 = arith.negf %268 : vector<2x32xf32>
    %270 = math.exp %269 : vector<2x32xf32>
    %cst_77 = arith.constant 1.000000e+00 : f32
    %271 = vector.broadcast %cst_77 : f32 to vector<2x32xf32>
    %272 = arith.addf %271, %270 : vector<2x32xf32>
    %273 = arith.divf %271, %272 : vector<2x32xf32>
    %274 = arith.addf %259, %31 : vector<2x32xf32>
    %275 = arith.addf %230, %34 : vector<2x32xf32>
    %276 = arith.mulf %266, %275 : vector<2x32xf32>
    %277 = arith.addf %274, %276 : vector<2x32xf32>
    %278 = math.tanh %277 : vector<2x32xf32>
    %279 = arith.subf %225, %278 : vector<2x32xf32>
    %280 = arith.mulf %273, %279 : vector<2x32xf32>
    %281 = arith.addf %278, %280 : vector<2x32xf32>
    %282 = arith.truncf %255 : vector<2x32xf32> to vector<2x32xbf16>
    %283 = arith.truncf %281 : vector<2x32xf32> to vector<2x32xbf16>
    %cst_78 = arith.constant dense<0.000000e+00> : vector<2x32xf32>
    %284 = tpu.matmul %283, %15, %cst_78 {dimension_numbers = #tpu.dot_dimension_numbers<[1], [0], [0], [1], [0, 0, 1, 1], [], []>} : vector<2x32xbf16>, vector<32x32xbf16>, vector<2x32xf32> -> vector<2x32xf32>
    %cst_79 = arith.constant dense<0.000000e+00> : vector<2x32xf32>
    %285 = tpu.matmul %283, %17, %cst_79 {dimension_numbers = #tpu.dot_dimension_numbers<[1], [0], [0], [1], [0, 0, 1, 1], [], []>} : vector<2x32xbf16>, vector<32x32xbf16>, vector<2x32xf32> -> vector<2x32xf32>
    %cst_80 = arith.constant dense<0.000000e+00> : vector<2x32xf32>
    %286 = tpu.matmul %283, %19, %cst_80 {dimension_numbers = #tpu.dot_dimension_numbers<[1], [0], [0], [1], [0, 0, 1, 1], [], []>} : vector<2x32xbf16>, vector<32x32xbf16>, vector<2x32xf32> -> vector<2x32xf32>
    %cst_81 = arith.constant dense<0.000000e+00> : vector<2x32xf32>
    %287 = tpu.matmul %282, %3, %cst_81 {dimension_numbers = #tpu.dot_dimension_numbers<[1], [0], [0], [1], [0, 0, 1, 1], [], []>} : vector<2x32xbf16>, vector<32x32xbf16>, vector<2x32xf32> -> vector<2x32xf32>
    %cst_82 = arith.constant dense<0.000000e+00> : vector<2x32xf32>
    %288 = tpu.matmul %282, %5, %cst_82 {dimension_numbers = #tpu.dot_dimension_numbers<[1], [0], [0], [1], [0, 0, 1, 1], [], []>} : vector<2x32xbf16>, vector<32x32xbf16>, vector<2x32xf32> -> vector<2x32xf32>
    %cst_83 = arith.constant dense<0.000000e+00> : vector<2x32xf32>
    %289 = tpu.matmul %282, %7, %cst_83 {dimension_numbers = #tpu.dot_dimension_numbers<[1], [0], [0], [1], [0, 0, 1, 1], [], []>} : vector<2x32xbf16>, vector<32x32xbf16>, vector<2x32xf32> -> vector<2x32xf32>
    %290 = vector.extract_strided_slice %41 {offsets = [8, 0], sizes = [2, 32], strides = [1, 1]} : vector<16x32xf32> to vector<2x32xf32>
    %291 = arith.addf %290, %287 : vector<2x32xf32>
    %292 = arith.negf %291 : vector<2x32xf32>
    %293 = math.exp %292 : vector<2x32xf32>
    %cst_84 = arith.constant 1.000000e+00 : f32
    %294 = vector.broadcast %cst_84 : f32 to vector<2x32xf32>
    %295 = arith.addf %294, %293 : vector<2x32xf32>
    %296 = arith.divf %294, %295 : vector<2x32xf32>
    %297 = vector.extract_strided_slice %48 {offsets = [8, 0], sizes = [2, 32], strides = [1, 1]} : vector<16x32xf32> to vector<2x32xf32>
    %298 = arith.addf %297, %288 : vector<2x32xf32>
    %299 = arith.negf %298 : vector<2x32xf32>
    %300 = math.exp %299 : vector<2x32xf32>
    %cst_85 = arith.constant 1.000000e+00 : f32
    %301 = vector.broadcast %cst_85 : f32 to vector<2x32xf32>
    %302 = arith.addf %301, %300 : vector<2x32xf32>
    %303 = arith.divf %301, %302 : vector<2x32xf32>
    %304 = vector.extract_strided_slice %55 {offsets = [8, 0], sizes = [2, 32], strides = [1, 1]} : vector<16x32xf32> to vector<2x32xf32>
    %305 = arith.addf %289, %22 : vector<2x32xf32>
    %306 = arith.mulf %296, %305 : vector<2x32xf32>
    %307 = arith.addf %304, %306 : vector<2x32xf32>
    %308 = math.tanh %307 : vector<2x32xf32>
    %309 = arith.subf %255, %308 : vector<2x32xf32>
    %310 = arith.mulf %303, %309 : vector<2x32xf32>
    %311 = arith.addf %308, %310 : vector<2x32xf32>
    %312 = arith.truncf %311 : vector<2x32xf32> to vector<2x32xbf16>
    %cst_86 = arith.constant dense<0.000000e+00> : vector<2x32xf32>
    %313 = tpu.matmul %312, %9, %cst_86 {dimension_numbers = #tpu.dot_dimension_numbers<[1], [0], [0], [1], [0, 0, 1, 1], [], []>} : vector<2x32xbf16>, vector<32x32xbf16>, vector<2x32xf32> -> vector<2x32xf32>
    %cst_87 = arith.constant dense<0.000000e+00> : vector<2x32xf32>
    %314 = tpu.matmul %312, %11, %cst_87 {dimension_numbers = #tpu.dot_dimension_numbers<[1], [0], [0], [1], [0, 0, 1, 1], [], []>} : vector<2x32xbf16>, vector<32x32xbf16>, vector<2x32xf32> -> vector<2x32xf32>
    %cst_88 = arith.constant dense<0.000000e+00> : vector<2x32xf32>
    %315 = tpu.matmul %312, %13, %cst_88 {dimension_numbers = #tpu.dot_dimension_numbers<[1], [0], [0], [1], [0, 0, 1, 1], [], []>} : vector<2x32xbf16>, vector<32x32xbf16>, vector<2x32xf32> -> vector<2x32xf32>
    %316 = arith.addf %313, %284 : vector<2x32xf32>
    %317 = arith.addf %316, %25 : vector<2x32xf32>
    %318 = arith.negf %317 : vector<2x32xf32>
    %319 = math.exp %318 : vector<2x32xf32>
    %cst_89 = arith.constant 1.000000e+00 : f32
    %320 = vector.broadcast %cst_89 : f32 to vector<2x32xf32>
    %321 = arith.addf %320, %319 : vector<2x32xf32>
    %322 = arith.divf %320, %321 : vector<2x32xf32>
    %323 = arith.addf %314, %285 : vector<2x32xf32>
    %324 = arith.addf %323, %28 : vector<2x32xf32>
    %325 = arith.negf %324 : vector<2x32xf32>
    %326 = math.exp %325 : vector<2x32xf32>
    %cst_90 = arith.constant 1.000000e+00 : f32
    %327 = vector.broadcast %cst_90 : f32 to vector<2x32xf32>
    %328 = arith.addf %327, %326 : vector<2x32xf32>
    %329 = arith.divf %327, %328 : vector<2x32xf32>
    %330 = arith.addf %315, %31 : vector<2x32xf32>
    %331 = arith.addf %286, %34 : vector<2x32xf32>
    %332 = arith.mulf %322, %331 : vector<2x32xf32>
    %333 = arith.addf %330, %332 : vector<2x32xf32>
    %334 = math.tanh %333 : vector<2x32xf32>
    %335 = arith.subf %281, %334 : vector<2x32xf32>
    %336 = arith.mulf %329, %335 : vector<2x32xf32>
    %337 = arith.addf %334, %336 : vector<2x32xf32>
    %338 = arith.truncf %311 : vector<2x32xf32> to vector<2x32xbf16>
    %339 = arith.truncf %337 : vector<2x32xf32> to vector<2x32xbf16>
    %cst_91 = arith.constant dense<0.000000e+00> : vector<2x32xf32>
    %340 = tpu.matmul %339, %15, %cst_91 {dimension_numbers = #tpu.dot_dimension_numbers<[1], [0], [0], [1], [0, 0, 1, 1], [], []>} : vector<2x32xbf16>, vector<32x32xbf16>, vector<2x32xf32> -> vector<2x32xf32>
    %cst_92 = arith.constant dense<0.000000e+00> : vector<2x32xf32>
    %341 = tpu.matmul %339, %17, %cst_92 {dimension_numbers = #tpu.dot_dimension_numbers<[1], [0], [0], [1], [0, 0, 1, 1], [], []>} : vector<2x32xbf16>, vector<32x32xbf16>, vector<2x32xf32> -> vector<2x32xf32>
    %cst_93 = arith.constant dense<0.000000e+00> : vector<2x32xf32>
    %342 = tpu.matmul %339, %19, %cst_93 {dimension_numbers = #tpu.dot_dimension_numbers<[1], [0], [0], [1], [0, 0, 1, 1], [], []>} : vector<2x32xbf16>, vector<32x32xbf16>, vector<2x32xf32> -> vector<2x32xf32>
    %cst_94 = arith.constant dense<0.000000e+00> : vector<2x32xf32>
    %343 = tpu.matmul %338, %3, %cst_94 {dimension_numbers = #tpu.dot_dimension_numbers<[1], [0], [0], [1], [0, 0, 1, 1], [], []>} : vector<2x32xbf16>, vector<32x32xbf16>, vector<2x32xf32> -> vector<2x32xf32>
    %cst_95 = arith.constant dense<0.000000e+00> : vector<2x32xf32>
    %344 = tpu.matmul %338, %5, %cst_95 {dimension_numbers = #tpu.dot_dimension_numbers<[1], [0], [0], [1], [0, 0, 1, 1], [], []>} : vector<2x32xbf16>, vector<32x32xbf16>, vector<2x32xf32> -> vector<2x32xf32>
    %cst_96 = arith.constant dense<0.000000e+00> : vector<2x32xf32>
    %345 = tpu.matmul %338, %7, %cst_96 {dimension_numbers = #tpu.dot_dimension_numbers<[1], [0], [0], [1], [0, 0, 1, 1], [], []>} : vector<2x32xbf16>, vector<32x32xbf16>, vector<2x32xf32> -> vector<2x32xf32>
    %346 = vector.extract_strided_slice %41 {offsets = [10, 0], sizes = [2, 32], strides = [1, 1]} : vector<16x32xf32> to vector<2x32xf32>
    %347 = arith.addf %346, %343 : vector<2x32xf32>
    %348 = arith.negf %347 : vector<2x32xf32>
    %349 = math.exp %348 : vector<2x32xf32>
    %cst_97 = arith.constant 1.000000e+00 : f32
    %350 = vector.broadcast %cst_97 : f32 to vector<2x32xf32>
    %351 = arith.addf %350, %349 : vector<2x32xf32>
    %352 = arith.divf %350, %351 : vector<2x32xf32>
    %353 = vector.extract_strided_slice %48 {offsets = [10, 0], sizes = [2, 32], strides = [1, 1]} : vector<16x32xf32> to vector<2x32xf32>
    %354 = arith.addf %353, %344 : vector<2x32xf32>
    %355 = arith.negf %354 : vector<2x32xf32>
    %356 = math.exp %355 : vector<2x32xf32>
    %cst_98 = arith.constant 1.000000e+00 : f32
    %357 = vector.broadcast %cst_98 : f32 to vector<2x32xf32>
    %358 = arith.addf %357, %356 : vector<2x32xf32>
    %359 = arith.divf %357, %358 : vector<2x32xf32>
    %360 = vector.extract_strided_slice %55 {offsets = [10, 0], sizes = [2, 32], strides = [1, 1]} : vector<16x32xf32> to vector<2x32xf32>
    %361 = arith.addf %345, %22 : vector<2x32xf32>
    %362 = arith.mulf %352, %361 : vector<2x32xf32>
    %363 = arith.addf %360, %362 : vector<2x32xf32>
    %364 = math.tanh %363 : vector<2x32xf32>
    %365 = arith.subf %311, %364 : vector<2x32xf32>
    %366 = arith.mulf %359, %365 : vector<2x32xf32>
    %367 = arith.addf %364, %366 : vector<2x32xf32>
    %368 = arith.truncf %367 : vector<2x32xf32> to vector<2x32xbf16>
    %cst_99 = arith.constant dense<0.000000e+00> : vector<2x32xf32>
    %369 = tpu.matmul %368, %9, %cst_99 {dimension_numbers = #tpu.dot_dimension_numbers<[1], [0], [0], [1], [0, 0, 1, 1], [], []>} : vector<2x32xbf16>, vector<32x32xbf16>, vector<2x32xf32> -> vector<2x32xf32>
    %cst_100 = arith.constant dense<0.000000e+00> : vector<2x32xf32>
    %370 = tpu.matmul %368, %11, %cst_100 {dimension_numbers = #tpu.dot_dimension_numbers<[1], [0], [0], [1], [0, 0, 1, 1], [], []>} : vector<2x32xbf16>, vector<32x32xbf16>, vector<2x32xf32> -> vector<2x32xf32>
    %cst_101 = arith.constant dense<0.000000e+00> : vector<2x32xf32>
    %371 = tpu.matmul %368, %13, %cst_101 {dimension_numbers = #tpu.dot_dimension_numbers<[1], [0], [0], [1], [0, 0, 1, 1], [], []>} : vector<2x32xbf16>, vector<32x32xbf16>, vector<2x32xf32> -> vector<2x32xf32>
    %372 = arith.addf %369, %340 : vector<2x32xf32>
    %373 = arith.addf %372, %25 : vector<2x32xf32>
    %374 = arith.negf %373 : vector<2x32xf32>
    %375 = math.exp %374 : vector<2x32xf32>
    %cst_102 = arith.constant 1.000000e+00 : f32
    %376 = vector.broadcast %cst_102 : f32 to vector<2x32xf32>
    %377 = arith.addf %376, %375 : vector<2x32xf32>
    %378 = arith.divf %376, %377 : vector<2x32xf32>
    %379 = arith.addf %370, %341 : vector<2x32xf32>
    %380 = arith.addf %379, %28 : vector<2x32xf32>
    %381 = arith.negf %380 : vector<2x32xf32>
    %382 = math.exp %381 : vector<2x32xf32>
    %cst_103 = arith.constant 1.000000e+00 : f32
    %383 = vector.broadcast %cst_103 : f32 to vector<2x32xf32>
    %384 = arith.addf %383, %382 : vector<2x32xf32>
    %385 = arith.divf %383, %384 : vector<2x32xf32>
    %386 = arith.addf %371, %31 : vector<2x32xf32>
    %387 = arith.addf %342, %34 : vector<2x32xf32>
    %388 = arith.mulf %378, %387 : vector<2x32xf32>
    %389 = arith.addf %386, %388 : vector<2x32xf32>
    %390 = math.tanh %389 : vector<2x32xf32>
    %391 = arith.subf %337, %390 : vector<2x32xf32>
    %392 = arith.mulf %385, %391 : vector<2x32xf32>
    %393 = arith.addf %390, %392 : vector<2x32xf32>
    %394 = arith.truncf %367 : vector<2x32xf32> to vector<2x32xbf16>
    %395 = arith.truncf %393 : vector<2x32xf32> to vector<2x32xbf16>
    %cst_104 = arith.constant dense<0.000000e+00> : vector<2x32xf32>
    %396 = tpu.matmul %395, %15, %cst_104 {dimension_numbers = #tpu.dot_dimension_numbers<[1], [0], [0], [1], [0, 0, 1, 1], [], []>} : vector<2x32xbf16>, vector<32x32xbf16>, vector<2x32xf32> -> vector<2x32xf32>
    %cst_105 = arith.constant dense<0.000000e+00> : vector<2x32xf32>
    %397 = tpu.matmul %395, %17, %cst_105 {dimension_numbers = #tpu.dot_dimension_numbers<[1], [0], [0], [1], [0, 0, 1, 1], [], []>} : vector<2x32xbf16>, vector<32x32xbf16>, vector<2x32xf32> -> vector<2x32xf32>
    %cst_106 = arith.constant dense<0.000000e+00> : vector<2x32xf32>
    %398 = tpu.matmul %395, %19, %cst_106 {dimension_numbers = #tpu.dot_dimension_numbers<[1], [0], [0], [1], [0, 0, 1, 1], [], []>} : vector<2x32xbf16>, vector<32x32xbf16>, vector<2x32xf32> -> vector<2x32xf32>
    %cst_107 = arith.constant dense<0.000000e+00> : vector<2x32xf32>
    %399 = tpu.matmul %394, %3, %cst_107 {dimension_numbers = #tpu.dot_dimension_numbers<[1], [0], [0], [1], [0, 0, 1, 1], [], []>} : vector<2x32xbf16>, vector<32x32xbf16>, vector<2x32xf32> -> vector<2x32xf32>
    %cst_108 = arith.constant dense<0.000000e+00> : vector<2x32xf32>
    %400 = tpu.matmul %394, %5, %cst_108 {dimension_numbers = #tpu.dot_dimension_numbers<[1], [0], [0], [1], [0, 0, 1, 1], [], []>} : vector<2x32xbf16>, vector<32x32xbf16>, vector<2x32xf32> -> vector<2x32xf32>
    %cst_109 = arith.constant dense<0.000000e+00> : vector<2x32xf32>
    %401 = tpu.matmul %394, %7, %cst_109 {dimension_numbers = #tpu.dot_dimension_numbers<[1], [0], [0], [1], [0, 0, 1, 1], [], []>} : vector<2x32xbf16>, vector<32x32xbf16>, vector<2x32xf32> -> vector<2x32xf32>
    %402 = vector.extract_strided_slice %41 {offsets = [12, 0], sizes = [2, 32], strides = [1, 1]} : vector<16x32xf32> to vector<2x32xf32>
    %403 = arith.addf %402, %399 : vector<2x32xf32>
    %404 = arith.negf %403 : vector<2x32xf32>
    %405 = math.exp %404 : vector<2x32xf32>
    %cst_110 = arith.constant 1.000000e+00 : f32
    %406 = vector.broadcast %cst_110 : f32 to vector<2x32xf32>
    %407 = arith.addf %406, %405 : vector<2x32xf32>
    %408 = arith.divf %406, %407 : vector<2x32xf32>
    %409 = vector.extract_strided_slice %48 {offsets = [12, 0], sizes = [2, 32], strides = [1, 1]} : vector<16x32xf32> to vector<2x32xf32>
    %410 = arith.addf %409, %400 : vector<2x32xf32>
    %411 = arith.negf %410 : vector<2x32xf32>
    %412 = math.exp %411 : vector<2x32xf32>
    %cst_111 = arith.constant 1.000000e+00 : f32
    %413 = vector.broadcast %cst_111 : f32 to vector<2x32xf32>
    %414 = arith.addf %413, %412 : vector<2x32xf32>
    %415 = arith.divf %413, %414 : vector<2x32xf32>
    %416 = vector.extract_strided_slice %55 {offsets = [12, 0], sizes = [2, 32], strides = [1, 1]} : vector<16x32xf32> to vector<2x32xf32>
    %417 = arith.addf %401, %22 : vector<2x32xf32>
    %418 = arith.mulf %408, %417 : vector<2x32xf32>
    %419 = arith.addf %416, %418 : vector<2x32xf32>
    %420 = math.tanh %419 : vector<2x32xf32>
    %421 = arith.subf %367, %420 : vector<2x32xf32>
    %422 = arith.mulf %415, %421 : vector<2x32xf32>
    %423 = arith.addf %420, %422 : vector<2x32xf32>
    %424 = arith.truncf %423 : vector<2x32xf32> to vector<2x32xbf16>
    %cst_112 = arith.constant dense<0.000000e+00> : vector<2x32xf32>
    %425 = tpu.matmul %424, %9, %cst_112 {dimension_numbers = #tpu.dot_dimension_numbers<[1], [0], [0], [1], [0, 0, 1, 1], [], []>} : vector<2x32xbf16>, vector<32x32xbf16>, vector<2x32xf32> -> vector<2x32xf32>
    %cst_113 = arith.constant dense<0.000000e+00> : vector<2x32xf32>
    %426 = tpu.matmul %424, %11, %cst_113 {dimension_numbers = #tpu.dot_dimension_numbers<[1], [0], [0], [1], [0, 0, 1, 1], [], []>} : vector<2x32xbf16>, vector<32x32xbf16>, vector<2x32xf32> -> vector<2x32xf32>
    %cst_114 = arith.constant dense<0.000000e+00> : vector<2x32xf32>
    %427 = tpu.matmul %424, %13, %cst_114 {dimension_numbers = #tpu.dot_dimension_numbers<[1], [0], [0], [1], [0, 0, 1, 1], [], []>} : vector<2x32xbf16>, vector<32x32xbf16>, vector<2x32xf32> -> vector<2x32xf32>
    %428 = arith.addf %425, %396 : vector<2x32xf32>
    %429 = arith.addf %428, %25 : vector<2x32xf32>
    %430 = arith.negf %429 : vector<2x32xf32>
    %431 = math.exp %430 : vector<2x32xf32>
    %cst_115 = arith.constant 1.000000e+00 : f32
    %432 = vector.broadcast %cst_115 : f32 to vector<2x32xf32>
    %433 = arith.addf %432, %431 : vector<2x32xf32>
    %434 = arith.divf %432, %433 : vector<2x32xf32>
    %435 = arith.addf %426, %397 : vector<2x32xf32>
    %436 = arith.addf %435, %28 : vector<2x32xf32>
    %437 = arith.negf %436 : vector<2x32xf32>
    %438 = math.exp %437 : vector<2x32xf32>
    %cst_116 = arith.constant 1.000000e+00 : f32
    %439 = vector.broadcast %cst_116 : f32 to vector<2x32xf32>
    %440 = arith.addf %439, %438 : vector<2x32xf32>
    %441 = arith.divf %439, %440 : vector<2x32xf32>
    %442 = arith.addf %427, %31 : vector<2x32xf32>
    %443 = arith.addf %398, %34 : vector<2x32xf32>
    %444 = arith.mulf %434, %443 : vector<2x32xf32>
    %445 = arith.addf %442, %444 : vector<2x32xf32>
    %446 = math.tanh %445 : vector<2x32xf32>
    %447 = arith.subf %393, %446 : vector<2x32xf32>
    %448 = arith.mulf %441, %447 : vector<2x32xf32>
    %449 = arith.addf %446, %448 : vector<2x32xf32>
    %450 = arith.truncf %423 : vector<2x32xf32> to vector<2x32xbf16>
    %451 = arith.truncf %449 : vector<2x32xf32> to vector<2x32xbf16>
    %cst_117 = arith.constant dense<0.000000e+00> : vector<2x32xf32>
    %452 = tpu.matmul %451, %15, %cst_117 {dimension_numbers = #tpu.dot_dimension_numbers<[1], [0], [0], [1], [0, 0, 1, 1], [], []>} : vector<2x32xbf16>, vector<32x32xbf16>, vector<2x32xf32> -> vector<2x32xf32>
    %cst_118 = arith.constant dense<0.000000e+00> : vector<2x32xf32>
    %453 = tpu.matmul %451, %17, %cst_118 {dimension_numbers = #tpu.dot_dimension_numbers<[1], [0], [0], [1], [0, 0, 1, 1], [], []>} : vector<2x32xbf16>, vector<32x32xbf16>, vector<2x32xf32> -> vector<2x32xf32>
    %cst_119 = arith.constant dense<0.000000e+00> : vector<2x32xf32>
    %454 = tpu.matmul %451, %19, %cst_119 {dimension_numbers = #tpu.dot_dimension_numbers<[1], [0], [0], [1], [0, 0, 1, 1], [], []>} : vector<2x32xbf16>, vector<32x32xbf16>, vector<2x32xf32> -> vector<2x32xf32>
    %cst_120 = arith.constant dense<0.000000e+00> : vector<2x32xf32>
    %455 = tpu.matmul %450, %3, %cst_120 {dimension_numbers = #tpu.dot_dimension_numbers<[1], [0], [0], [1], [0, 0, 1, 1], [], []>} : vector<2x32xbf16>, vector<32x32xbf16>, vector<2x32xf32> -> vector<2x32xf32>
    %cst_121 = arith.constant dense<0.000000e+00> : vector<2x32xf32>
    %456 = tpu.matmul %450, %5, %cst_121 {dimension_numbers = #tpu.dot_dimension_numbers<[1], [0], [0], [1], [0, 0, 1, 1], [], []>} : vector<2x32xbf16>, vector<32x32xbf16>, vector<2x32xf32> -> vector<2x32xf32>
    %cst_122 = arith.constant dense<0.000000e+00> : vector<2x32xf32>
    %457 = tpu.matmul %450, %7, %cst_122 {dimension_numbers = #tpu.dot_dimension_numbers<[1], [0], [0], [1], [0, 0, 1, 1], [], []>} : vector<2x32xbf16>, vector<32x32xbf16>, vector<2x32xf32> -> vector<2x32xf32>
    %458 = vector.extract_strided_slice %41 {offsets = [14, 0], sizes = [2, 32], strides = [1, 1]} : vector<16x32xf32> to vector<2x32xf32>
    %459 = arith.addf %458, %455 : vector<2x32xf32>
    %460 = arith.negf %459 : vector<2x32xf32>
    %461 = math.exp %460 : vector<2x32xf32>
    %cst_123 = arith.constant 1.000000e+00 : f32
    %462 = vector.broadcast %cst_123 : f32 to vector<2x32xf32>
    %463 = arith.addf %462, %461 : vector<2x32xf32>
    %464 = arith.divf %462, %463 : vector<2x32xf32>
    %465 = vector.extract_strided_slice %48 {offsets = [14, 0], sizes = [2, 32], strides = [1, 1]} : vector<16x32xf32> to vector<2x32xf32>
    %466 = arith.addf %465, %456 : vector<2x32xf32>
    %467 = arith.negf %466 : vector<2x32xf32>
    %468 = math.exp %467 : vector<2x32xf32>
    %cst_124 = arith.constant 1.000000e+00 : f32
    %469 = vector.broadcast %cst_124 : f32 to vector<2x32xf32>
    %470 = arith.addf %469, %468 : vector<2x32xf32>
    %471 = arith.divf %469, %470 : vector<2x32xf32>
    %472 = vector.extract_strided_slice %55 {offsets = [14, 0], sizes = [2, 32], strides = [1, 1]} : vector<16x32xf32> to vector<2x32xf32>
    %473 = arith.addf %457, %22 : vector<2x32xf32>
    %474 = arith.mulf %464, %473 : vector<2x32xf32>
    %475 = arith.addf %472, %474 : vector<2x32xf32>
    %476 = math.tanh %475 : vector<2x32xf32>
    %477 = arith.subf %423, %476 : vector<2x32xf32>
    %478 = arith.mulf %471, %477 : vector<2x32xf32>
    %479 = arith.addf %476, %478 : vector<2x32xf32>
    %480 = arith.truncf %479 : vector<2x32xf32> to vector<2x32xbf16>
    %cst_125 = arith.constant dense<0.000000e+00> : vector<2x32xf32>
    %481 = tpu.matmul %480, %9, %cst_125 {dimension_numbers = #tpu.dot_dimension_numbers<[1], [0], [0], [1], [0, 0, 1, 1], [], []>} : vector<2x32xbf16>, vector<32x32xbf16>, vector<2x32xf32> -> vector<2x32xf32>
    %cst_126 = arith.constant dense<0.000000e+00> : vector<2x32xf32>
    %482 = tpu.matmul %480, %11, %cst_126 {dimension_numbers = #tpu.dot_dimension_numbers<[1], [0], [0], [1], [0, 0, 1, 1], [], []>} : vector<2x32xbf16>, vector<32x32xbf16>, vector<2x32xf32> -> vector<2x32xf32>
    %cst_127 = arith.constant dense<0.000000e+00> : vector<2x32xf32>
    %483 = tpu.matmul %480, %13, %cst_127 {dimension_numbers = #tpu.dot_dimension_numbers<[1], [0], [0], [1], [0, 0, 1, 1], [], []>} : vector<2x32xbf16>, vector<32x32xbf16>, vector<2x32xf32> -> vector<2x32xf32>
    %484 = arith.addf %481, %452 : vector<2x32xf32>
    %485 = arith.addf %484, %25 : vector<2x32xf32>
    %486 = arith.negf %485 : vector<2x32xf32>
    %487 = math.exp %486 : vector<2x32xf32>
    %cst_128 = arith.constant 1.000000e+00 : f32
    %488 = vector.broadcast %cst_128 : f32 to vector<2x32xf32>
    %489 = arith.addf %488, %487 : vector<2x32xf32>
    %490 = arith.divf %488, %489 : vector<2x32xf32>
    %491 = arith.addf %482, %453 : vector<2x32xf32>
    %492 = arith.addf %491, %28 : vector<2x32xf32>
    %493 = arith.negf %492 : vector<2x32xf32>
    %494 = math.exp %493 : vector<2x32xf32>
    %cst_129 = arith.constant 1.000000e+00 : f32
    %495 = vector.broadcast %cst_129 : f32 to vector<2x32xf32>
    %496 = arith.addf %495, %494 : vector<2x32xf32>
    %497 = arith.divf %495, %496 : vector<2x32xf32>
    %498 = arith.addf %483, %31 : vector<2x32xf32>
    %499 = arith.addf %454, %34 : vector<2x32xf32>
    %500 = arith.mulf %490, %499 : vector<2x32xf32>
    %501 = arith.addf %498, %500 : vector<2x32xf32>
    %502 = math.tanh %501 : vector<2x32xf32>
    %503 = arith.subf %449, %502 : vector<2x32xf32>
    %504 = arith.mulf %497, %503 : vector<2x32xf32>
    %505 = arith.addf %502, %504 : vector<2x32xf32>
    %c448 = arith.constant 448 : index
    %c0_130 = arith.constant 0 : index
    %506 = vector.load %arg0[%c448, %c0_130] : memref<640x64xf32, #tpu.memory_space<vmem>>, vector<32x64xf32>
    %507 = arith.truncf %506 : vector<32x64xf32> to vector<32x64xbf16>
    %508 = arith.truncf %479 : vector<2x32xf32> to vector<2x32xbf16>
    %cst_131 = arith.constant dense<0.000000e+00> : vector<2x64xf32>
    %509 = tpu.matmul %508, %507, %cst_131 {dimension_numbers = #tpu.dot_dimension_numbers<[1], [0], [0], [1], [0, 0, 1, 1], [], []>} : vector<2x32xbf16>, vector<32x64xbf16>, vector<2x64xf32> -> vector<2x64xf32>
    %c480 = arith.constant 480 : index
    %c0_132 = arith.constant 0 : index
    %510 = vector.load %arg0[%c480, %c0_132] : memref<640x64xf32, #tpu.memory_space<vmem>>, vector<32x64xf32>
    %511 = arith.truncf %510 : vector<32x64xf32> to vector<32x64xbf16>
    %512 = arith.truncf %505 : vector<2x32xf32> to vector<2x32xbf16>
    %cst_133 = arith.constant dense<0.000000e+00> : vector<2x64xf32>
    %513 = tpu.matmul %512, %511, %cst_133 {dimension_numbers = #tpu.dot_dimension_numbers<[1], [0], [0], [1], [0, 0, 1, 1], [], []>} : vector<2x32xbf16>, vector<32x64xbf16>, vector<2x64xf32> -> vector<2x64xf32>
    %514 = arith.addf %509, %513 : vector<2x64xf32>
    %c512 = arith.constant 512 : index
    %c0_134 = arith.constant 0 : index
    %515 = vector.load %arg0[%c512, %c0_134] : memref<640x64xf32, #tpu.memory_space<vmem>>, vector<1x64xf32>
    %516 = vector.broadcast %515 : vector<1x64xf32> to vector<2x64xf32>
    %517 = arith.addf %514, %516 : vector<2x64xf32>
    %cst_135 = arith.constant 0.000000e+00 : f32
    %518 = vector.broadcast %cst_135 : f32 to vector<2x64xf32>
    %519 = arith.maximumf %517, %518 : vector<2x64xf32>
    %c520 = arith.constant 520 : index
    %c0_136 = arith.constant 0 : index
    %520 = vector.load %arg0[%c520, %c0_136] : memref<640x64xf32, #tpu.memory_space<vmem>>, vector<64x16xf32>
    %521 = arith.truncf %520 : vector<64x16xf32> to vector<64x16xbf16>
    %522 = arith.truncf %519 : vector<2x64xf32> to vector<2x64xbf16>
    %cst_137 = arith.constant dense<0.000000e+00> : vector<2x16xf32>
    %523 = tpu.matmul %522, %521, %cst_137 {dimension_numbers = #tpu.dot_dimension_numbers<[1], [0], [0], [1], [0, 0, 1, 1], [], []>} : vector<2x64xbf16>, vector<64x16xbf16>, vector<2x16xf32> -> vector<2x16xf32>
    %c584 = arith.constant 584 : index
    %c0_138 = arith.constant 0 : index
    %524 = vector.load %arg0[%c584, %c0_138] : memref<640x64xf32, #tpu.memory_space<vmem>>, vector<1x16xf32>
    %525 = vector.broadcast %524 : vector<1x16xf32> to vector<2x16xf32>
    %526 = arith.addf %523, %525 : vector<2x16xf32>
    %c592 = arith.constant 592 : index
    %c0_139 = arith.constant 0 : index
    %527 = vector.load %arg0[%c592, %c0_139] : memref<640x64xf32, #tpu.memory_space<vmem>>, vector<16x16xf32>
    %528 = arith.truncf %527 : vector<16x16xf32> to vector<16x16xbf16>
    %529 = arith.truncf %526 : vector<2x16xf32> to vector<2x16xbf16>
    %cst_140 = arith.constant dense<0.000000e+00> : vector<2x16xf32>
    %530 = tpu.matmul %529, %528, %cst_140 {dimension_numbers = #tpu.dot_dimension_numbers<[1], [0], [0], [1], [0, 0, 1, 1], [], []>} : vector<2x16xbf16>, vector<16x16xbf16>, vector<2x16xf32> -> vector<2x16xf32>
    %c608 = arith.constant 608 : index
    %c0_141 = arith.constant 0 : index
    %531 = vector.load %arg0[%c608, %c0_141] : memref<640x64xf32, #tpu.memory_space<vmem>>, vector<1x16xf32>
    %532 = vector.broadcast %531 : vector<1x16xf32> to vector<2x16xf32>
    %533 = arith.addf %530, %532 : vector<2x16xf32>
    %c616 = arith.constant 616 : index
    %c0_142 = arith.constant 0 : index
    %534 = vector.load %arg0[%c616, %c0_142] : memref<640x64xf32, #tpu.memory_space<vmem>>, vector<16x16xf32>
    %535 = arith.truncf %534 : vector<16x16xf32> to vector<16x16xbf16>
    %536 = arith.truncf %526 : vector<2x16xf32> to vector<2x16xbf16>
    %cst_143 = arith.constant dense<0.000000e+00> : vector<2x16xf32>
    %537 = tpu.matmul %536, %535, %cst_143 {dimension_numbers = #tpu.dot_dimension_numbers<[1], [0], [0], [1], [0, 0, 1, 1], [], []>} : vector<2x16xbf16>, vector<16x16xbf16>, vector<2x16xf32> -> vector<2x16xf32>
    %c632 = arith.constant 632 : index
    %c0_144 = arith.constant 0 : index
    %538 = vector.load %arg0[%c632, %c0_144] : memref<640x64xf32, #tpu.memory_space<vmem>>, vector<1x16xf32>
    %539 = vector.broadcast %538 : vector<1x16xf32> to vector<2x16xf32>
    %540 = arith.addf %537, %539 : vector<2x16xf32>
    %cst_145 = arith.constant 5.000000e-01 : f32
    %541 = vector.broadcast %cst_145 : f32 to vector<2x16xf32>
    %542 = arith.mulf %541, %540 : vector<2x16xf32>
    %543 = math.exp %542 : vector<2x16xf32>
    %544 = arith.mulf %543, %1 : vector<2x16xf32>
    %545 = arith.addf %533, %544 : vector<2x16xf32>
    %546 = tpu.concatenate %533, %540, %545 in 1 : vector<2x16xf32>, vector<2x16xf32>, vector<2x16xf32> -> vector<2x48xf32>
    %c0_146 = arith.constant 0 : index
    %c0_147 = arith.constant 0 : index
    %547 = vector.load %arg1[%c0_146, %c0_147] : memref<2x48xf32, #tpu.memory_space<vmem>>, vector<2x48xf32>
    tpu.vector_store %arg1[%c0_146, %c0_147], %546 {strides = array<i32>} : memref<2x48xf32, #tpu.memory_space<vmem>>, vector<2x48xf32>,
    return
  }
}

</mosaic_0001>

<bundles_post_ra>
// kernel: encoder_forward.1
= control target key start
LH: loop header
LB: loop body
LE: loop exit
PB: predicated region body
PF: predicated region fallthrough
CT: control target
= control target key end

     0   :  { %vm88_vm0 = vcmask 1041408   ;;  %vm89_vm1 = vcmask 1042432   ;;  %v2433_v0 = vmov 65535   ;;  %vm84_vm2 = vcmask 171008   ;;  %s2435_s4 = smov 16   ;;  %s2436_s9 = smov 32   ;;  %s3287_s0 = inlined_call_operand.vmem [shape: f32[640,64], index: 0, kind: input, shape index: {}]   ;;  %s3288_s1 = inlined_call_operand.vmem [shape: f32[2,48], index: 1, kind: output, shape index: {}]  }
   0x1   :  { %v90_v1 = vsel %vm88_vm0, 4294967295, %v2433_v0  ;;  %v111_v2 = vld [vmem:[%s3287_s0 + $0x40] sm:$0x1f]  ;;  %v135_v3 = vld [vmem:[%s3287_s0 + $0x58] sm:$0x1f]  ;;  %v109_v7 = vld [vmem:[%s3287_s0 + $0x30] sm:$0xff] }
   0x2   :  { %v91_v4 = vsel %vm89_vm1, %v90_v1, 0  ;;  %v113_v5 = vpack.c.bf16 %v111_v2, %v111_v2  ;;  %v137_v6 = vpack.c.bf16 %v135_v3, %v135_v3  ;;  %v110_v8 = vld [vmem:[%s3287_s0 + $0x38] sm:$0xff]  ;;  %v133_v9 = vld [vmem:[%s3287_s0 + $0x48] sm:$0xff]  ;;  %v134_v10 = vld [vmem:[%s3287_s0 + $0x50] sm:$0xff]  ;;  %v2434_v48 = vmov 0  }
   0x3   :  { %v78_v11 = vld [vmem:[%s3287_s0 + $0x28] sm:$0x1f]  ;;  %v9_v15 = vld [vmem:[%s3287_s0] sm:$0xff]  ;;  %v14_v16 = vld [vmem:[%s3287_s0 + $0x70] sm:$0xff]  ;;  %v112_v19 = vpack.c.bf16 %v110_v8, %v109_v7  ;;  %v136_v23 = vpack.c.bf16 %v134_v10, %v133_v9  ;;  %vm157_vm11 = vcmask 261120  }
   0x4   :  { %v117_v12 = vand.u32 %v113_v5, %v91_v4  ;;  %v141_v13 = vand.u32 %v137_v6, %v91_v4  ;;  %v80_v14 = vpack.c.bf16 %v78_v11, %v78_v11  ;;  %v15_v17 = vld [vmem:[%s3287_s0 + $0x78] sm:$0xff]  ;;  %v77_v20 = vld [vmem:[%s3287_s0 + $0x20] sm:$0xff]  ;;  %v50_v21 = vld [vmem:[%s3287_s0 + $0x150] sm:$0xff] }
   0x5   :  { %v76_v18 = vld [vmem:[%s3287_s0 + $0x18] sm:$0xff]  ;;  %v10_v25 = vld [vmem:[%s3287_s0 + $0x8] sm:$0xff]  ;;  %v20_v27 = vld [vmem:[%s3287_s0 + $0x90] sm:$0xff]  ;;  %v2500_v29 = vpack.c.bf16 %v15_v17, %v14_v16 }
   0x6   :  { %v51_v22 = vld [vmem:[%s3287_s0 + $0x158] sm:$0xff]  ;;  %125 = vmatpush.bf16.msra.mxu1 %v117_v12  ;;  %149 = vmatpush.bf16.msra.mxu2 %v141_v13  ;;  %v93_v24 = vand.u32 %v91_v4, %v80_v14  ;;  %v12_v31 = vld [vmem:[%s3287_s0 + $0x60] sm:$0xff]  ;;  %v49_v33 = vld [vmem:[%s3287_s0 + $0x148] sm:$0xff]  ;;  %v79_v34 = vpack.c.bf16 %v77_v20, %v76_v18  ;;  %v81_v39 = vpack.c.bf16 %v10_v25, %v9_v15 }
   0x7   :  { %v2492_v26 = vpack.c.bf16 %v51_v22, %v50_v21  ;;  %v21_v28 = vld [vmem:[%s3287_s0 + $0x98] sm:$0xff]  ;;  %v48_v32 = vld [vmem:[%s3287_s0 + $0x140] sm:$0xff]  ;;  %v13_v35 = vld [vmem:[%s3287_s0 + $0x68] sm:$0xff] }
   0x8   :  { %v2502_v30 = vpack.c.bf16 %v21_v28, %v20_v27  ;;  %101 = vmatpush.bf16.msra.mxu0 %v93_v24  ;;  %v2517_v36 = vpack.c.bf16 %v49_v33, %v48_v32  ;;  %v18_v37 = vld [vmem:[%s3287_s0 + $0x80] sm:$0xff]  ;;  %v26_v38 = vld [vmem:[%s3287_s0 + $0xb0] sm:$0xff]  ;;  %v19_v40 = vld [vmem:[%s3287_s0 + $0x88] sm:$0xff]  ;;  %v2541_v45 = vpack.c.bf16 %v13_v35, %v12_v31 }
   0x9   :  { %167 = vmatpush.bf16.msra.mxu3 %v2492_v26  ;;  %v27_v41 = vld [vmem:[%s3287_s0 + $0xb8] sm:$0xff]  ;;  %v24_v42 = vld [vmem:[%s3287_s0 + $0xa0] sm:$0xff]  ;;  %v25_v44 = vld [vmem:[%s3287_s0 + $0xa8] sm:$0xff]  ;;  %v2544_v46 = vpack.c.bf16 %v19_v40, %v18_v37 }
   0xa   :  { %126 = vmatpush.bf16.msra.mxu1 %v112_v19  ;;  %150 = vmatpush.bf16.msra.mxu2 %v136_v23  ;;  %v2534_v43 = vpack.c.bf16 %v27_v41, %v26_v38  ;;  %v2549_v47 = vpack.c.bf16 %v25_v44, %v24_v42  ;;  %v56_v50 = vld [vmem:[%s3287_s0 + $0x170] sm:$0xff]  ;;  %v57_v51 = vld [vmem:[%s3287_s0 + $0x178] sm:$0xff]  ;;  %v54_v53 = vld [vmem:[%s3287_s0 + $0x160] sm:$0xff] }
   0xb   :  { %v2561_v52 = vpack.c.bf16 %v57_v51, %v56_v50  ;;  %v55_v54 = vld [vmem:[%s3287_s0 + $0x168] sm:$0xff]  ;;  %v62_v58 = vld [vmem:[%s3287_s0 + $0x190] sm:$0xff]  ;;  %v63_v59 = vld [vmem:[%s3287_s0 + $0x198] sm:$0xff] }
   0xc   :  { %102 = vmatpush.bf16.msra.mxu0 %v79_v34  ;;  %v2570_v55 = vpack.c.bf16 %v55_v54, %v54_v53  ;;  %v2252_v60 = vld [vmem:[%s3287_s0 + $0xc0] ss:$0 sm:$0xff]  ;;  %v2588_v62 = vpack.c.bf16 %v63_v59, %v62_v58  ;;  %v61_v1 = vld [vmem:[%s3287_s0 + $0x188] sm:$0xff]  ;;  %v32_v14 = vld [vmem:[%s3287_s0 + $0xf0] sm:$0xff] }
   0xd   :  { %168 = vmatpush.bf16.msra.mxu3 %v2517_v36  ;;  %2142 = vmatmul.msk.bf16.vlgmr.msra.gmra.mxu1 %vm84_vm2, %v81_v39  ;;  %v60_v0 = vld [vmem:[%s3287_s0 + $0x180] sm:$0xff]  ;;  %v2251_v6 = vld [vmem:[%s3287_s0 + $0xc8] ss:$0 sm:$0xff]  ;;  %v33_v15 = vld [vmem:[%s3287_s0 + $0xf8] sm:$0xff] }
   0xe   :  { %193 = vmatpush.bf16.msrb.mxu1 %v2500_v29  ;;  %206 = vmatpush.bf16.msrb.mxu2 %v2502_v30  ;;  %v2599_v3 = vpack.c.bf16 %v61_v1, %v60_v0  ;;  %v38_v16 = vld [vmem:[%s3287_s0 + $0x110] sm:$0xff]  ;;  %v2622_v19 = vpack.c.bf16 %v33_v15, %v32_v14  ;;  %v39_v20 = vld [vmem:[%s3287_s0 + $0x118] sm:$0xff]  ;;  %v30_v28 = vld [vmem:[%s3287_s0 + $0xe0] sm:$0xff] }
   0xf   :  { %2143 = vmatmul.msk.bf16.vlgmr.msra.gmra.mxu2 %vm84_vm2, %v81_v39  ;;  %2141 = vmatmul.msk.bf16.vlgmr.msra.gmra.mxu0 %vm84_vm2, %v81_v39  ;;  %v44_v21 = vld [vmem:[%s3287_s0 + $0x130] sm:$0xff]  ;;  %v45_v22 = vld [vmem:[%s3287_s0 + $0x138] sm:$0xff]  ;;  %v2633_v23 = vpack.c.bf16 %v39_v20, %v38_v16  ;;  %v31_v31 = vld [vmem:[%s3287_s0 + $0xe8] sm:$0xff] }
  0x10   :  { %169 = vmatmul.bf16.vlgmr.msra.gmra.mxu3 %v2434_v48  ;;  %180 = vmatpush.bf16.msrb.mxu0 %v2561_v52  ;;  %v2635_v24 = vpack.c.bf16 %v45_v22, %v44_v21  ;;  %v36_v32 = vld [vmem:[%s3287_s0 + $0x100] sm:$0xff]  ;;  %v2649_v33 = vpack.c.bf16 %v31_v31, %v30_v28  ;;  %v37_v34 = vld [vmem:[%s3287_s0 + $0x108] sm:$0xff]  ;;  %v2678_v50 = vld [vmem:[%s3287_s0 + $0xd8] ss:$0 sm:$0xff] }
  0x11   :  { %259 = vmatpush.bf16.msrb.mxu3 %v2534_v43  ;;  %v42_v35 = vld [vmem:[%s3287_s0 + $0x120] sm:$0xff]  ;;  %v43_v37 = vld [vmem:[%s3287_s0 + $0x128] sm:$0xff]  ;;  %v2662_v39 = vpack.c.bf16 %v37_v34, %v36_v32 }
  0x12   :  { %194 = vmatpush.bf16.msrb.mxu1 %v2541_v45  ;;  %207 = vmatpush.bf16.msrb.mxu2 %v2544_v46  ;;  %v2664_v40 = vpack.c.bf16 %v43_v37, %v42_v35  ;;  %v2719_v37 = vld [vmem:[%s3287_s0 + $0x1a0] ss:$0 sm:$0xff] }
  0x14   :  { %181 = vmatpush.bf16.msrb.mxu0 %v2570_v55 }
  0x15   :  { %260 = vmatpush.bf16.msrb.mxu3 %v2549_v47 }
  0x16   :  { %315 = vmatpush.bf16.msra.mxu1 %v2633_v23  ;;  %348 = vmatpush.bf16.msra.mxu2 %v2635_v24 }
  0x18   :  { %282 = vmatpush.bf16.msra.mxu0 %v2622_v19 }
  0x19   :  { %361 = vmatpush.bf16.msra.mxu3 %v2588_v62 }
  0x1a   :  { %316 = vmatpush.bf16.msra.mxu1 %v2662_v39  ;;  %349 = vmatpush.bf16.msra.mxu2 %v2664_v40 }
  0x1c   :  { %283 = vmatpush.bf16.msra.mxu0 %v2649_v33 }
  0x1d   :  { %195 = vmatmul.bf16.vlgmr.msrb.gmra.mxu1 %v2434_v48  ;;  %362 = vmatpush.bf16.msra.mxu3 %v2599_v3 }
  0x1e   :  { %397 = vmatpush.bf16.msrb.mxu1 %v2561_v52 }
  0x1f   :  { %208 = vmatmul.bf16.vlgmr.msrb.gmra.mxu2 %v2434_v48  ;;  %182 = vmatmul.bf16.vlgmr.msrb.gmra.mxu0 %v2434_v48 }
  0x20   :  { %261 = vmatmul.bf16.vlgmr.msrb.gmra.mxu3 %v2434_v48  ;;  %384 = vmatpush.bf16.msrb.mxu0 %v2492_v26 }
  0x21   :  { %423 = vmatpush.bf16.msrb.mxu3 %v2502_v30  ;;  %410 = vmatpush.bf16.msrb.mxu2 %v2500_v29 }
  0x22   :  { %398 = vmatpush.bf16.msrb.mxu1 %v2570_v55 }
  0x24   :  { %385 = vmatpush.bf16.msrb.mxu0 %v2517_v36 }
  0x25   :  { %424 = vmatpush.bf16.msrb.mxu3 %v2544_v46  ;;  %411 = vmatpush.bf16.msrb.mxu2 %v2541_v45 }
  0x30   :  { %363 = vmatmul.bf16.vlgmr.msra.gmra.mxu3 %v2434_v48 }
  0x31   :  { %582 = vmatpush.bf16.msra.mxu3 %v2635_v24 }
  0x35   :  { %583 = vmatpush.bf16.msra.mxu3 %v2664_v40 }
  0x8a   :  { %v128_v49 = vpop.f32.mrf.mxu1 }
  0x8b   :  { %v2610_v10 = vadd.f32 %v2251_v6, %v128_v49 }
  0x8c   :  { %v104_v63 = vpop.f32.mrf.mxu0 }
  0x8d   :  { %v2597_v2 = vadd.f32 %v2252_v60, %v104_v63  ;;  %v2253_v60 = vld [vmem:[%s3287_s0 + $0xd0] ss:$0 sm:$0xff] }
  0x92   :  { %v2572_v56 = vpop.f32.mrf.mxu2  ;;  %v2575_v57 = vpop.f32.mrf.mxu1 }
  0x93   :  { %v2586_v61 = vpop.f32.mrf.mxu3 }
  0x94   :  { %v2714_v28 = vpop.f32.mrf.mxu0 }
  0x9a   :  { %v2601_v4 = vpop.f32.mrf.mxu2  ;;  %v196_v5 = vpop.f32.mrf.mxu1 }
  0x9b   :  { %v213_v7 = vadd.f32 %v196_v5, %v2597_v2  ;;  %v172_v8 = vpop.f32.mrf.mxu3 }
  0x9c   :  { %v183_v31 = vpop.f32.mrf.mxu0 }
  0x9d   :  { %v2144_v9 = vmul.f32 -1.442695, %v213_v7 }
  0x9f   :  { %2263 = vpow2.f32 %v2144_v9  ;;  %v2685_v9 = vadd.f32 %v2253_v60, %v2572_v56 }
  0xa2   :  { %v209_v11 = vpop.f32.mrf.mxu2  ;;  %v198_v13 = vpop.f32.mrf.mxu1 }
  0xa3   :  { %v233_v12 = vadd.f32 %v209_v11, %v2610_v10  ;;  %v262_v18 = vpop.f32.mrf.mxu3 }
  0xa4   :  { %v263_v1 = vadd.f32 %v2678_v50, %v262_v18  ;;  %v185_v32 = vpop.f32.mrf.mxu0 }
  0xa5   :  { %v2145_v17 = vmul.f32 -1.442695, %v233_v12  ;;  %v2264_v25 = vpop.eup %2263 }
  0xa6   :  { %v217_v27 = vadd.f32 1.0, %v2264_v25 }
  0xa7   :  { %2265 = vpow2.f32 %v2145_v17 }
  0xa8   :  { %2267 = vrcp.f32 %v217_v27  ;;  %v229_v53 = vand.u32 2147483648, %v217_v27  ;;  %v227_v58 = vand.u32 2147483647, %v217_v27  ;;  %vm223_vm4 = vweird.f32 %v217_v27 }
  0xaa   :  { %v211_v38 = vpop.f32.mrf.mxu2  ;;  %v230_v5 = vor.u32 1.1754944e-38, %v229_v53  ;;  %vm228_vm6 = vcmp.eq.f32.partialorder %v227_v58, 8.507059e+37 }
  0xab   :  { %v264_v42 = vpop.f32.mrf.mxu3  ;;  %v2724_v38 = vld [vmem:[%s3287_s0 + $0x1a8] ss:$0 sm:$0xff] }
  0xad   :  { %v2266_v41 = vpop.eup %2265 }
  0xae   :  { %v237_v44 = vadd.f32 1.0, %v2266_v41  ;;  %v2268_v48 = vpop.eup %2267 }
  0xaf   :  { %v219_v49 = vmul.f32 %v2268_v48, %v217_v27  ;;  %vm224_vm3 = vweird.f32 %v2268_v48 }
  0xb0   :  { %2269 = vrcp.f32 %v237_v44  ;;  %vm225_vm5 = vmor %vm223_vm4, %vm224_vm3  ;;  %v249_v15 = vand.u32 2147483648, %v237_v44  ;;  %vm243_vm8 = vweird.f32 %v237_v44  ;;  %v247_v16 = vand.u32 2147483647, %v237_v44 }
  0xb1   :  { %v220_v51 = vsub.f32 1.0, %v219_v49 }
  0xb2   :  { %v250_v20 = vor.u32 1.1754944e-38, %v249_v15  ;;  %vm248_vm10 = vcmp.eq.f32.partialorder %v247_v16, 8.507059e+37 }
  0xb3   :  { %v221_v54 = vmul.f32 %v2268_v48, %v220_v51  ;;  %v364_v34 = vpop.f32.mrf.mxu3 }
  0xb5   :  { %v222_v0 = vadd.f32 %v2268_v48, %v221_v54 }
  0xb6   :  { %v2270_v59 = vpop.eup %2269 }
  0xb7   :  { %v239_v63 = vmul.f32 %v2270_v59, %v237_v44  ;;  %v226_v7 = vsel %vm225_vm5, %v2268_v48, %v222_v0  ;;  %vm244_vm7 = vweird.f32 %v2270_v59 }
  0xb8   :  { %v231_v8 = vsel %vm228_vm6, %v230_v5, %v226_v7  ;;  %vm245_vm9 = vmor %vm243_vm8, %vm244_vm7 }
  0xb9   :  { %v240_v6 = vsub.f32 1.0, %v239_v63  ;;  %v266_v11 = vmul.f32 %v263_v1, %v231_v8 }
  0xbb   :  { %v241_v12 = vmul.f32 %v2270_v59, %v240_v6  ;;  %v267_v13 = vadd.f32 %v266_v11, %v2685_v9  ;;  %v366_v35 = vpop.f32.mrf.mxu3 }
  0xbd   :  { %2271 = vtanh.f32 %v267_v13  ;;  %v242_v14 = vadd.f32 %v2270_v59, %v241_v12 }
  0xbf   :  { %v246_v17 = vsel %vm245_vm9, %v2270_v59, %v242_v14  ;;  %v2734_v14 = vld [vmem:[%s3287_s0 + $0x1b8] ss:$0 sm:$0xff] }
  0xc0   :  { %v251_v22 = vsel %vm248_vm10, %v250_v20, %v246_v17 }
  0xc3   :  { %v2272_v18 = vpop.eup %2271 }
  0xc4   :  { %v269_v21 = vsub.f32 0.0, %v2272_v18 }
  0xc6   :  { %v270_v25 = vmul.f32 %v269_v21, %v251_v22  ;;  %v365_v21 = vadd.f32 %v2734_v14, %v364_v34  ;;  %v2740_v22 = vld [vmem:[%s3287_s0 + $0x1b0] ss:$0 sm:$0xff] }
  0xc8   :  { %v2688_v56 = vadd.f32 %v2272_v18, %v270_v25 }
  0xca   :  { %v2692_v27 = vpack.c.bf16 %v2688_v56, %v2688_v56 }
  0xcc   :  { %2146 = vmatmul.msk.bf16.vlgmr.msra.gmra.mxu0 %vm157_vm11, %v2692_v27  ;;  %2148 = vmatmul.msk.bf16.vlgmr.msra.gmra.mxu1 %vm157_vm11, %v2692_v27 }
  0xcd   :  { %2150 = vmatmul.msk.bf16.vlgmr.msra.gmra.mxu2 %vm157_vm11, %v2692_v27  ;;  %2154 = vmatmul.msk.bf16.vlgmr.msrb.gmra.mxu3 %vm157_vm11, %v2692_v27 }
  0xce   :  { %482 = vmatpush.bf16.msra.mxu0 %v2534_v43  ;;  %516 = vmatpush.bf16.msra.mxu1 %v2622_v19 }
  0xcf   :  { %549 = vmatpush.bf16.msra.mxu2 %v2633_v23  ;;  %644 = vmatpush.bf16.msrb.mxu3 %v2500_v29 }
  0xd2   :  { %483 = vmatpush.bf16.msra.mxu0 %v2549_v47  ;;  %517 = vmatpush.bf16.msra.mxu1 %v2649_v33 }
  0xd3   :  { %550 = vmatpush.bf16.msra.mxu2 %v2662_v39  ;;  %645 = vmatpush.bf16.msrb.mxu3 %v2541_v45 }
  0xdd   :  { %2153 = vmatmul.msk.bf16.vlgmr.msrb.gmra.mxu2 %vm157_vm11, %v2692_v27 }
  0xde   :  { %631 = vmatpush.bf16.msrb.mxu2 %v2561_v52 }
  0xe2   :  { %632 = vmatpush.bf16.msrb.mxu2 %v2570_v55 }
 0x149   :  { %v285_v41 = vpop.f32.mrf.mxu0  ;;  %v318_v42 = vpop.f32.mrf.mxu1 }
 0x14a   :  { %v286_v44 = vadd.f32 %v285_v41, %v2586_v61  ;;  %v319_v48 = vadd.f32 %v318_v42, %v183_v31 }
 0x14c   :  { %v289_v49 = vadd.f32 %v2719_v37, %v286_v44  ;;  %v322_v51 = vadd.f32 %v2724_v38, %v319_v48 }
 0x14e   :  { %v2147_v53 = vmul.f32 -1.442695, %v289_v49  ;;  %v2149_v54 = vmul.f32 -1.442695, %v322_v51 }
 0x150   :  { %2273 = vpow2.f32 %v2147_v53  ;;  %v351_v58 = vpop.f32.mrf.mxu2  ;;  %v2729_v59 = vpop.f32.mrf.mxu3 }
 0x151   :  { %2275 = vpow2.f32 %v2149_v54  ;;  %v287_v60 = vpop.f32.mrf.mxu0  ;;  %v320_v63 = vpop.f32.mrf.mxu1  ;;  %v352_v44 = vadd.f32 %v2740_v22, %v351_v58 }
 0x156   :  { %v2274_v0 = vpop.eup %2273 }
 0x157   :  { %v2276_v1 = vpop.eup %2275  ;;  %v293_v5 = vadd.f32 1.0, %v2274_v0 }
 0x158   :  { %v326_v6 = vadd.f32 1.0, %v2276_v1  ;;  %v353_v7 = vpop.f32.mrf.mxu2  ;;  %v428_v61 = vpop.f32.mrf.mxu3 }
 0x159   :  { %2277 = vrcp.f32 %v293_v5  ;;  %v305_v17 = vand.u32 2147483648, %v293_v5  ;;  %v303_v20 = vand.u32 2147483647, %v293_v5  ;;  %vm299_vm13 = vweird.f32 %v293_v5 }
 0x15a   :  { %2279 = vrcp.f32 %v326_v6  ;;  %v338_v53 = vand.u32 2147483648, %v326_v6  ;;  %vm332_vm1 = vweird.f32 %v326_v6  ;;  %v336_v54 = vand.u32 2147483647, %v326_v6 }
 0x15b   :  { %v306_v32 = vor.u32 1.1754944e-38, %v305_v17  ;;  %vm304_vm15 = vcmp.eq.f32.partialorder %v303_v20, 8.507059e+37 }
 0x15c   :  { %v339_v0 = vor.u32 1.1754944e-38, %v338_v53  ;;  %vm337_vm3 = vcmp.eq.f32.partialorder %v336_v54, 8.507059e+37 }
 0x15f   :  { %v2278_v8 = vpop.eup %2277 }
 0x160   :  { %v2280_v11 = vpop.eup %2279  ;;  %v295_v12 = vmul.f32 %v2278_v8, %v293_v5  ;;  %v413_v13 = vpop.f32.mrf.mxu2  ;;  %vm300_vm12 = vweird.f32 %v2278_v8 }
 0x161   :  { %v328_v16 = vmul.f32 %v2280_v11, %v326_v6  ;;  %vm301_vm14 = vmor %vm299_vm13, %vm300_vm12  ;;  %vm333_vm0 = vweird.f32 %v2280_v11  ;;  %v431_v6 = vrot.slane %v413_v13, 6 }
 0x162   :  { %v296_v15 = vsub.f32 1.0, %v295_v12  ;;  %vm334_vm2 = vmor %vm332_vm1, %vm333_vm0  ;;  %v454_v12 = vrot.slane %v2729_v59, 6 }
 0x163   :  { %v329_v31 = vsub.f32 1.0, %v328_v16 }
 0x164   :  { %v297_v18 = vmul.f32 %v2278_v8, %v296_v15 }
 0x165   :  { %v330_v49 = vmul.f32 %v2280_v11, %v329_v31 }
 0x166   :  { %v298_v25 = vadd.f32 %v2278_v8, %v297_v18 }
 0x167   :  { %v331_v34 = vadd.f32 %v2280_v11, %v330_v49 }
 0x168   :  { %v302_v35 = vsel %vm301_vm14, %v2278_v8, %v298_v25  ;;  %v415_v41 = vpop.f32.mrf.mxu2  ;;  %v433_v8 = vadd.f32 %v431_v6, %v2597_v2 }
 0x169   :  { %v307_v42 = vsel %vm304_vm15, %v306_v32, %v302_v35  ;;  %v335_v60 = vsel %vm334_vm2, %v2280_v11, %v331_v34 }
 0x16a   :  { %v368_v48 = vmul.f32 %v365_v21, %v307_v42  ;;  %v340_v5 = vsel %vm337_vm3, %v339_v0, %v335_v60  ;;  %v2155_v11 = vmul.f32 -1.442695, %v433_v8 }
 0x16c   :  { %v369_v51 = vadd.f32 %v368_v48, %v352_v44 }
 0x16e   :  { %2281 = vtanh.f32 %v369_v51 }
 0x16f   :  { %2283 = vpow2.f32 %v2155_v11 }
 0x174   :  { %v2282_v63 = vpop.eup %2281 }
 0x175   :  { %v371_v1 = vsub.f32 0.0, %v2282_v63  ;;  %v2284_v15 = vpop.eup %2283 }
 0x176   :  { %v437_v16 = vadd.f32 1.0, %v2284_v15 }
 0x177   :  { %v372_v7 = vmul.f32 %v371_v1, %v340_v5 }
 0x178   :  { %2285 = vrcp.f32 %v437_v16  ;;  %v449_v44 = vand.u32 2147483648, %v437_v16  ;;  %vm443_vm5 = vweird.f32 %v437_v16  ;;  %v447_v49 = vand.u32 2147483647, %v437_v16 }
 0x179   :  { %v2743_v61 = vadd.f32 %v2282_v63, %v372_v7 }
 0x17a   :  { %v450_v60 = vor.u32 1.1754944e-38, %v449_v44  ;;  %vm448_vm7 = vcmp.eq.f32.partialorder %v447_v49, 8.507059e+37 }
 0x17b   :  { %v374_v58 = vpack.c.bf16 %v2743_v61, %v2743_v61 }
 0x17d   :  { %2151 = vmatmul.msk.bf16.vlgmr.msrb.gmra.mxu0 %vm157_vm11, %v374_v58  ;;  %2152 = vmatmul.msk.bf16.vlgmr.msrb.gmra.mxu1 %vm157_vm11, %v374_v58 }
 0x17e   :  { %595 = vmatpush.bf16.msrb.mxu0 %v2588_v62  ;;  %618 = vmatpush.bf16.msrb.mxu1 %v2492_v26  ;;  %v2286_v18 = vpop.eup %2285 }
 0x17f   :  { %v439_v25 = vmul.f32 %v2286_v18, %v437_v16  ;;  %vm444_vm4 = vweird.f32 %v2286_v18 }
 0x180   :  { %vm445_vm6 = vmor %vm443_vm5, %vm444_vm4 }
 0x181   :  { %v440_v32 = vsub.f32 1.0, %v439_v25 }
 0x182   :  { %596 = vmatpush.bf16.msrb.mxu0 %v2599_v3  ;;  %619 = vmatpush.bf16.msrb.mxu1 %v2517_v36 }
 0x183   :  { %v441_v59 = vmul.f32 %v2286_v18, %v440_v32 }
 0x185   :  { %v442_v42 = vadd.f32 %v2286_v18, %v441_v59 }
 0x187   :  { %v446_v34 = vsel %vm445_vm6, %v2286_v18, %v442_v42 }
 0x188   :  { %v451_v0 = vsel %vm448_vm7, %v450_v60, %v446_v34 }
 0x18d   :  { %2157 = vmatmul.msk.bf16.vlgmr.msra.gmra.mxu0 %vm157_vm11, %v2692_v27  ;;  %v456_v27 = vadd.f32 %v454_v12, %v2610_v10 }
 0x18e   :  { %657 = vmatpush.bf16.msra.mxu0 %v2502_v30 }
 0x18f   :  { %v2156_v17 = vmul.f32 -1.442695, %v456_v27 }
 0x191   :  { %2287 = vpow2.f32 %v2156_v17 }
 0x192   :  { %658 = vmatpush.bf16.msra.mxu0 %v2544_v46 }
 0x197   :  { %v2288_v13 = vpop.eup %2287 }
 0x198   :  { %v460_v31 = vadd.f32 1.0, %v2288_v13 }
 0x19a   :  { %2289 = vrcp.f32 %v460_v31  ;;  %v472_v12 = vand.u32 2147483648, %v460_v31  ;;  %vm466_vm9 = vweird.f32 %v460_v31  ;;  %v470_v15 = vand.u32 2147483647, %v460_v31 }
 0x19c   :  { %v473_v25 = vor.u32 1.1754944e-38, %v472_v12  ;;  %vm471_vm12 = vcmp.eq.f32.partialorder %v470_v15, 8.507059e+37 }
 0x19d   :  { %2163 = vmatmul.msk.bf16.vlgmr.msrb.gmra.mxu0 %vm157_vm11, %v374_v58 }
 0x19e   :  { %816 = vmatpush.bf16.msrb.mxu0 %v2635_v24 }
 0x1a0   :  { %v2290_v48 = vpop.eup %2289 }
 0x1a1   :  { %v462_v54 = vmul.f32 %v2290_v48, %v460_v31  ;;  %vm467_vm8 = vweird.f32 %v2290_v48 }
 0x1a2   :  { %817 = vmatpush.bf16.msrb.mxu0 %v2664_v40  ;;  %vm468_vm10 = vmor %vm466_vm9, %vm467_vm8 }
 0x1a3   :  { %v463_v5 = vsub.f32 1.0, %v462_v54 }
 0x1a5   :  { %v464_v6 = vmul.f32 %v2290_v48, %v463_v5 }
 0x1a7   :  { %v465_v8 = vadd.f32 %v2290_v48, %v464_v6 }
 0x1a9   :  { %v469_v17 = vsel %vm468_vm10, %v2290_v48, %v465_v8 }
 0x1aa   :  { %v474_v32 = vsel %vm471_vm12, %v473_v25, %v469_v17 }
 0x1fa   :  { %v2763_v20 = vpop.f32.mrf.mxu0  ;;  %v2765_v21 = vpop.f32.mrf.mxu1 }
 0x202   :  { %v389_v35 = vpop.f32.mrf.mxu0  ;;  %v402_v41 = vpop.f32.mrf.mxu1 }
 0x20a   :  { %v485_v51 = vpop.f32.mrf.mxu0 }
 0x20b   :  { %v486_v53 = vadd.f32 %v2678_v50, %v485_v51 }
 0x20d   :  { %v490_v63 = vrot.slane %v486_v53, 6 }
 0x20f   :  { %v492_v1 = vmul.f32 %v490_v63, %v451_v0 }
 0x211   :  { %v493_v7 = vadd.f32 %v492_v1, %v2685_v9 }
 0x212   :  { %v487_v58 = vpop.f32.mrf.mxu0 }
 0x213   :  { %2291 = vtanh.f32 %v493_v7 }
 0x219   :  { %v2292_v11 = vpop.eup %2291 }
 0x21a   :  { %v496_v27 = vrot.slane %v2292_v11, 2  ;;  %v2769_v16 = vpop.f32.mrf.mxu0 }
 0x21c   :  { %v498_v18 = vsub.f32 %v2688_v56, %v496_v27 }
 0x21e   :  { %v500_v13 = vrot.slane %v498_v18, 6 }
 0x220   :  { %v502_v35 = vmul.f32 %v500_v13, %v474_v32 }
 0x222   :  { %v2772_v41 = vadd.f32 %v2292_v11, %v502_v35  ;;  %v600_v59 = vpop.f32.mrf.mxu0 }
 0x223   :  { %v599_v59 = vadd.f32 %v2734_v14, %v2769_v16 }
 0x224   :  { %v504_v42 = vpack.c.bf16 %v2772_v41, %v2772_v41 }
 0x226   :  { %v2776_v44 = vrot.slane %v504_v42, 1 }
 0x228   :  { %2158 = vmatmul.msk.bf16.vlgmr.msra.gmra.mxu1 %vm157_vm11, %v2776_v44  ;;  %2160 = vmatmul.msk.bf16.vlgmr.msra.gmra.mxu2 %vm157_vm11, %v2776_v44 }
 0x229   :  { %2162 = vmatmul.msk.bf16.vlgmr.msra.gmra.mxu3 %vm157_vm11, %v2776_v44  ;;  %2167 = vmatmul.msk.bf16.vlgmr.msra.gmra.mxu0 %vm157_vm11, %v2776_v44 }
 0x22a   :  { %716 = vmatpush.bf16.msra.mxu1 %v2534_v43  ;;  %750 = vmatpush.bf16.msra.mxu2 %v2622_v19 }
 0x22b   :  { %783 = vmatpush.bf16.msra.mxu3 %v2633_v23  ;;  %878 = vmatpush.bf16.msra.mxu0 %v2500_v29 }
 0x22e   :  { %717 = vmatpush.bf16.msra.mxu1 %v2549_v47  ;;  %751 = vmatpush.bf16.msra.mxu2 %v2649_v33 }
 0x22f   :  { %784 = vmatpush.bf16.msra.mxu3 %v2662_v39  ;;  %879 = vmatpush.bf16.msra.mxu0 %v2541_v45 }
 0x239   :  { %2166 = vmatmul.msk.bf16.vlgmr.msrb.gmra.mxu3 %vm157_vm11, %v2776_v44 }
 0x23a   :  { %865 = vmatpush.bf16.msrb.mxu3 %v2561_v52 }
 0x23e   :  { %866 = vmatpush.bf16.msrb.mxu3 %v2570_v55 }
 0x2a5   :  { %v519_v56 = vpop.f32.mrf.mxu1 }
 0x2a6   :  { %v520_v31 = vadd.f32 %v519_v56, %v2763_v20  ;;  %v2799_v48 = vpop.f32.mrf.mxu0 }
 0x2a8   :  { %v523_v49 = vadd.f32 %v2719_v37, %v520_v31 }
 0x2aa   :  { %v2159_v51 = vmul.f32 -1.442695, %v523_v49 }
 0x2ab   :  { %v552_v34 = vpop.f32.mrf.mxu2 }
 0x2ac   :  { %2293 = vpow2.f32 %v2159_v51  ;;  %v553_v53 = vadd.f32 %v552_v34, %v2765_v21  ;;  %v585_v54 = vpop.f32.mrf.mxu3 }
 0x2ad   :  { %v521_v60 = vpop.f32.mrf.mxu1  ;;  %v586_v51 = vadd.f32 %v2740_v22, %v585_v54 }
 0x2ae   :  { %v556_v63 = vadd.f32 %v2724_v38, %v553_v53  ;;  %v662_v0 = vpop.f32.mrf.mxu0 }
 0x2b0   :  { %v2161_v1 = vmul.f32 -1.442695, %v556_v63 }
 0x2b2   :  { %v2294_v5 = vpop.eup %2293  ;;  %2295 = vpow2.f32 %v2161_v1 }
 0x2b3   :  { %v527_v7 = vadd.f32 1.0, %v2294_v5  ;;  %v554_v58 = vpop.f32.mrf.mxu2 }
 0x2b4   :  { %v587_v20 = vpop.f32.mrf.mxu3 }
 0x2b5   :  { %2297 = vrcp.f32 %v527_v7  ;;  %v539_v21 = vand.u32 2147483648, %v527_v7  ;;  %v537_v18 = vand.u32 2147483647, %v527_v7  ;;  %vm533_vm14 = vweird.f32 %v527_v7 }
 0x2b7   :  { %v540_v35 = vor.u32 1.1754944e-38, %v539_v21  ;;  %vm538_vm0 = vcmp.eq.f32.partialorder %v537_v18, 8.507059e+37 }
 0x2b8   :  { %v2296_v6 = vpop.eup %2295 }
 0x2b9   :  { %v560_v8 = vadd.f32 1.0, %v2296_v6 }
 0x2bb   :  { %v2298_v11 = vpop.eup %2297  ;;  %2299 = vrcp.f32 %v560_v8  ;;  %v572_v0 = vand.u32 2147483648, %v560_v8  ;;  %vm566_vm2 = vweird.f32 %v560_v8  ;;  %v570_v1 = vand.u32 2147483647, %v560_v8 }
 0x2bc   :  { %v529_v12 = vmul.f32 %v2298_v11, %v527_v7  ;;  %v647_v15 = vpop.f32.mrf.mxu3  ;;  %vm534_vm13 = vweird.f32 %v2298_v11 }
 0x2bd   :  { %vm535_vm15 = vmor %vm533_vm14, %vm534_vm13  ;;  %v573_v16 = vor.u32 1.1754944e-38, %v572_v0  ;;  %vm571_vm4 = vcmp.eq.f32.partialorder %v570_v1, 8.507059e+37 }
 0x2be   :  { %v530_v27 = vsub.f32 1.0, %v529_v12 }
 0x2c0   :  { %v531_v17 = vmul.f32 %v2298_v11, %v530_v27  ;;  %v688_v27 = vrot.slane %v2799_v48, 4 }
 0x2c1   :  { %v2300_v25 = vpop.eup %2299 }
 0x2c2   :  { %v562_v13 = vmul.f32 %v2300_v25, %v560_v8  ;;  %v532_v32 = vadd.f32 %v2298_v11, %v531_v17  ;;  %vm567_vm1 = vweird.f32 %v2300_v25 }
 0x2c3   :  { %vm568_vm3 = vmor %vm566_vm2, %vm567_vm1 }
 0x2c4   :  { %v563_v42 = vsub.f32 1.0, %v562_v13  ;;  %v536_v56 = vsel %vm535_vm15, %v2298_v11, %v532_v32  ;;  %v649_v31 = vpop.f32.mrf.mxu3 }
 0x2c5   :  { %v541_v49 = vsel %vm538_vm0, %v540_v35, %v536_v56 }
 0x2c6   :  { %v602_v34 = vmul.f32 %v599_v59, %v541_v49  ;;  %v564_v53 = vmul.f32 %v2300_v25, %v563_v42 }
 0x2c8   :  { %v603_v60 = vadd.f32 %v602_v34, %v586_v51  ;;  %v565_v63 = vadd.f32 %v2300_v25, %v564_v53 }
 0x2ca   :  { %2301 = vtanh.f32 %v603_v60  ;;  %v569_v5 = vsel %vm568_vm3, %v2300_v25, %v565_v63 }
 0x2cb   :  { %v574_v20 = vsel %vm571_vm4, %v573_v16, %v569_v5 }
 0x2d0   :  { %v2302_v7 = vpop.eup %2301 }
 0x2d1   :  { %v605_v58 = vsub.f32 %v2743_v61, %v2302_v7  ;;  %v665_v61 = vrot.slane %v647_v15, 4 }
 0x2d3   :  { %v606_v6 = vmul.f32 %v605_v58, %v574_v20  ;;  %v667_v8 = vadd.f32 %v665_v61, %v2597_v2 }
 0x2d5   :  { %v2808_v11 = vadd.f32 %v2302_v7, %v606_v6  ;;  %v2168_v12 = vmul.f32 -1.442695, %v667_v8 }
 0x2d7   :  { %v608_v54 = vpack.c.bf16 %v2808_v11, %v2808_v11  ;;  %2303 = vpow2.f32 %v2168_v12 }
 0x2d9   :  { %2164 = vmatmul.msk.bf16.vlgmr.msrb.gmra.mxu1 %vm157_vm11, %v608_v54  ;;  %2165 = vmatmul.msk.bf16.vlgmr.msrb.gmra.mxu2 %vm157_vm11, %v608_v54 }
 0x2da   :  { %829 = vmatpush.bf16.msrb.mxu1 %v2588_v62  ;;  %852 = vmatpush.bf16.msrb.mxu2 %v2492_v26 }
 0x2dd   :  { %v2304_v21 = vpop.eup %2303 }
 0x2de   :  { %830 = vmatpush.bf16.msrb.mxu1 %v2599_v3  ;;  %853 = vmatpush.bf16.msrb.mxu2 %v2517_v36  ;;  %v671_v17 = vadd.f32 1.0, %v2304_v21 }
 0x2e0   :  { %2305 = vrcp.f32 %v671_v17  ;;  %v683_v51 = vand.u32 2147483648, %v671_v17  ;;  %vm677_vm6 = vweird.f32 %v671_v17  ;;  %v681_v53 = vand.u32 2147483647, %v671_v17 }
 0x2e2   :  { %v684_v5 = vor.u32 1.1754944e-38, %v683_v51  ;;  %vm682_vm8 = vcmp.eq.f32.partialorder %v681_v53, 8.507059e+37 }
 0x2e6   :  { %v2306_v25 = vpop.eup %2305 }
 0x2e7   :  { %v673_v32 = vmul.f32 %v2306_v25, %v671_v17  ;;  %vm678_vm5 = vweird.f32 %v2306_v25 }
 0x2e8   :  { %vm679_vm7 = vmor %vm677_vm6, %vm678_vm5 }
 0x2e9   :  { %2170 = vmatmul.msk.bf16.vlgmr.msra.gmra.mxu1 %vm157_vm11, %v2776_v44  ;;  %v690_v44 = vadd.f32 %v688_v27, %v2610_v10  ;;  %v674_v15 = vsub.f32 1.0, %v673_v32 }
 0x2ea   :  { %891 = vmatpush.bf16.msra.mxu1 %v2502_v30 }
 0x2eb   :  { %v2169_v18 = vmul.f32 -1.442695, %v690_v44  ;;  %v675_v31 = vmul.f32 %v2306_v25, %v674_v15 }
 0x2ed   :  { %2307 = vpow2.f32 %v2169_v18  ;;  %v676_v48 = vadd.f32 %v2306_v25, %v675_v31 }
 0x2ee   :  { %892 = vmatpush.bf16.msra.mxu1 %v2544_v46 }
 0x2ef   :  { %v680_v63 = vsel %vm679_vm7, %v2306_v25, %v676_v48 }
 0x2f0   :  { %v685_v16 = vsel %vm682_vm8, %v684_v5, %v680_v63 }
 0x2f3   :  { %v2308_v35 = vpop.eup %2307 }
 0x2f4   :  { %v694_v59 = vadd.f32 1.0, %v2308_v35 }
 0x2f6   :  { %2309 = vrcp.f32 %v694_v59  ;;  %v706_v27 = vand.u32 2147483648, %v694_v59  ;;  %vm700_vm10 = vweird.f32 %v694_v59  ;;  %v704_v21 = vand.u32 2147483647, %v694_v59 }
 0x2f8   :  { %v707_v32 = vor.u32 1.1754944e-38, %v706_v27  ;;  %vm705_vm13 = vcmp.eq.f32.partialorder %v704_v21, 8.507059e+37 }
 0x2f9   :  { %2176 = vmatmul.msk.bf16.vlgmr.msrb.gmra.mxu1 %vm157_vm11, %v608_v54 }
 0x2fa   :  { %1050 = vmatpush.bf16.msrb.mxu1 %v2635_v24 }
 0x2fc   :  { %v2310_v34 = vpop.eup %2309 }
 0x2fd   :  { %v696_v1 = vmul.f32 %v2310_v34, %v694_v59  ;;  %vm701_vm9 = vweird.f32 %v2310_v34 }
 0x2fe   :  { %1051 = vmatpush.bf16.msrb.mxu1 %v2664_v40  ;;  %vm702_vm12 = vmor %vm700_vm10, %vm701_vm9 }
 0x2ff   :  { %v697_v20 = vsub.f32 1.0, %v696_v1 }
 0x301   :  { %v698_v61 = vmul.f32 %v2310_v34, %v697_v20 }
 0x303   :  { %v699_v8 = vadd.f32 %v2310_v34, %v698_v61 }
 0x305   :  { %v703_v18 = vsel %vm702_vm12, %v2310_v34, %v699_v8 }
 0x306   :  { %v708_v15 = vsel %vm705_vm13, %v707_v32, %v703_v18 }
 0x356   :  { %v2828_v13 = vpop.f32.mrf.mxu1 }
 0x35c   :  { %v2830_v42 = vpop.f32.mrf.mxu2 }
 0x35e   :  { %v623_v56 = vpop.f32.mrf.mxu1 }
 0x364   :  { %v636_v49 = vpop.f32.mrf.mxu2 }
 0x366   :  { %v719_v60 = vpop.f32.mrf.mxu1 }
 0x367   :  { %v720_v0 = vadd.f32 %v2678_v50, %v719_v60 }
 0x369   :  { %v724_v7 = vrot.slane %v720_v0, 4 }
 0x36b   :  { %v726_v58 = vmul.f32 %v724_v7, %v685_v16 }
 0x36d   :  { %v727_v6 = vadd.f32 %v726_v58, %v2685_v9 }
 0x36e   :  { %v721_v54 = vpop.f32.mrf.mxu1 }
 0x36f   :  { %2311 = vtanh.f32 %v727_v6 }
 0x375   :  { %v2312_v12 = vpop.eup %2311 }
 0x376   :  { %v730_v44 = vrot.slane %v2312_v12, 2  ;;  %v2834_v17 = vpop.f32.mrf.mxu1 }
 0x378   :  { %v732_v25 = vsub.f32 %v2772_v41, %v730_v44 }
 0x37a   :  { %v734_v35 = vrot.slane %v732_v25, 6 }
 0x37c   :  { %v736_v56 = vmul.f32 %v734_v35, %v708_v15 }
 0x37e   :  { %v2837_v31 = vadd.f32 %v2312_v12, %v736_v56  ;;  %v834_v48 = vpop.f32.mrf.mxu1 }
 0x380   :  { %v738_v49 = vpack.c.bf16 %v2837_v31, %v2837_v31 }
 0x382   :  { %v2841_v51 = vrot.slane %v738_v49, 2 }
 0x384   :  { %2171 = vmatmul.msk.bf16.vlgmr.msra.gmra.mxu2 %vm157_vm11, %v2841_v51  ;;  %2173 = vmatmul.msk.bf16.vlgmr.msra.gmra.mxu3 %vm157_vm11, %v2841_v51 }
 0x385   :  { %2175 = vmatmul.msk.bf16.vlgmr.msrb.gmra.mxu0 %vm157_vm11, %v2841_v51  ;;  %2180 = vmatmul.msk.bf16.vlgmr.msra.gmra.mxu1 %vm157_vm11, %v2841_v51 }
 0x386   :  { %950 = vmatpush.bf16.msra.mxu2 %v2534_v43  ;;  %984 = vmatpush.bf16.msra.mxu3 %v2622_v19 }
 0x387   :  { %1017 = vmatpush.bf16.msrb.mxu0 %v2633_v23  ;;  %1112 = vmatpush.bf16.msra.mxu1 %v2500_v29 }
 0x38a   :  { %951 = vmatpush.bf16.msra.mxu2 %v2549_v47  ;;  %985 = vmatpush.bf16.msra.mxu3 %v2649_v33 }
 0x38b   :  { %1018 = vmatpush.bf16.msrb.mxu0 %v2662_v39  ;;  %1113 = vmatpush.bf16.msra.mxu1 %v2541_v45 }
 0x395   :  { %2179 = vmatmul.msk.bf16.vlgmr.msra.gmra.mxu0 %vm157_vm11, %v2841_v51 }
 0x396   :  { %1099 = vmatpush.bf16.msra.mxu0 %v2561_v52 }
 0x39a   :  { %1100 = vmatpush.bf16.msra.mxu0 %v2570_v55 }
 0x402   :  { %v819_v41 = vpop.f32.mrf.mxu0  ;;  %v2863_v59 = vpop.f32.mrf.mxu1 }
 0x407   :  { %v753_v34 = vpop.f32.mrf.mxu2  ;;  %v786_v53 = vpop.f32.mrf.mxu3 }
 0x408   :  { %v754_v60 = vadd.f32 %v753_v34, %v2828_v13  ;;  %v787_v63 = vadd.f32 %v786_v53, %v2830_v42  ;;  %v833_v34 = vadd.f32 %v2734_v14, %v2834_v17 }
 0x40a   :  { %v757_v0 = vadd.f32 %v2719_v37, %v754_v60  ;;  %v790_v1 = vadd.f32 %v2724_v38, %v787_v63  ;;  %v821_v5 = vpop.f32.mrf.mxu0  ;;  %v896_v7 = vpop.f32.mrf.mxu1  ;;  %v820_v63 = vadd.f32 %v2740_v22, %v819_v41 }
 0x40c   :  { %v2172_v16 = vmul.f32 -1.442695, %v757_v0  ;;  %v2174_v58 = vmul.f32 -1.442695, %v790_v1 }
 0x40e   :  { %2313 = vpow2.f32 %v2172_v16 }
 0x40f   :  { %2315 = vpow2.f32 %v2174_v58  ;;  %v755_v20 = vpop.f32.mrf.mxu2  ;;  %v788_v6 = vpop.f32.mrf.mxu3 }
 0x412   :  { %v881_v54 = vpop.f32.mrf.mxu0 }
 0x414   :  { %v2314_v61 = vpop.eup %2313 }
 0x415   :  { %v2316_v8 = vpop.eup %2315  ;;  %v761_v12 = vadd.f32 1.0, %v2314_v61 }
 0x416   :  { %v794_v27 = vadd.f32 1.0, %v2316_v8 }
 0x417   :  { %2317 = vrcp.f32 %v761_v12  ;;  %v773_v25 = vand.u32 2147483648, %v761_v12  ;;  %v771_v15 = vand.u32 2147483647, %v761_v12  ;;  %vm767_vm15 = vweird.f32 %v761_v12 }
 0x418   :  { %2319 = vrcp.f32 %v794_v27  ;;  %v806_v16 = vand.u32 2147483648, %v794_v27  ;;  %vm800_vm3 = vweird.f32 %v794_v27  ;;  %v804_v58 = vand.u32 2147483647, %v794_v27 }
 0x419   :  { %v774_v48 = vor.u32 1.1754944e-38, %v773_v25  ;;  %vm772_vm1 = vcmp.eq.f32.partialorder %v771_v15, 8.507059e+37 }
 0x41a   :  { %v883_v13 = vpop.f32.mrf.mxu0  ;;  %v807_v61 = vor.u32 1.1754944e-38, %v806_v16  ;;  %vm805_vm5 = vcmp.eq.f32.partialorder %v804_v58, 8.507059e+37 }
 0x41d   :  { %v2318_v42 = vpop.eup %2317 }
 0x41e   :  { %v2320_v21 = vpop.eup %2319  ;;  %v763_v44 = vmul.f32 %v2318_v42, %v761_v12  ;;  %vm768_vm14 = vweird.f32 %v2318_v42 }
 0x41f   :  { %v796_v32 = vmul.f32 %v2320_v21, %v794_v27  ;;  %vm769_vm0 = vmor %vm767_vm15, %vm768_vm14  ;;  %vm801_vm2 = vweird.f32 %v2320_v21 }
 0x420   :  { %v764_v18 = vsub.f32 1.0, %v763_v44  ;;  %vm802_vm4 = vmor %vm800_vm3, %vm801_vm2 }
 0x421   :  { %v797_v49 = vsub.f32 1.0, %v796_v32 }
 0x422   :  { %v765_v35 = vmul.f32 %v2318_v42, %v764_v18 }
 0x423   :  { %v798_v1 = vmul.f32 %v2320_v21, %v797_v49 }
 0x424   :  { %v766_v56 = vadd.f32 %v2318_v42, %v765_v35 }
 0x425   :  { %v799_v7 = vadd.f32 %v2320_v21, %v798_v1 }
 0x426   :  { %v770_v53 = vsel %vm769_vm0, %v2318_v42, %v766_v56 }
 0x427   :  { %v775_v60 = vsel %vm772_vm1, %v774_v48, %v770_v53  ;;  %v803_v20 = vsel %vm802_vm4, %v2320_v21, %v799_v7  ;;  %v922_v21 = vrot.slane %v2863_v59, 2 }
 0x428   :  { %v836_v0 = vmul.f32 %v833_v34, %v775_v60  ;;  %v808_v8 = vsel %vm805_vm5, %v807_v61, %v803_v20 }
 0x42a   :  { %v837_v5 = vadd.f32 %v836_v0, %v820_v63 }
 0x42c   :  { %2321 = vtanh.f32 %v837_v5 }
 0x432   :  { %v2322_v6 = vpop.eup %2321 }
 0x433   :  { %v839_v17 = vsub.f32 %v2808_v11, %v2322_v6  ;;  %v899_v11 = vrot.slane %v881_v54, 2 }
 0x435   :  { %v840_v12 = vmul.f32 %v839_v17, %v808_v8  ;;  %v901_v27 = vadd.f32 %v899_v11, %v2597_v2 }
 0x437   :  { %v2873_v13 = vadd.f32 %v2322_v6, %v840_v12  ;;  %v2181_v42 = vmul.f32 -1.442695, %v901_v27 }
 0x439   :  { %v842_v41 = vpack.c.bf16 %v2873_v13, %v2873_v13  ;;  %2323 = vpow2.f32 %v2181_v42 }
 0x43b   :  { %2177 = vmatmul.msk.bf16.vlgmr.msrb.gmra.mxu2 %vm157_vm11, %v842_v41  ;;  %2178 = vmatmul.msk.bf16.vlgmr.msrb.gmra.mxu3 %vm157_vm11, %v842_v41 }
 0x43c   :  { %1063 = vmatpush.bf16.msrb.mxu2 %v2588_v62  ;;  %1086 = vmatpush.bf16.msrb.mxu3 %v2492_v26 }
 0x43f   :  { %v2324_v44 = vpop.eup %2323 }
 0x440   :  { %1064 = vmatpush.bf16.msrb.mxu2 %v2599_v3  ;;  %1087 = vmatpush.bf16.msrb.mxu3 %v2517_v36  ;;  %v905_v18 = vadd.f32 1.0, %v2324_v44 }
 0x442   :  { %2325 = vrcp.f32 %v905_v18  ;;  %vm911_vm7 = vweird.f32 %v905_v18  ;;  %v915_v63 = vand.u32 2147483647, %v905_v18 }
 0x444   :  { %vm916_vm9 = vcmp.eq.f32.partialorder %v915_v63, 8.507059e+37 }
 0x448   :  { %v2326_v32 = vpop.eup %2325 }
 0x449   :  { %v907_v56 = vmul.f32 %v2326_v32, %v905_v18  ;;  %vm912_vm6 = vweird.f32 %v2326_v32 }
 0x44a   :  { %vm913_vm8 = vmor %vm911_vm7, %vm912_vm6 }
 0x44b   :  { %2183 = vmatmul.msk.bf16.vlgmr.msra.gmra.mxu2 %vm157_vm11, %v2841_v51  ;;  %v924_v51 = vadd.f32 %v922_v21, %v2610_v10  ;;  %v908_v2 = vsub.f32 1.0, %v907_v56  ;;  %v917_v10 = vand.u32 2147483648, %v905_v18 }
 0x44c   :  { %1125 = vmatpush.bf16.msra.mxu2 %v2502_v30 }
 0x44d   :  { %v2182_v25 = vmul.f32 -1.442695, %v924_v51  ;;  %v909_v59 = vmul.f32 %v2326_v32, %v908_v2  ;;  %v918_v16 = vor.u32 1.1754944e-38, %v917_v10 }
 0x44f   :  { %2327 = vpow2.f32 %v2182_v25  ;;  %v910_v53 = vadd.f32 %v2326_v32, %v909_v59 }
 0x450   :  { %1126 = vmatpush.bf16.msra.mxu2 %v2544_v46 }
 0x451   :  { %v914_v1 = vsel %vm913_vm8, %v2326_v32, %v910_v53 }
 0x452   :  { %v919_v20 = vsel %vm916_vm9, %v918_v16, %v914_v1 }
 0x455   :  { %v2328_v54 = vpop.eup %2327 }
 0x456   :  { %v928_v48 = vadd.f32 1.0, %v2328_v54 }
 0x458   :  { %2329 = vrcp.f32 %v928_v48  ;;  %v940_v27 = vand.u32 2147483648, %v928_v48  ;;  %vm934_vm12 = vweird.f32 %v928_v48  ;;  %v938_v42 = vand.u32 2147483647, %v928_v48 }
 0x45a   :  { %v941_v18 = vor.u32 1.1754944e-38, %v940_v27  ;;  %vm939_vm14 = vcmp.eq.f32.partialorder %v938_v42, 8.507059e+37 }
 0x45b   :  { %2189 = vmatmul.msk.bf16.vlgmr.msrb.gmra.mxu2 %vm157_vm11, %v842_v41 }
 0x45c   :  { %1273 = vmatpush.bf16.msrb.mxu2 %v2635_v24 }
 0x45e   :  { %v2330_v60 = vpop.eup %2329 }
 0x45f   :  { %v930_v7 = vmul.f32 %v2330_v60, %v928_v48  ;;  %vm935_vm10 = vweird.f32 %v2330_v60 }
 0x460   :  { %1274 = vmatpush.bf16.msrb.mxu2 %v2664_v40  ;;  %vm936_vm13 = vmor %vm934_vm12, %vm935_vm10 }
 0x461   :  { %v931_v61 = vsub.f32 1.0, %v930_v7 }
 0x463   :  { %v932_v12 = vmul.f32 %v2330_v60, %v931_v61 }
 0x465   :  { %v933_v41 = vadd.f32 %v2330_v60, %v932_v12 }
 0x467   :  { %v937_v44 = vsel %vm936_vm13, %v2330_v60, %v933_v41 }
 0x4be   :  { %v2893_v35 = vpop.f32.mrf.mxu2  ;;  %v2895_v15 = vpop.f32.mrf.mxu3 }
 0x4c6   :  { %v857_v49 = vpop.f32.mrf.mxu2  ;;  %v870_v34 = vpop.f32.mrf.mxu3 }
 0x4ce   :  { %v953_v0 = vpop.f32.mrf.mxu2 }
 0x4cf   :  { %v954_v5 = vadd.f32 %v2678_v50, %v953_v0 }
 0x4d1   :  { %v958_v58 = vrot.slane %v954_v5, 2 }
 0x4d3   :  { %v960_v6 = vmul.f32 %v958_v58, %v919_v20 }
 0x4d5   :  { %v961_v17 = vadd.f32 %v960_v6, %v2685_v9  ;;  %v942_v9 = vsel %vm939_vm14, %v941_v18, %v937_v44 }
 0x4d6   :  { %v955_v8 = vpop.f32.mrf.mxu2 }
 0x4d7   :  { %2331 = vtanh.f32 %v961_v17 }
 0x4dd   :  { %v2332_v11 = vpop.eup %2331 }
 0x4de   :  { %v964_v21 = vrot.slane %v2332_v11, 2  ;;  %v2899_v50 = vpop.f32.mrf.mxu2 }
 0x4df   :  { %v1067_v18 = vadd.f32 %v2734_v14, %v2899_v50 }
 0x4e0   :  { %v966_v51 = vsub.f32 %v2837_v31, %v964_v21 }
 0x4e2   :  { %v968_v25 = vrot.slane %v966_v51, 6 }
 0x4e4   :  { %v970_v32 = vmul.f32 %v968_v25, %v942_v9 }
 0x4e6   :  { %v2902_v56 = vadd.f32 %v2332_v11, %v970_v32  ;;  %v1068_v54 = vpop.f32.mrf.mxu2 }
 0x4e8   :  { %v972_v2 = vpack.c.bf16 %v2902_v56, %v2902_v56 }
 0x4ea   :  { %v2906_v49 = vrot.slane %v972_v2, 3 }
 0x4ec   :  { %2184 = vmatmul.msk.bf16.vlgmr.msra.gmra.mxu3 %vm157_vm11, %v2906_v49  ;;  %2186 = vmatmul.msk.bf16.vlgmr.msrb.gmra.mxu0 %vm157_vm11, %v2906_v49 }
 0x4ed   :  { %2188 = vmatmul.msk.bf16.vlgmr.msrb.gmra.mxu1 %vm157_vm11, %v2906_v49  ;;  %2193 = vmatmul.msk.bf16.vlgmr.msra.gmra.mxu2 %vm157_vm11, %v2906_v49 }
 0x4ee   :  { %1178 = vmatpush.bf16.msra.mxu3 %v2534_v43  ;;  %1207 = vmatpush.bf16.msrb.mxu0 %v2622_v19 }
 0x4ef   :  { %1240 = vmatpush.bf16.msrb.mxu1 %v2633_v23  ;;  %1335 = vmatpush.bf16.msra.mxu2 %v2500_v29 }
 0x4f2   :  { %1179 = vmatpush.bf16.msra.mxu3 %v2549_v47  ;;  %1208 = vmatpush.bf16.msrb.mxu0 %v2649_v33 }
 0x4f3   :  { %1241 = vmatpush.bf16.msrb.mxu1 %v2662_v39  ;;  %1336 = vmatpush.bf16.msra.mxu2 %v2541_v45 }
 0x4fd   :  { %2192 = vmatmul.msk.bf16.vlgmr.msra.gmra.mxu1 %vm157_vm11, %v2906_v49 }
 0x4fe   :  { %1322 = vmatpush.bf16.msra.mxu1 %v2561_v52 }
 0x502   :  { %1323 = vmatpush.bf16.msra.mxu1 %v2570_v55 }
 0x569   :  { %v1020_v31 = vpop.f32.mrf.mxu0 }
 0x56a   :  { %v1021_v48 = vadd.f32 %v1020_v31, %v2895_v15  ;;  %v1053_v34 = vpop.f32.mrf.mxu1 }
 0x56b   :  { %v1054_v32 = vadd.f32 %v2740_v22, %v1053_v34 }
 0x56c   :  { %v1024_v59 = vadd.f32 %v2724_v38, %v1021_v48 }
 0x56e   :  { %v2187_v53 = vmul.f32 -1.442695, %v1024_v59 }
 0x56f   :  { %v987_v10 = vpop.f32.mrf.mxu3 }
 0x570   :  { %v988_v60 = vadd.f32 %v987_v10, %v2893_v35  ;;  %v2931_v63 = vpop.f32.mrf.mxu2  ;;  %2333 = vpow2.f32 %v2187_v53 }
 0x571   :  { %v1022_v0 = vpop.f32.mrf.mxu0 }
 0x572   :  { %v991_v1 = vadd.f32 %v2719_v37, %v988_v60  ;;  %v1055_v5 = vpop.f32.mrf.mxu1 }
 0x574   :  { %v2185_v7 = vmul.f32 -1.442695, %v991_v1 }
 0x576   :  { %2335 = vpow2.f32 %v2185_v7  ;;  %v2334_v20 = vpop.eup %2333 }
 0x577   :  { %v989_v16 = vpop.f32.mrf.mxu3  ;;  %v1028_v61 = vadd.f32 1.0, %v2334_v20 }
 0x578   :  { %v1130_v58 = vpop.f32.mrf.mxu2 }
 0x579   :  { %v1040_v59 = vand.u32 2147483648, %v1028_v61  ;;  %vm1034_vm4 = vweird.f32 %v1028_v61  ;;  %v1038_v53 = vand.u32 2147483647, %v1028_v61  ;;  %v2426_v58 = vld [vmem:[%s3287_s0 + $0xc8] ss:$0 sm:$0xff] }
 0x57a   :  { %v1115_v15 = vpop.f32.mrf.mxu1  ;;  %v2966_v20 = vadd.f32 %v2426_v58, %v2575_v57 }
 0x57b   :  { %v1041_v0 = vor.u32 1.1754944e-38, %v1040_v59  ;;  %vm1039_vm6 = vcmp.eq.f32.partialorder %v1038_v53, 8.507059e+37 }
 0x57c   :  { %v2336_v6 = vpop.eup %2335 }
 0x57d   :  { %v995_v38 = vadd.f32 1.0, %v2336_v6  ;;  %v1152_v6 = vadd.f32 %v2931_v63, %v2966_v20 }
 0x57f   :  { %2337 = vrcp.f32 %v995_v38  ;;  %v1007_v37 = vand.u32 2147483648, %v995_v38  ;;  %v1005_v42 = vand.u32 2147483647, %v995_v38  ;;  %vm1001_vm0 = vweird.f32 %v995_v38 }
 0x580   :  { %2339 = vrcp.f32 %v1028_v61 }
 0x581   :  { %v1008_v51 = vor.u32 1.1754944e-38, %v1007_v37  ;;  %vm1006_vm2 = vcmp.eq.f32.partialorder %v1005_v42, 8.507059e+37 }
 0x582   :  { %v1117_v17 = vpop.f32.mrf.mxu1 }
 0x585   :  { %v2338_v35 = vpop.eup %2337 }
 0x586   :  { %v2340_v8 = vpop.eup %2339  ;;  %v997_v12 = vmul.f32 %v2338_v35, %v995_v38  ;;  %vm1002_vm15 = vweird.f32 %v2338_v35  ;;  %v2195_v38 = vmul.f32 -1.442695, %v1152_v6 }
 0x587   :  { %v1030_v11 = vmul.f32 %v2340_v8, %v1028_v61  ;;  %vm1003_vm1 = vmor %vm1001_vm0, %vm1002_vm15  ;;  %vm1035_vm3 = vweird.f32 %v2340_v8 }
 0x588   :  { %v998_v41 = vsub.f32 1.0, %v997_v12  ;;  %vm1036_vm5 = vmor %vm1034_vm4, %vm1035_vm3 }
 0x589   :  { %v1031_v44 = vsub.f32 1.0, %v1030_v11 }
 0x58a   :  { %v999_v27 = vmul.f32 %v2338_v35, %v998_v41 }
 0x58b   :  { %v1032_v2 = vmul.f32 %v2340_v8, %v1031_v44 }
 0x58c   :  { %v1000_v21 = vadd.f32 %v2338_v35, %v999_v27 }
 0x58d   :  { %v1033_v48 = vadd.f32 %v2340_v8, %v1032_v2  ;;  %v2428_v2 = vld [vmem:[%s3287_s0 + $0xd0] ss:$0 sm:$0xff] }
 0x58e   :  { %v1004_v25 = vsel %vm1003_vm1, %v2338_v35, %v1000_v21 }
 0x58f   :  { %v1009_v9 = vsel %vm1006_vm2, %v1008_v51, %v1004_v25  ;;  %v1037_v10 = vsel %vm1036_vm5, %v2340_v8, %v1033_v48 }
 0x590   :  { %v1070_v54 = vmul.f32 %v1067_v18, %v1009_v9  ;;  %v1042_v50 = vsel %vm1039_vm6, %v1041_v0, %v1037_v10  ;;  %v2977_v9 = vld [vmem:[%s3287_s0 + $0xd8] ss:$0 sm:$0xff] }
 0x592   :  { %v1071_v31 = vadd.f32 %v1070_v54, %v1054_v32 }
 0x594   :  { %2341 = vtanh.f32 %v1071_v31  ;;  %v2984_v31 = vadd.f32 %v2428_v2, %v2601_v4 }
 0x59a   :  { %v2342_v60 = vpop.eup %2341 }
 0x59b   :  { %v1073_v14 = vsub.f32 %v2873_v13, %v2342_v60  ;;  %v2425_v13 = vld [vmem:[%s3287_s0 + $0xc0] ss:$0 sm:$0xff] }
 0x59c   :  { %v2959_v34 = vadd.f32 %v2425_v13, %v2714_v28 }
 0x59d   :  { %v1074_v1 = vmul.f32 %v1073_v14, %v1042_v50 }
 0x59e   :  { %v1132_v7 = vadd.f32 %v1115_v15, %v2959_v34 }
 0x59f   :  { %v2938_v5 = vadd.f32 %v2342_v60, %v1074_v1 }
 0x5a1   :  { %v1076_v22 = vpack.c.bf16 %v2938_v5, %v2938_v5 }
 0x5a3   :  { %2190 = vmatmul.msk.bf16.vlgmr.msrb.gmra.mxu3 %vm157_vm11, %v1076_v22  ;;  %2191 = vmatmul.msk.bf16.vlgmr.msra.gmra.mxu0 %vm157_vm11, %v1076_v22 }
 0x5a4   :  { %1286 = vmatpush.bf16.msrb.mxu3 %v2588_v62  ;;  %1309 = vmatpush.bf16.msra.mxu0 %v2492_v26 }
 0x5a8   :  { %1287 = vmatpush.bf16.msrb.mxu3 %v2599_v3  ;;  %1310 = vmatpush.bf16.msra.mxu0 %v2517_v36 }
 0x5b3   :  { %2196 = vmatmul.msk.bf16.vlgmr.msra.gmra.mxu3 %vm157_vm11, %v2906_v49  ;;  %v2194_v49 = vmul.f32 -1.442695, %v1132_v7 }
 0x5b4   :  { %1348 = vmatpush.bf16.msra.mxu3 %v2502_v30 }
 0x5b5   :  { %2343 = vpow2.f32 %v2194_v49 }
 0x5b8   :  { %1349 = vmatpush.bf16.msra.mxu3 %v2544_v46 }
 0x5bb   :  { %v2344_v16 = vpop.eup %2343 }
 0x5bc   :  { %v1136_v61 = vadd.f32 1.0, %v2344_v16 }
 0x5be   :  { %2345 = vrcp.f32 %v1136_v61  ;;  %v1148_v63 = vand.u32 2147483648, %v1136_v61  ;;  %vm1142_vm8 = vweird.f32 %v1136_v61  ;;  %v1146_v21 = vand.u32 2147483647, %v1136_v61 }
 0x5bf   :  { %2347 = vpow2.f32 %v2195_v38 }
 0x5c0   :  { %v1149_v18 = vor.u32 1.1754944e-38, %v1148_v63  ;;  %vm1147_vm10 = vcmp.eq.f32.partialorder %v1146_v21, 8.507059e+37 }
 0x5c3   :  { %2202 = vmatmul.msk.bf16.vlgmr.msrb.gmra.mxu3 %vm157_vm11, %v1076_v22 }
 0x5c4   :  { %1507 = vmatpush.bf16.msrb.mxu3 %v2635_v24  ;;  %v2346_v15 = vpop.eup %2345 }
 0x5c5   :  { %v1138_v17 = vmul.f32 %v2346_v15, %v1136_v61  ;;  %v2348_v35 = vpop.eup %2347  ;;  %vm1143_vm7 = vweird.f32 %v2346_v15 }
 0x5c6   :  { %v1156_v41 = vadd.f32 1.0, %v2348_v35  ;;  %vm1144_vm9 = vmor %vm1142_vm8, %vm1143_vm7 }
 0x5c7   :  { %v1139_v11 = vsub.f32 1.0, %v1138_v17 }
 0x5c8   :  { %1508 = vmatpush.bf16.msrb.mxu3 %v2664_v40  ;;  %2349 = vrcp.f32 %v1156_v41  ;;  %v1168_v50 = vand.u32 2147483648, %v1156_v41  ;;  %vm1162_vm13 = vweird.f32 %v1156_v41  ;;  %v1166_v1 = vand.u32 2147483647, %v1156_v41 }
 0x5c9   :  { %v1140_v57 = vmul.f32 %v2346_v15, %v1139_v11 }
 0x5ca   :  { %v1169_v49 = vor.u32 1.1754944e-38, %v1168_v50  ;;  %vm1167_vm15 = vcmp.eq.f32.partialorder %v1166_v1, 8.507059e+37 }
 0x5cb   :  { %v1141_v27 = vadd.f32 %v2346_v15, %v1140_v57  ;;  %v3027_v57 = vld [vmem:[%s3287_s0 + $0x1a8] ss:$0 sm:$0xff] }
 0x5cd   :  { %v1145_v44 = vsel %vm1144_vm9, %v2346_v15, %v1141_v27 }
 0x5ce   :  { %v2350_v42 = vpop.eup %2349  ;;  %v1150_v54 = vsel %vm1147_vm10, %v1149_v18, %v1145_v44 }
 0x5cf   :  { %v1158_v51 = vmul.f32 %v2350_v42, %v1156_v41  ;;  %vm1163_vm12 = vweird.f32 %v2350_v42  ;;  %v3021_v41 = vld [vmem:[%s3287_s0 + $0x1a0] ss:$0 sm:$0xff] }
 0x5d0   :  { %vm1164_vm14 = vmor %vm1162_vm13, %vm1163_vm12 }
 0x5d1   :  { %v1159_v59 = vsub.f32 1.0, %v1158_v51 }
 0x5d3   :  { %v1160_v10 = vmul.f32 %v2350_v42, %v1159_v59 }
 0x5d5   :  { %v1161_v0 = vadd.f32 %v2350_v42, %v1160_v10 }
 0x5d7   :  { %v1165_v13 = vsel %vm1164_vm14, %v2350_v42, %v1161_v0 }
 0x5d8   :  { %v1170_v58 = vsel %vm1167_vm15, %v1169_v49, %v1165_v13 }
 0x620   :  { %v2970_v28 = vpop.f32.mrf.mxu0 }
 0x626   :  { %v2972_v8 = vpop.f32.mrf.mxu3 }
 0x628   :  { %v1104_v12 = vpop.f32.mrf.mxu0 }
 0x62e   :  { %v1091_v37 = vpop.f32.mrf.mxu3 }
 0x636   :  { %v1181_v25 = vpop.f32.mrf.mxu3 }
 0x637   :  { %v1182_v32 = vadd.f32 %v2977_v9, %v1181_v25 }
 0x639   :  { %v1185_v48 = vmul.f32 %v1182_v32, %v1150_v54 }
 0x63b   :  { %v1186_v53 = vadd.f32 %v1185_v48, %v2984_v31 }
 0x63d   :  { %2351 = vtanh.f32 %v1186_v53 }
 0x63e   :  { %v1183_v60 = vpop.f32.mrf.mxu3 }
 0x643   :  { %v2352_v14 = vpop.eup %2351 }
 0x644   :  { %v1189_v22 = vrot.slane %v2352_v14, 2 }
 0x646   :  { %v1191_v7 = vsub.f32 %v2902_v56, %v1189_v22  ;;  %v2988_v4 = vpop.f32.mrf.mxu3 }
 0x648   :  { %v1193_v16 = vrot.slane %v1191_v7, 6  ;;  %v3035_v7 = vld [vmem:[%s3287_s0 + $0x1b8] ss:$0 sm:$0xff] }
 0x649   :  { %v1290_v49 = vadd.f32 %v3035_v7, %v2988_v4 }
 0x64a   :  { %v1195_v6 = vmul.f32 %v1193_v16, %v1170_v58 }
 0x64c   :  { %v2990_v61 = vadd.f32 %v2352_v14, %v1195_v6 }
 0x64e   :  { %v2994_v38 = vpack.c.bf16 %v2990_v61, %v2990_v61  ;;  %v1291_v15 = vpop.f32.mrf.mxu3 }
 0x64f   :  { %v3042_v15 = vld [vmem:[%s3287_s0 + $0x1b0] ss:$0 sm:$0xff] }
 0x650   :  { %2197 = vmatmul.msk.bf16.vlgmr.msrb.gmra.mxu0 %vm157_vm11, %v2994_v38  ;;  %2199 = vmatmul.msk.bf16.vlgmr.msrb.gmra.mxu1 %vm157_vm11, %v2994_v38 }
 0x651   :  { %2201 = vmatmul.msk.bf16.vlgmr.msrb.gmra.mxu2 %vm157_vm11, %v2994_v38  ;;  %2206 = vmatmul.msk.bf16.vlgmr.msra.gmra.mxu3 %vm157_vm11, %v2994_v38 }
 0x652   :  { %1407 = vmatpush.bf16.msrb.mxu0 %v2534_v43  ;;  %1441 = vmatpush.bf16.msrb.mxu1 %v2622_v19 }
 0x653   :  { %1474 = vmatpush.bf16.msrb.mxu2 %v2633_v23  ;;  %1569 = vmatpush.bf16.msra.mxu3 %v2500_v29 }
 0x656   :  { %1408 = vmatpush.bf16.msrb.mxu0 %v2549_v47  ;;  %1442 = vmatpush.bf16.msrb.mxu1 %v2649_v33 }
 0x657   :  { %1475 = vmatpush.bf16.msrb.mxu2 %v2662_v39  ;;  %1570 = vmatpush.bf16.msra.mxu3 %v2541_v45 }
 0x661   :  { %2205 = vmatmul.msk.bf16.vlgmr.msra.gmra.mxu2 %vm157_vm11, %v2994_v38 }
 0x662   :  { %1556 = vmatpush.bf16.msra.mxu2 %v2561_v52 }
 0x666   :  { %1557 = vmatpush.bf16.msra.mxu2 %v2570_v55 }
 0x6cd   :  { %v1210_v56 = vpop.f32.mrf.mxu0  ;;  %v1243_v17 = vpop.f32.mrf.mxu1 }
 0x6ce   :  { %v1211_v35 = vadd.f32 %v1210_v56, %v2972_v8  ;;  %v1244_v12 = vadd.f32 %v1243_v17, %v2970_v28 }
 0x6d0   :  { %v1214_v11 = vadd.f32 %v3021_v41, %v1211_v35  ;;  %v1247_v37 = vadd.f32 %v3027_v57, %v1244_v12 }
 0x6d2   :  { %v2198_v27 = vmul.f32 -1.442695, %v1214_v11  ;;  %v2200_v63 = vmul.f32 -1.442695, %v1247_v37 }
 0x6d4   :  { %2353 = vpow2.f32 %v2198_v27  ;;  %v1276_v8 = vpop.f32.mrf.mxu2  ;;  %v3030_v42 = vpop.f32.mrf.mxu3 }
 0x6d5   :  { %2355 = vpow2.f32 %v2200_v63  ;;  %v1212_v28 = vpop.f32.mrf.mxu0  ;;  %v1245_v21 = vpop.f32.mrf.mxu1  ;;  %v1277_v56 = vadd.f32 %v3042_v15, %v1276_v8 }
 0x6da   :  { %v2354_v44 = vpop.eup %2353 }
 0x6db   :  { %v2356_v51 = vpop.eup %2355  ;;  %v1218_v18 = vadd.f32 1.0, %v2354_v44 }
 0x6dc   :  { %v1251_v25 = vadd.f32 1.0, %v2356_v51  ;;  %v1278_v32 = vpop.f32.mrf.mxu2  ;;  %v1353_v54 = vpop.f32.mrf.mxu3 }
 0x6dd   :  { %2357 = vrcp.f32 %v1218_v18  ;;  %v1230_v0 = vand.u32 2147483648, %v1218_v18  ;;  %v1228_v50 = vand.u32 2147483647, %v1218_v18  ;;  %vm1224_vm1 = vweird.f32 %v1218_v18 }
 0x6de   :  { %2359 = vrcp.f32 %v1251_v25  ;;  %v1263_v37 = vand.u32 2147483648, %v1251_v25  ;;  %vm1257_vm5 = vweird.f32 %v1251_v25  ;;  %v1261_v4 = vand.u32 2147483647, %v1251_v25 }
 0x6df   :  { %v1231_v13 = vor.u32 1.1754944e-38, %v1230_v0  ;;  %vm1229_vm3 = vcmp.eq.f32.partialorder %v1228_v50, 8.507059e+37  ;;  %v1379_v54 = vrot.slane %v3030_v42, 6 }
 0x6e0   :  { %v1264_v28 = vor.u32 1.1754944e-38, %v1263_v37  ;;  %vm1262_vm7 = vcmp.eq.f32.partialorder %v1261_v4, 8.507059e+37 }
 0x6e3   :  { %v2358_v2 = vpop.eup %2357 }
 0x6e4   :  { %v2360_v48 = vpop.eup %2359  ;;  %v1220_v59 = vmul.f32 %v2358_v2, %v1218_v18  ;;  %v1338_v53 = vpop.f32.mrf.mxu2  ;;  %vm1225_vm0 = vweird.f32 %v2358_v2 }
 0x6e5   :  { %v1253_v60 = vmul.f32 %v2360_v48, %v1251_v25  ;;  %vm1226_vm2 = vmor %vm1224_vm1, %vm1225_vm0  ;;  %vm1258_vm4 = vweird.f32 %v2360_v48 }
 0x6e6   :  { %v1221_v10 = vsub.f32 1.0, %v1220_v59  ;;  %vm1259_vm6 = vmor %vm1257_vm5, %vm1258_vm4 }
 0x6e7   :  { %v1254_v22 = vsub.f32 1.0, %v1253_v60 }
 0x6e8   :  { %v1222_v14 = vmul.f32 %v2358_v2, %v1221_v10 }
 0x6e9   :  { %v1255_v35 = vmul.f32 %v2360_v48, %v1254_v22 }
 0x6ea   :  { %v1223_v1 = vadd.f32 %v2358_v2, %v1222_v14 }
 0x6eb   :  { %v1256_v11 = vadd.f32 %v2360_v48, %v1255_v35 }
 0x6ec   :  { %v1227_v16 = vsel %vm1226_vm2, %v2358_v2, %v1223_v1  ;;  %v1340_v58 = vpop.f32.mrf.mxu2 }
 0x6ed   :  { %v1232_v6 = vsel %vm1229_vm3, %v1231_v13, %v1227_v16  ;;  %v1260_v27 = vsel %vm1259_vm6, %v2360_v48, %v1256_v11 }
 0x6ee   :  { %v1293_v17 = vmul.f32 %v1290_v49, %v1232_v6  ;;  %v1265_v44 = vsel %vm1262_vm7, %v1264_v28, %v1260_v27 }
 0x6f0   :  { %v1294_v12 = vadd.f32 %v1293_v17, %v1277_v56 }
 0x6f2   :  { %2361 = vtanh.f32 %v1294_v12 }
 0x6f8   :  { %v2362_v63 = vpop.eup %2361 }
 0x6f9   :  { %v1296_v21 = vsub.f32 %v2938_v5, %v2362_v63  ;;  %v1356_v5 = vrot.slane %v1338_v53, 6 }
 0x6fb   :  { %v1297_v51 = vmul.f32 %v1296_v21, %v1265_v44  ;;  %v1358_v25 = vadd.f32 %v1356_v5, %v2959_v34 }
 0x6fd   :  { %v3046_v18 = vadd.f32 %v2362_v63, %v1297_v51  ;;  %v2207_v32 = vmul.f32 -1.442695, %v1358_v25 }
 0x6ff   :  { %v1299_v8 = vpack.c.bf16 %v3046_v18, %v3046_v18  ;;  %2363 = vpow2.f32 %v2207_v32 }
 0x701   :  { %2203 = vmatmul.msk.bf16.vlgmr.msra.gmra.mxu0 %vm157_vm11, %v1299_v8  ;;  %2204 = vmatmul.msk.bf16.vlgmr.msra.gmra.mxu1 %vm157_vm11, %v1299_v8 }
 0x702   :  { %1520 = vmatpush.bf16.msra.mxu0 %v2588_v62  ;;  %1543 = vmatpush.bf16.msra.mxu1 %v2492_v26 }
 0x705   :  { %v2364_v2 = vpop.eup %2363 }
 0x706   :  { %1521 = vmatpush.bf16.msra.mxu0 %v2599_v3  ;;  %1544 = vmatpush.bf16.msra.mxu1 %v2517_v36  ;;  %v1362_v48 = vadd.f32 1.0, %v2364_v2 }
 0x708   :  { %2365 = vrcp.f32 %v1362_v48  ;;  %v1374_v16 = vand.u32 2147483648, %v1362_v48  ;;  %vm1368_vm9 = vweird.f32 %v1362_v48  ;;  %v1372_v6 = vand.u32 2147483647, %v1362_v48 }
 0x70a   :  { %v1375_v11 = vor.u32 1.1754944e-38, %v1374_v16  ;;  %vm1373_vm12 = vcmp.eq.f32.partialorder %v1372_v6, 8.507059e+37 }
 0x70e   :  { %v2366_v10 = vpop.eup %2365 }
 0x70f   :  { %v1364_v14 = vmul.f32 %v2366_v10, %v1362_v48  ;;  %vm1369_vm8 = vweird.f32 %v2366_v10 }
 0x710   :  { %vm1370_vm10 = vmor %vm1368_vm9, %vm1369_vm8 }
 0x711   :  { %2209 = vmatmul.msk.bf16.vlgmr.msrb.gmra.mxu0 %vm157_vm11, %v2994_v38  ;;  %v1381_v38 = vadd.f32 %v1379_v54, %v2966_v20  ;;  %v1365_v1 = vsub.f32 1.0, %v1364_v14 }
 0x712   :  { %1582 = vmatpush.bf16.msrb.mxu0 %v2502_v30 }
 0x713   :  { %v2208_v59 = vmul.f32 -1.442695, %v1381_v38  ;;  %v1366_v42 = vmul.f32 %v2366_v10, %v1365_v1 }
 0x715   :  { %2367 = vpow2.f32 %v2208_v59  ;;  %v1367_v49 = vadd.f32 %v2366_v10, %v1366_v42 }
 0x716   :  { %1583 = vmatpush.bf16.msrb.mxu0 %v2544_v46 }
 0x717   :  { %v1371_v17 = vsel %vm1370_vm10, %v2366_v10, %v1367_v49 }
 0x718   :  { %v1376_v4 = vsel %vm1373_vm12, %v1375_v11, %v1371_v17 }
 0x71b   :  { %v2368_v53 = vpop.eup %2367 }
 0x71c   :  { %v1385_v50 = vadd.f32 1.0, %v2368_v53 }
 0x71e   :  { %2369 = vrcp.f32 %v1385_v50  ;;  %v1397_v5 = vand.u32 2147483648, %v1385_v50  ;;  %vm1391_vm14 = vweird.f32 %v1385_v50  ;;  %v1395_v25 = vand.u32 2147483647, %v1385_v50 }
 0x720   :  { %v1398_v48 = vor.u32 1.1754944e-38, %v1397_v5  ;;  %vm1396_vm0 = vcmp.eq.f32.partialorder %v1395_v25, 8.507059e+37 }
 0x721   :  { %2215 = vmatmul.msk.bf16.vlgmr.msra.gmra.mxu0 %vm157_vm11, %v1299_v8 }
 0x722   :  { %1741 = vmatpush.bf16.msra.mxu0 %v2635_v24 }
 0x724   :  { %v2370_v58 = vpop.eup %2369 }
 0x725   :  { %v1387_v12 = vmul.f32 %v2370_v58, %v1385_v50  ;;  %vm1392_vm13 = vweird.f32 %v2370_v58 }
 0x726   :  { %1742 = vmatpush.bf16.msra.mxu0 %v2664_v40  ;;  %vm1393_vm15 = vmor %vm1391_vm14, %vm1392_vm13 }
 0x727   :  { %v1388_v63 = vsub.f32 1.0, %v1387_v12 }
 0x729   :  { %v1389_v44 = vmul.f32 %v2370_v58, %v1388_v63 }
 0x72b   :  { %v1390_v51 = vadd.f32 %v2370_v58, %v1389_v44 }
 0x72d   :  { %v1394_v2 = vsel %vm1393_vm15, %v2370_v58, %v1390_v51 }
 0x72e   :  { %v1399_v10 = vsel %vm1396_vm0, %v1398_v48, %v1394_v2 }
 0x77e   :  { %v3066_v60 = vpop.f32.mrf.mxu0  ;;  %v3068_v0 = vpop.f32.mrf.mxu1 }
 0x786   :  { %v1314_v22 = vpop.f32.mrf.mxu0  ;;  %v1327_v13 = vpop.f32.mrf.mxu1 }
 0x78e   :  { %v1410_v56 = vpop.f32.mrf.mxu0 }
 0x78f   :  { %v1411_v35 = vadd.f32 %v2977_v9, %v1410_v56 }
 0x791   :  { %v1415_v37 = vrot.slane %v1411_v35, 6 }
 0x793   :  { %v1417_v27 = vmul.f32 %v1415_v37, %v1376_v4 }
 0x795   :  { %v1418_v28 = vadd.f32 %v1417_v27, %v2984_v31 }
 0x796   :  { %v1412_v21 = vpop.f32.mrf.mxu0 }
 0x797   :  { %2371 = vtanh.f32 %v1418_v28 }
 0x79d   :  { %v2372_v8 = vpop.eup %2371 }
 0x79e   :  { %v1421_v32 = vrot.slane %v2372_v8, 2  ;;  %v3072_v54 = vpop.f32.mrf.mxu0 }
 0x7a0   :  { %v1423_v38 = vsub.f32 %v2990_v61, %v1421_v32  ;;  %v1524_v32 = vadd.f32 %v3035_v7, %v3072_v54 }
 0x7a2   :  { %v1425_v59 = vrot.slane %v1423_v38, 6 }
 0x7a4   :  { %v1427_v14 = vmul.f32 %v1425_v59, %v1399_v10 }
 0x7a6   :  { %v3075_v53 = vadd.f32 %v2372_v8, %v1427_v14  ;;  %v1525_v1 = vpop.f32.mrf.mxu0 }
 0x7a8   :  { %v1429_v22 = vpack.c.bf16 %v3075_v53, %v3075_v53 }
 0x7aa   :  { %v3079_v13 = vrot.slane %v1429_v22, 1 }
 0x7ac   :  { %2210 = vmatmul.msk.bf16.vlgmr.msrb.gmra.mxu1 %vm157_vm11, %v3079_v13  ;;  %2212 = vmatmul.msk.bf16.vlgmr.msrb.gmra.mxu2 %vm157_vm11, %v3079_v13 }
 0x7ad   :  { %2214 = vmatmul.msk.bf16.vlgmr.msrb.gmra.mxu3 %vm157_vm11, %v3079_v13  ;;  %2219 = vmatmul.msk.bf16.vlgmr.msrb.gmra.mxu0 %vm157_vm11, %v3079_v13 }
 0x7ae   :  { %1641 = vmatpush.bf16.msrb.mxu1 %v2534_v43  ;;  %1675 = vmatpush.bf16.msrb.mxu2 %v2622_v19 }
 0x7af   :  { %1708 = vmatpush.bf16.msrb.mxu3 %v2633_v23  ;;  %1803 = vmatpush.bf16.msrb.mxu0 %v2500_v29 }
 0x7b2   :  { %1642 = vmatpush.bf16.msrb.mxu1 %v2549_v47  ;;  %1676 = vmatpush.bf16.msrb.mxu2 %v2649_v33 }
 0x7b3   :  { %1709 = vmatpush.bf16.msrb.mxu3 %v2662_v39  ;;  %1804 = vmatpush.bf16.msrb.mxu0 %v2541_v45 }
 0x7bd   :  { %2218 = vmatmul.msk.bf16.vlgmr.msra.gmra.mxu3 %vm157_vm11, %v3079_v13 }
 0x7be   :  { %1790 = vmatpush.bf16.msra.mxu3 %v2561_v52 }
 0x7c2   :  { %1791 = vmatpush.bf16.msra.mxu3 %v2570_v55 }
 0x829   :  { %v1444_v61 = vpop.f32.mrf.mxu1 }
 0x82a   :  { %v1445_v50 = vadd.f32 %v1444_v61, %v3066_v60  ;;  %v3102_v42 = vpop.f32.mrf.mxu0 }
 0x82c   :  { %v1448_v29 = vadd.f32 %v3021_v41, %v1445_v50 }
 0x82e   :  { %v2211_v49 = vmul.f32 -1.442695, %v1448_v29 }
 0x82f   :  { %v1477_v16 = vpop.f32.mrf.mxu2 }
 0x830   :  { %2373 = vpow2.f32 %v2211_v49  ;;  %v1478_v58 = vadd.f32 %v1477_v16, %v3068_v0  ;;  %v1510_v45 = vpop.f32.mrf.mxu3 }
 0x831   :  { %v1446_v6 = vpop.f32.mrf.mxu1  ;;  %v1511_v10 = vadd.f32 %v3042_v15, %v1510_v45 }
 0x832   :  { %v1481_v56 = vadd.f32 %v3027_v57, %v1478_v58  ;;  %v1587_v17 = vpop.f32.mrf.mxu0 }
 0x834   :  { %v2213_v52 = vmul.f32 -1.442695, %v1481_v56 }
 0x836   :  { %v2374_v35 = vpop.eup %2373  ;;  %2375 = vpow2.f32 %v2213_v52 }
 0x837   :  { %v1452_v55 = vadd.f32 1.0, %v2374_v35  ;;  %v1479_v12 = vpop.f32.mrf.mxu2 }
 0x838   :  { %v1512_v60 = vpop.f32.mrf.mxu3 }
 0x839   :  { %2377 = vrcp.f32 %v1452_v55  ;;  %v1464_v0 = vand.u32 2147483648, %v1452_v55  ;;  %v1462_v44 = vand.u32 2147483647, %v1452_v55  ;;  %vm1458_vm2 = vweird.f32 %v1452_v55 }
 0x83b   :  { %v1465_v25 = vor.u32 1.1754944e-38, %v1464_v0  ;;  %vm1463_vm4 = vcmp.eq.f32.partialorder %v1462_v44, 8.507059e+37 }
 0x83c   :  { %v2376_v11 = vpop.eup %2375 }
 0x83d   :  { %v1485_v37 = vadd.f32 1.0, %v2376_v11 }
 0x83f   :  { %v2378_v4 = vpop.eup %2377  ;;  %2379 = vrcp.f32 %v1485_v37  ;;  %v1497_v50 = vand.u32 2147483648, %v1485_v37  ;;  %vm1491_vm6 = vweird.f32 %v1485_v37  ;;  %v1495_v29 = vand.u32 2147483647, %v1485_v37 }
 0x840   :  { %v1454_v27 = vmul.f32 %v2378_v4, %v1452_v55  ;;  %v1572_v63 = vpop.f32.mrf.mxu3  ;;  %vm1459_vm1 = vweird.f32 %v2378_v4 }
 0x841   :  { %vm1460_vm3 = vmor %vm1458_vm2, %vm1459_vm1  ;;  %v1498_v54 = vor.u32 1.1754944e-38, %v1497_v50  ;;  %vm1496_vm8 = vcmp.eq.f32.partialorder %v1495_v29, 8.507059e+37 }
 0x842   :  { %v1455_v28 = vsub.f32 1.0, %v1454_v27 }
 0x844   :  { %v1456_v21 = vmul.f32 %v2378_v4, %v1455_v28 }
 0x845   :  { %v2380_v51 = vpop.eup %2379 }
 0x846   :  { %v1487_v8 = vmul.f32 %v2380_v51, %v1485_v37  ;;  %v1457_v5 = vadd.f32 %v2378_v4, %v1456_v21  ;;  %vm1492_vm5 = vweird.f32 %v2380_v51 }
 0x847   :  { %vm1493_vm7 = vmor %vm1491_vm6, %vm1492_vm5 }
 0x848   :  { %v1488_v2 = vsub.f32 1.0, %v1487_v8  ;;  %v1461_v38 = vsel %vm1460_vm3, %v2378_v4, %v1457_v5  ;;  %v1574_v48 = vpop.f32.mrf.mxu3 }
 0x849   :  { %v1466_v59 = vsel %vm1463_vm4, %v1465_v25, %v1461_v38 }
 0x84a   :  { %v1527_v14 = vmul.f32 %v1524_v32, %v1466_v59  ;;  %v1489_v1 = vmul.f32 %v2380_v51, %v1488_v2 }
 0x84c   :  { %v1528_v22 = vadd.f32 %v1527_v14, %v1511_v10  ;;  %v1490_v61 = vadd.f32 %v2380_v51, %v1489_v1 }
 0x84e   :  { %2381 = vtanh.f32 %v1528_v22  ;;  %v1494_v49 = vsel %vm1493_vm7, %v2380_v51, %v1490_v61 }
 0x84f   :  { %v1499_v6 = vsel %vm1496_vm8, %v1498_v54, %v1494_v49 }
 0x854   :  { %v2382_v16 = vpop.eup %2381 }
 0x855   :  { %v1530_v58 = vsub.f32 %v3046_v18, %v2382_v16  ;;  %v1590_v18 = vrot.slane %v1572_v63, 4 }
 0x857   :  { %v1531_v56 = vmul.f32 %v1530_v58, %v1499_v6 }
 0x859   :  { %v3111_v17 = vadd.f32 %v2382_v16, %v1531_v56 }
 0x85b   :  { %v1533_v45 = vpack.c.bf16 %v3111_v17, %v3111_v17 }
 0x85d   :  { %2216 = vmatmul.msk.bf16.vlgmr.msra.gmra.mxu1 %vm157_vm11, %v1533_v45  ;;  %2217 = vmatmul.msk.bf16.vlgmr.msra.gmra.mxu2 %vm157_vm11, %v1533_v45 }
 0x85e   :  { %1754 = vmatpush.bf16.msra.mxu1 %v2588_v62  ;;  %1777 = vmatpush.bf16.msra.mxu2 %v2492_v26  ;;  %v1592_v26 = vadd.f32 %v1590_v18, %v2959_v34 }
 0x860   :  { %v2220_v52 = vmul.f32 -1.442695, %v1592_v26 }
 0x862   :  { %1755 = vmatpush.bf16.msra.mxu1 %v2599_v3  ;;  %1778 = vmatpush.bf16.msra.mxu2 %v2517_v36  ;;  %2383 = vpow2.f32 %v2220_v52  ;;  %v1613_v36 = vrot.slane %v3102_v42, 4 }
 0x868   :  { %v2384_v35 = vpop.eup %2383 }
 0x869   :  { %v1596_v55 = vadd.f32 1.0, %v2384_v35 }
 0x86b   :  { %2385 = vrcp.f32 %v1596_v55  ;;  %v1608_v28 = vand.u32 2147483648, %v1596_v55  ;;  %vm1602_vm10 = vweird.f32 %v1596_v55  ;;  %v1606_v21 = vand.u32 2147483647, %v1596_v55 }
 0x86d   :  { %2222 = vmatmul.msk.bf16.vlgmr.msrb.gmra.mxu1 %vm157_vm11, %v3079_v13  ;;  %v1615_v13 = vadd.f32 %v1613_v36, %v2966_v20  ;;  %v1609_v25 = vor.u32 1.1754944e-38, %v1608_v28  ;;  %vm1607_vm13 = vcmp.eq.f32.partialorder %v1606_v21, 8.507059e+37 }
 0x86e   :  { %1816 = vmatpush.bf16.msrb.mxu1 %v2502_v30 }
 0x86f   :  { %v2221_v30 = vmul.f32 -1.442695, %v1615_v13 }
 0x871   :  { %2387 = vpow2.f32 %v2221_v30 }
 0x872   :  { %1817 = vmatpush.bf16.msrb.mxu1 %v2544_v46  ;;  %v2386_v46 = vpop.eup %2385 }
 0x873   :  { %vm1603_vm9 = vweird.f32 %v2386_v46 }
 0x874   :  { %vm1604_vm12 = vmor %vm1602_vm10, %vm1603_vm9 }
 0x877   :  { %v2388_v60 = vpop.eup %2387 }
 0x87d   :  { %2228 = vmatmul.msk.bf16.vlgmr.msra.gmra.mxu1 %vm157_vm11, %v1533_v45 }
 0x87e   :  { %1975 = vmatpush.bf16.msra.mxu1 %v2635_v24  ;;  %v1598_v24 = vmul.f32 %v2386_v46, %v1596_v55 }
 0x880   :  { %v1599_v11 = vsub.f32 1.0, %v1598_v24 }
 0x882   :  { %1976 = vmatpush.bf16.msra.mxu1 %v2664_v40  ;;  %v1619_v40 = vadd.f32 1.0, %v2388_v60  ;;  %v1600_v27 = vmul.f32 %v2386_v46, %v1599_v11 }
 0x884   :  { %2389 = vrcp.f32 %v1619_v40  ;;  %v1601_v63 = vadd.f32 %v2386_v46, %v1600_v27  ;;  %v1631_v61 = vand.u32 2147483648, %v1619_v40  ;;  %vm1625_vm15 = vweird.f32 %v1619_v40 }
 0x885   :  { %v1629_v50 = vand.u32 2147483647, %v1619_v40 }
 0x886   :  { %v1605_v51 = vsel %vm1604_vm12, %v2386_v46, %v1601_v63  ;;  %v1632_v58 = vor.u32 1.1754944e-38, %v1631_v61 }
 0x887   :  { %v1610_v2 = vsel %vm1607_vm13, %v1609_v25, %v1605_v51  ;;  %vm1630_vm1 = vcmp.eq.f32.partialorder %v1629_v50, 8.507059e+37 }
 0x88a   :  { %v2390_v0 = vpop.eup %2389 }
 0x88b   :  { %v1621_v5 = vmul.f32 %v2390_v0, %v1619_v40  ;;  %vm1626_vm14 = vweird.f32 %v2390_v0 }
 0x88c   :  { %vm1627_vm0 = vmor %vm1625_vm15, %vm1626_vm14 }
 0x88d   :  { %v1622_v48 = vsub.f32 1.0, %v1621_v5 }
 0x88f   :  { %v1623_v14 = vmul.f32 %v2390_v0, %v1622_v48 }
 0x891   :  { %v1624_v1 = vadd.f32 %v2390_v0, %v1623_v14 }
 0x893   :  { %v1628_v16 = vsel %vm1627_vm0, %v2390_v0, %v1624_v1 }
 0x894   :  { %v1633_v56 = vsel %vm1630_vm1, %v1632_v58, %v1628_v16 }
 0x8da   :  { %v3131_v12 = vpop.f32.mrf.mxu1 }
 0x8e0   :  { %v1559_v37 = vpop.f32.mrf.mxu2 }
 0x8e2   :  { %v1548_v4 = vpop.f32.mrf.mxu1 }
 0x8e8   :  { %v1561_v42 = vpop.f32.mrf.mxu2 }
 0x8ea   :  { %v1644_v44 = vpop.f32.mrf.mxu1 }
 0x8eb   :  { %v1645_v8 = vadd.f32 %v2977_v9, %v1644_v44 }
 0x8ed   :  { %v1649_v32 = vrot.slane %v1645_v8, 4 }
 0x8ef   :  { %v1651_v38 = vmul.f32 %v1649_v32, %v1610_v2 }
 0x8f1   :  { %v1652_v59 = vadd.f32 %v1651_v38, %v2984_v31 }
 0x8f2   :  { %v1646_v10 = vpop.f32.mrf.mxu1 }
 0x8f3   :  { %2391 = vtanh.f32 %v1652_v59 }
 0x8f9   :  { %v2392_v22 = vpop.eup %2391 }
 0x8fa   :  { %v1655_v29 = vrot.slane %v2392_v22, 2  ;;  %v1757_v49 = vpop.f32.mrf.mxu1 }
 0x8fb   :  { %v1758_v2 = vadd.f32 %v3035_v7, %v1757_v49 }
 0x8fc   :  { %v1657_v54 = vsub.f32 %v3075_v53, %v1655_v29 }
 0x8fe   :  { %v1659_v6 = vrot.slane %v1657_v54, 6 }
 0x900   :  { %v1661_v45 = vmul.f32 %v1659_v6, %v1633_v56 }
 0x902   :  { %v3136_v18 = vadd.f32 %v2392_v22, %v1661_v45  ;;  %v1759_v26 = vpop.f32.mrf.mxu1 }
 0x904   :  { %v1663_v52 = vpack.c.bf16 %v3136_v18, %v3136_v18 }
 0x906   :  { %v3140_v36 = vrot.slane %v1663_v52, 2 }
 0x908   :  { %2223 = vmatmul.msk.bf16.vlgmr.msrb.gmra.mxu2 %vm157_vm11, %v3140_v36  ;;  %2225 = vmatmul.msk.bf16.vlgmr.msrb.gmra.mxu3 %vm157_vm11, %v3140_v36 }
 0x909   :  { %2227 = vmatmul.msk.bf16.vlgmr.msra.gmra.mxu0 %vm157_vm11, %v3140_v36  ;;  %2232 = vmatmul.msk.bf16.vlgmr.msrb.gmra.mxu1 %vm157_vm11, %v3140_v36 }
 0x90a   :  { %1875 = vmatpush.bf16.msrb.mxu2 %v2534_v43  ;;  %1909 = vmatpush.bf16.msrb.mxu3 %v2622_v19 }
 0x90b   :  { %1942 = vmatpush.bf16.msra.mxu0 %v2633_v23 }
 0x90e   :  { %1876 = vmatpush.bf16.msrb.mxu2 %v2549_v47  ;;  %1910 = vmatpush.bf16.msrb.mxu3 %v2649_v33 }
 0x90f   :  { %1943 = vmatpush.bf16.msra.mxu0 %v2662_v39 }
 0x919   :  { %2231 = vmatmul.msk.bf16.vlgmr.msrb.gmra.mxu0 %vm157_vm11, %v3140_v36 }
 0x986   :  { %v1744_v53 = vpop.f32.mrf.mxu0  ;;  %v3158_v35 = vpop.f32.mrf.mxu1 }
 0x987   :  { %v1745_v59 = vadd.f32 %v3042_v15, %v1744_v53  ;;  %v1847_v53 = vrot.slane %v3158_v35, 2 }
 0x98b   :  { %v1678_v13 = vpop.f32.mrf.mxu2  ;;  %v1711_v55 = vpop.f32.mrf.mxu3 }
 0x98c   :  { %v1679_v43 = vadd.f32 %v1678_v13, %v3131_v12  ;;  %v1712_v30 = vadd.f32 %v1711_v55, %v1559_v37  ;;  %v1849_v55 = vadd.f32 %v1847_v53, %v2966_v20 }
 0x98e   :  { %v1682_v19 = vadd.f32 %v3021_v41, %v1679_v43  ;;  %v1715_v23 = vadd.f32 %v3027_v57, %v1712_v30  ;;  %v1746_v47 = vpop.f32.mrf.mxu0  ;;  %v1821_v46 = vpop.f32.mrf.mxu1  ;;  %v2234_v30 = vmul.f32 -1.442695, %v1849_v55 }
 0x990   :  { %v2224_v33 = vmul.f32 -1.442695, %v1682_v19  ;;  %v2226_v24 = vmul.f32 -1.442695, %v1715_v23 }
 0x992   :  { %2393 = vpow2.f32 %v2224_v33 }
 0x993   :  { %2395 = vpow2.f32 %v2226_v24  ;;  %v1680_v39 = vpop.f32.mrf.mxu2  ;;  %v1713_v60 = vpop.f32.mrf.mxu3 }
 0x996   :  { %v1806_v40 = vpop.f32.mrf.mxu0 }
 0x998   :  { %v2394_v11 = vpop.eup %2393 }
 0x999   :  { %v2396_v4 = vpop.eup %2395  ;;  %v1686_v27 = vadd.f32 1.0, %v2394_v11  ;;  %v2004_v11 = vld [vmem:[%s3287_s0 + $0x1d8] sm:$0xff] }
 0x99a   :  { %v1719_v63 = vadd.f32 1.0, %v2396_v4  ;;  %v2001_v4 = vld [vmem:[%s3287_s0 + $0x1c0] sm:$0xff] }
 0x99b   :  { %2397 = vrcp.f32 %v1686_v27  ;;  %v1698_v21 = vand.u32 2147483648, %v1686_v27  ;;  %v1696_v8 = vand.u32 2147483647, %v1686_v27  ;;  %vm1692_vm3 = vweird.f32 %v1686_v27 }
 0x99c   :  { %2399 = vrcp.f32 %v1719_v63  ;;  %v1731_v61 = vand.u32 2147483648, %v1719_v63  ;;  %vm1725_vm7 = vweird.f32 %v1719_v63  ;;  %v1729_v50 = vand.u32 2147483647, %v1719_v63 }
 0x99d   :  { %v1699_v25 = vor.u32 1.1754944e-38, %v1698_v21  ;;  %vm1697_vm5 = vcmp.eq.f32.partialorder %v1696_v8, 8.507059e+37 }
 0x99e   :  { %v1808_v12 = vpop.f32.mrf.mxu0  ;;  %v1732_v54 = vor.u32 1.1754944e-38, %v1731_v61  ;;  %vm1730_vm9 = vcmp.eq.f32.partialorder %v1729_v50, 8.507059e+37 }
 0x99f   :  { %v2002_v12 = vld [vmem:[%s3287_s0 + $0x1c8] sm:$0xff] }
 0x9a0   :  { %v2005_v21 = vpack.c.bf16 %v2002_v12, %v2001_v4 }
 0x9a1   :  { %v2398_v37 = vpop.eup %2397 }
 0x9a2   :  { %v2400_v42 = vpop.eup %2399  ;;  %v1688_v28 = vmul.f32 %v2398_v37, %v1686_v27  ;;  %vm1693_vm2 = vweird.f32 %v2398_v37 }
 0x9a3   :  { %v1721_v44 = vmul.f32 %v2400_v42, %v1719_v63  ;;  %vm1694_vm4 = vmor %vm1692_vm3, %vm1693_vm2  ;;  %vm1726_vm6 = vweird.f32 %v2400_v42 }
 0x9a4   :  { %v1689_v0 = vsub.f32 1.0, %v1688_v28  ;;  %vm1727_vm8 = vmor %vm1725_vm7, %vm1726_vm6 }
 0x9a5   :  { %v1722_v32 = vsub.f32 1.0, %v1721_v44 }
 0x9a6   :  { %v1690_v51 = vmul.f32 %v2398_v37, %v1689_v0 }
 0x9a7   :  { %v1723_v14 = vmul.f32 %v2400_v42, %v1722_v32 }
 0x9a8   :  { %v1691_v5 = vadd.f32 %v2398_v37, %v1690_v51 }
 0x9a9   :  { %v1724_v22 = vadd.f32 %v2400_v42, %v1723_v14 }
 0x9aa   :  { %v1695_v38 = vsel %vm1694_vm4, %v2398_v37, %v1691_v5 }
 0x9ab   :  { %v1700_v48 = vsel %vm1697_vm5, %v1699_v25, %v1695_v38  ;;  %v1728_v29 = vsel %vm1727_vm8, %v2400_v42, %v1724_v22 }
 0x9ac   :  { %v1761_v10 = vmul.f32 %v1758_v2, %v1700_v48  ;;  %v1733_v58 = vsel %vm1730_vm9, %v1732_v54, %v1728_v29 }
 0x9ae   :  { %v1762_v1 = vadd.f32 %v1761_v10, %v1745_v59 }
 0x9b0   :  { %2401 = vtanh.f32 %v1762_v1 }
 0x9b6   :  { %v2402_v16 = vpop.eup %2401 }
 0x9b7   :  { %v1764_v49 = vsub.f32 %v3111_v17, %v2402_v16  ;;  %v1824_v17 = vrot.slane %v1806_v40, 2  ;;  %v2003_v40 = vld [vmem:[%s3287_s0 + $0x1d0] sm:$0xff] }
 0x9b8   :  { %v2006_v63 = vpack.c.bf16 %v2004_v11, %v2003_v40  ;;  %v2052_v11 = vld [vmem:[%s3287_s0 + $0x230] sm:$0xff] }
 0x9b9   :  { %v1765_v6 = vmul.f32 %v1764_v49, %v1733_v58  ;;  %v1826_v26 = vadd.f32 %v1824_v17, %v2959_v34 }
 0x9ba   :  { %2036 = vmatpush.bf16.msrb.mxu0 %v2006_v63 }
 0x9bb   :  { %v3166_v56 = vadd.f32 %v2402_v16, %v1765_v6  ;;  %v2233_v52 = vmul.f32 -1.442695, %v1826_v26 }
 0x9bd   :  { %v1767_v45 = vpack.c.bf16 %v3166_v56, %v3166_v56  ;;  %2403 = vpow2.f32 %v2233_v52 }
 0x9be   :  { %2037 = vmatpush.bf16.msrb.mxu0 %v2005_v21 }
 0x9bf   :  { %2229 = vmatmul.msk.bf16.vlgmr.msra.gmra.mxu2 %vm157_vm11, %v1767_v45  ;;  %2230 = vmatmul.msk.bf16.vlgmr.msra.gmra.mxu3 %vm157_vm11, %v1767_v45 }
 0x9c0   :  { %1988 = vmatpush.bf16.msra.mxu2 %v2588_v62 }
 0x9c3   :  { %v2404_v13 = vpop.eup %2403 }
 0x9c4   :  { %1989 = vmatpush.bf16.msra.mxu2 %v2599_v3  ;;  %v1830_v43 = vadd.f32 1.0, %v2404_v13 }
 0x9c6   :  { %2405 = vrcp.f32 %v1830_v43  ;;  %v1842_v20 = vand.u32 2147483648, %v1830_v43  ;;  %vm1836_vm12 = vweird.f32 %v1830_v43  ;;  %v1840_v60 = vand.u32 2147483647, %v1830_v43 }
 0x9c7   :  { %2407 = vpow2.f32 %v2234_v30 }
 0x9c8   :  { %v1843_v0 = vor.u32 1.1754944e-38, %v1842_v20  ;;  %vm1841_vm14 = vcmp.eq.f32.partialorder %v1840_v60, 8.507059e+37  ;;  %v2053_v20 = vld [vmem:[%s3287_s0 + $0x238] sm:$0xff]  ;;  %v2051_v60 = vld [vmem:[%s3287_s0 + $0x228] sm:$0xff] }
 0x9c9   :  { %v2057_v12 = vpack.c.bf16 %v2052_v11, %v2051_v60  ;;  %v11_v11 = vld [vmem:[%s3287_s0 + $0x10] sm:$0x3] }
 0x9cc   :  { %v2406_v62 = vpop.eup %2405 }
 0x9cd   :  { %v1832_v19 = vmul.f32 %v2406_v62, %v1830_v43  ;;  %v2408_v23 = vpop.eup %2407  ;;  %vm1837_vm10 = vweird.f32 %v2406_v62 }
 0x9ce   :  { %v1853_v47 = vadd.f32 1.0, %v2408_v23  ;;  %vm1838_vm13 = vmor %vm1836_vm12, %vm1837_vm10  ;;  %vm2062_vm12 = vcmask 523264  }
 0x9cf   :  { %2235 = vmatmul.msk.bf16.vlgmr.msrb.gmra.mxu2 %vm157_vm11, %v3140_v36  ;;  %v1833_v34 = vsub.f32 1.0, %v1832_v19 }
 0x9d0   :  { %2409 = vrcp.f32 %v1853_v47  ;;  %v1865_v59 = vand.u32 2147483648, %v1853_v47  ;;  %vm1859_vm0 = vweird.f32 %v1853_v47 }
 0x9d1   :  { %v1834_v35 = vmul.f32 %v2406_v62, %v1833_v34 }
 0x9d2   :  { %v1866_v61 = vor.u32 1.1754944e-38, %v1865_v59 }
 0x9d3   :  { %v1835_v24 = vadd.f32 %v2406_v62, %v1834_v35 }
 0x9d5   :  { %v1839_v37 = vsel %vm1838_vm13, %v2406_v62, %v1835_v24  ;;  %v2009_v62 = vld [vmem:[%s3287_s0 + $0x1f0] sm:$0xff]  ;;  %vm2085_vm13 = vcmask 130048  }
 0x9d6   :  { %v2410_v39 = vpop.eup %2409  ;;  %v1844_v51 = vsel %vm1841_vm14, %v1843_v0, %v1839_v37  ;;  %vm2135_vm14 = vcmask 386048  }
 0x9d7   :  { %v1855_v28 = vmul.f32 %v2410_v39, %v1853_v47  ;;  %vm1860_vm15 = vweird.f32 %v2410_v39 }
 0x9d8   :  { %vm1861_vm1 = vmor %vm1859_vm0, %vm1860_vm15 }
 0x9d9   :  { %v1856_v5 = vsub.f32 1.0, %v1855_v28 }
 0x9db   :  { %v1857_v2 = vmul.f32 %v2410_v39, %v1856_v5 }
 0x9dd   :  { %v1858_v38 = vadd.f32 %v2410_v39, %v1857_v2 }
 0x9df   :  { %2241 = vmatmul.msk.bf16.vlgmr.msra.gmra.mxu2 %vm157_vm11, %v1767_v45  ;;  %v1862_v1 = vsel %vm1861_vm1, %v2410_v39, %v1858_v38  ;;  %v2054_v39 = vld [vmem:[%s3287_s0 + $0x240] sm:$0xff] }
 0x9e0   :  { %v2058_v40 = vpack.c.bf16 %v2054_v39, %v2053_v20 }
 0x9e2   :  { %2070 = vmatpush.bf16.msrb.mxu1 %v2058_v40  ;;  %v2261_v40 = vld [vmem:[%s3287_s0 + $0x260] ss:$0 sm:$0xff] }
 0x9e6   :  { %2071 = vmatpush.bf16.msrb.mxu1 %v2057_v12 }
 0xa42   :  { %v3180_v3 = vpop.f32.mrf.mxu2  ;;  %v3182_v36 = vpop.f32.mrf.mxu3 }
 0xa4a   :  { %v1782_v46 = vpop.f32.mrf.mxu2  ;;  %v1795_v33 = vpop.f32.mrf.mxu3 }
 0xa52   :  { %v1878_v27 = vpop.f32.mrf.mxu2 }
 0xa53   :  { %v1879_v42 = vadd.f32 %v2977_v9, %v1878_v27  ;;  %v1863_v9 = vand.u32 2147483647, %v1853_v47 }
 0xa55   :  { %v1883_v44 = vrot.slane %v1879_v42, 2  ;;  %vm1864_vm2 = vcmp.eq.f32.partialorder %v1863_v9, 8.507059e+37 }
 0xa57   :  { %v1885_v8 = vmul.f32 %v1883_v44, %v1844_v51 }
 0xa59   :  { %v1886_v25 = vadd.f32 %v1885_v8, %v2984_v31  ;;  %v1867_v31 = vsel %vm1864_vm2, %v1866_v61, %v1862_v1 }
 0xa5a   :  { %v1880_v32 = vpop.f32.mrf.mxu2 }
 0xa5b   :  { %2411 = vtanh.f32 %v1886_v25 }
 0xa61   :  { %v2412_v48 = vpop.eup %2411 }
 0xa62   :  { %v1889_v10 = vrot.slane %v2412_v48, 2  ;;  %v3198_v14 = vpop.f32.mrf.mxu2 }
 0xa63   :  { %v1992_v5 = vadd.f32 %v3035_v7, %v3198_v14 }
 0xa64   :  { %v1891_v22 = vsub.f32 %v3136_v18, %v1889_v10 }
 0xa66   :  { %v1893_v50 = vrot.slane %v1891_v22, 6 }
 0xa68   :  { %v1895_v29 = vmul.f32 %v1893_v50, %v1867_v31 }
 0xa6a   :  { %v1896_v16 = vadd.f32 %v2412_v48, %v1895_v29  ;;  %v1993_v54 = vpop.f32.mrf.mxu2 }
 0xa6b   :  { %v2050_v54 = vld [vmem:[%s3287_s0 + $0x220] sm:$0xff] }
 0xa6c   :  { %v1897_v49 = vpack.c.bf16 %v1896_v16, %v1896_v16  ;;  %v2049_v16 = vld [vmem:[%s3287_s0 + $0x218] sm:$0xff] }
 0xa6e   :  { %v1899_v58 = vrot.slane %v1897_v49, 3  ;;  %v2056_v49 = vpack.c.bf16 %v2050_v54, %v2049_v16 }
 0xa70   :  { %2236 = vmatmul.msk.bf16.vlgmr.msrb.gmra.mxu3 %vm157_vm11, %v1899_v58  ;;  %2238 = vmatmul.msk.bf16.vlgmr.msra.gmra.mxu0 %vm157_vm11, %v1899_v58 }
 0xa71   :  { %2240 = vmatmul.msk.bf16.vlgmr.msra.gmra.mxu1 %vm157_vm11, %v1899_v58 }
 0xa72   :  { %2072 = vmatpush.bf16.msrb.mxu1 %v2056_v49 }
 0xa80   :  { %2243 = vmatmul.msk.bf16.vlgmr.msrb.gmra.mxu0 %vm157_vm11, %v1899_v58  ;;  %v2048_v58 = vld [vmem:[%s3287_s0 + $0x210] sm:$0xff] }
 0xaed   :  { %v1945_v6 = vpop.f32.mrf.mxu0 }
 0xaee   :  { %v1946_v18 = vadd.f32 %v1945_v6, %v3182_v36  ;;  %v1978_v45 = vpop.f32.mrf.mxu1  ;;  %v2010_v36 = vld [vmem:[%s3287_s0 + $0x1f8] sm:$0xff] }
 0xaef   :  { %v2012_v19 = vpack.c.bf16 %v2010_v36, %v2009_v62  ;;  %v1979_v2 = vadd.f32 %v3042_v15, %v1978_v45  ;;  %v2103_v45 = vld [vmem:[%s3287_s0 + $0x270] sm:$0xff]  ;;  %v2080_v36 = vld [vmem:[%s3287_s0 + $0x258] sm:$0xff] }
 0xaf0   :  { %v1949_v17 = vadd.f32 %v3027_v57, %v1946_v18  ;;  %v2007_v57 = vld [vmem:[%s3287_s0 + $0x1e0] sm:$0xff]  ;;  %v2102_v18 = vld [vmem:[%s3287_s0 + $0x268] sm:$0xff]  ;;  %v2079_v62 = vld [vmem:[%s3287_s0 + $0x250] sm:$0xff] }
 0xaf1   :  { %2023 = vmatpush.bf16.msra.mxu3 %v2012_v19  ;;  %v2260_v19 = vld [vmem:[%s3287_s0 + $0x248] ss:$0 sm:$0xff] }
 0xaf2   :  { %v2239_v26 = vmul.f32 -1.442695, %v1949_v17  ;;  %v2104_v17 = vpack.c.bf16 %v2103_v45, %v2102_v18 }
 0xaf3   :  { %v1912_v52 = vpop.f32.mrf.mxu3 }
 0xaf4   :  { %v1913_v53 = vadd.f32 %v1912_v52, %v3180_v3  ;;  %2413 = vpow2.f32 %v2239_v26  ;;  %v2259_v26 = vld [vmem:[%s3287_s0 + $0x200] ss:$0 sm:$0xff] }
 0xaf5   :  { %v1947_v13 = vpop.f32.mrf.mxu0 }
 0xaf6   :  { %v1916_v55 = vadd.f32 %v3021_v41, %v1913_v53  ;;  %v1980_v43 = vpop.f32.mrf.mxu1  ;;  %v2008_v41 = vld [vmem:[%s3287_s0 + $0x1e8] sm:$0xff] }
 0xaf7   :  { %v2011_v23 = vpack.c.bf16 %v2008_v41, %v2007_v57  ;;  %v2081_v57 = vpack.c.bf16 %v2080_v36, %v2079_v62 }
 0xaf8   :  { %v2237_v30 = vmul.f32 -1.442695, %v1916_v55 }
 0xaf9   :  { %2024 = vmatpush.bf16.msra.mxu3 %v2011_v23  ;;  %2096 = vmatpush.bf16.msrb.mxu2 %v2081_v57 }
 0xafa   :  { %2415 = vpow2.f32 %v2237_v30  ;;  %v2414_v47 = vpop.eup %2413 }
 0xafb   :  { %v1914_v3 = vpop.f32.mrf.mxu3  ;;  %v1953_v33 = vadd.f32 1.0, %v2414_v47 }
 0xafd   :  { %v3221_v34 = vpop.f32.mrf.mxu0  ;;  %v1965_v10 = vand.u32 2147483648, %v1953_v33  ;;  %vm1959_vm8 = vweird.f32 %v1953_v33  ;;  %v1963_v1 = vand.u32 2147483647, %v1953_v33  ;;  %2114 = vmatpush.bf16.msrb.mxu3 %v2104_v17 }
 0xaff   :  { %v1966_v50 = vor.u32 1.1754944e-38, %v1965_v10  ;;  %vm1964_vm10 = vcmp.eq.f32.partialorder %v1963_v1, 8.507059e+37 }
 0xb00   :  { %v2416_v46 = vpop.eup %2415 }
 0xb01   :  { %v1920_v35 = vadd.f32 1.0, %v2416_v46 }
 0xb03   :  { %2417 = vrcp.f32 %v1920_v35  ;;  %v1932_v28 = vand.u32 2147483648, %v1920_v35  ;;  %v1930_v21 = vand.u32 2147483647, %v1920_v35  ;;  %vm1926_vm4 = vweird.f32 %v1920_v35 }
 0xb04   :  { %2419 = vrcp.f32 %v1953_v33 }
 0xb05   :  { %v2041_v24 = vpop.f32.mrf.mxu0  ;;  %v1933_v8 = vor.u32 1.1754944e-38, %v1932_v28  ;;  %vm1931_vm6 = vcmp.eq.f32.partialorder %v1930_v21, 8.507059e+37 }
 0xb09   :  { %v2418_v4 = vpop.eup %2417 }
 0xb0a   :  { %v2420_v27 = vpop.eup %2419  ;;  %v1922_v63 = vmul.f32 %v2418_v4, %v1920_v35  ;;  %vm1927_vm3 = vweird.f32 %v2418_v4 }
 0xb0b   :  { %v1955_v42 = vmul.f32 %v2420_v27, %v1953_v33  ;;  %vm1928_vm5 = vmor %vm1926_vm4, %vm1927_vm3  ;;  %vm1960_vm7 = vweird.f32 %v2420_v27 }
 0xb0c   :  { %v1923_v37 = vsub.f32 1.0, %v1922_v63  ;;  %vm1961_vm9 = vmor %vm1959_vm8, %vm1960_vm7 }
 0xb0d   :  { %v1956_v51 = vsub.f32 1.0, %v1955_v42 }
 0xb0e   :  { %v1924_v0 = vmul.f32 %v2418_v4, %v1923_v37 }
 0xb0f   :  { %v1957_v48 = vmul.f32 %v2420_v27, %v1956_v51 }
 0xb10   :  { %v1925_v44 = vadd.f32 %v2418_v4, %v1924_v0 }
 0xb11   :  { %v1958_v9 = vadd.f32 %v2420_v27, %v1957_v48 }
 0xb12   :  { %v1929_v25 = vsel %vm1928_vm5, %v2418_v4, %v1925_v44 }
 0xb13   :  { %v1934_v32 = vsel %vm1931_vm6, %v1933_v8, %v1929_v25  ;;  %v1962_v22 = vsel %vm1961_vm9, %v2420_v27, %v1958_v9 }
 0xb14   :  { %v1995_v38 = vmul.f32 %v1992_v5, %v1934_v32  ;;  %v1967_v14 = vsel %vm1964_vm10, %v1966_v50, %v1962_v22 }
 0xb16   :  { %v1996_v59 = vadd.f32 %v1995_v38, %v1979_v2 }
 0xb18   :  { %2421 = vtanh.f32 %v1996_v59 }
 0xb1e   :  { %v2422_v61 = vpop.eup %2421 }
 0xb1f   :  { %v1998_v7 = vsub.f32 %v3166_v56, %v2422_v61  ;;  %v2047_v56 = vld [vmem:[%s3287_s0 + $0x208] sm:$0xff] }
 0xb20   :  { %v2055_v6 = vpack.c.bf16 %v2048_v58, %v2047_v56 }
 0xb21   :  { %v1999_v31 = vmul.f32 %v1998_v7, %v1967_v14 }
 0xb22   :  { %2073 = vmatpush.bf16.msrb.mxu1 %v2055_v6 }
 0xb23   :  { %v2000_v29 = vadd.f32 %v2422_v61, %v1999_v31 }
 0xb25   :  { %v2013_v15 = vpack.c.bf16 %v2000_v29, %v2000_v29 }
 0xb27   :  { %2242 = vmatmul.msk.bf16.vlgmr.msra.gmra.mxu3 %vm157_vm11, %v2013_v15 }
 0xbaa   :  { %v2026_v52 = vpop.f32.mrf.mxu3 }
 0xbab   :  { %v2040_v53 = vadd.f32 %v3221_v34, %v2026_v52  ;;  %v2262_v34 = vld [vmem:[%s3287_s0 + $0x278] ss:$0 sm:$0xff] }
 0xbad   :  { %v2045_v13 = vadd.f32 %v2259_v26, %v2040_v53 }
 0xbaf   :  { %v2046_v55 = vmax.f32 %v2045_v13, 0.0 }
 0xbb1   :  { %v2059_v43 = vpack.c.bf16 %v2046_v55, %v2046_v55 }
 0xbb2   :  { %v2028_v30 = vpop.f32.mrf.mxu3 }
 0xbb3   :  { %2244 = vmatmul.msk.bf16.vlgmr.msrb.gmra.mxu1 %vm2062_vm12, %v2059_v43 }
 0xc30   :  { %v2075_v41 = vpop.f32.mrf.mxu1 }
 0xc31   :  { %v2076_v3 = vadd.f32 %v2260_v19, %v2075_v41 }
 0xc33   :  { %v2082_v23 = vpack.c.bf16 %v2076_v3, %v2076_v3 }
 0xc35   :  { %2245 = vmatmul.msk.bf16.vlgmr.msrb.gmra.mxu2 %vm2085_vm13, %v2082_v23  ;;  %2246 = vmatmul.msk.bf16.vlgmr.msrb.gmra.mxu3 %vm2085_vm13, %v2082_v23 }
 0xc38   :  { %v2077_v47 = vpop.f32.mrf.mxu1 }
 0xcb8   :  { %v2098_v46 = vpop.f32.mrf.mxu2  ;;  %v2116_v33 = vpop.f32.mrf.mxu3 }
 0xcb9   :  { %v2117_v35 = vadd.f32 %v2262_v34, %v2116_v33  ;;  %v2099_v27 = vadd.f32 %v2261_v40, %v2098_v46 }
 0xcbb   :  { %v2120_v24 = vmul.f32 0.5, %v2117_v35  ;;  %2126 = vrot.lane.b32.xlu0 %v2117_v35, %s2435_s4 }
 0xcbd   :  { %v2121_v20 = vmul.f32 1.442695, %v2120_v24 }
 0xcbf   :  { %2423 = vpow2.f32 %v2121_v20 }
 0xcc0   :  { %v2100_v39 = vpop.f32.mrf.mxu2  ;;  %v2118_v60 = vpop.f32.mrf.mxu3 }
 0xcc5   :  { %v2424_v4 = vpop.eup %2423 }
 0xcc6   :  { %v2123_v63 = vmul.f32 %v2424_v4, %v11_v11 }
 0xcc8   :  { %v2124_v12 = vadd.f32 %v2123_v63, %v2099_v27 }
 0xcca   :  { %2130 = vrot.lane.b32.xlu0 %v2124_v12, %s2436_s9 }
 0xd2d   :  { %v2127_v37 = vpop.permute.xlu0 %2126 }
 0xd2e   :  { %v2133_v42 = vsel %vm2085_vm13, %v2099_v27, %v2127_v37 }
 0xd3c   :  { %v2131_v28 = vpop.permute.xlu0 %2130 }
 0xd3d   :  { %v2134_v0 = vsel %vm157_vm11, %v2133_v42, %v2131_v28 }
 0xd3e   :  { %2136 = vst.msk [vmem:[%s3288_s1] sm:$0x3] %vm2135_vm14, %v2134_v0 }

</bundles_post_ra>
